<compile_context>
chip_gen: v6e
topology: v6e:2x2x1
jax: 0.10.0
libtpu: 0.0.40
codegen_flags: <defaults>
</compile_context>

<pallas_src>
import jax
import jax.numpy as jnp
from jax import lax
from jax.experimental import pallas as pl
from jax.experimental.pallas import tpu as pltpu


def _round_up(x, m):
    return (x + m - 1) // m * m


def _make_cppn_kernel(compute_dtype, act_dtype):
    # HIGHEST only matters for f32 operands (makes the exact path bit-faithful on MXU);
    # for bf16 operands the native bf16xbf16->f32 MXU op is already exact per-product.
    exact = jnp.dtype(compute_dtype) == jnp.dtype(jnp.float32)
    precision = lax.Precision.HIGHEST if exact else None

    def kernel(in_ref, w_in_ref, b_in_ref,
               w1_ref, b1_ref, w2_ref, b2_ref,
               w3_ref, b3_ref, w4_ref, b4_ref,
               o_ref):
        # All activations are (features, tile_n): point axis is lane-dense.
        def affine(w_ref, b_ref, h):
            return jnp.dot(w_ref[...], h.astype(compute_dtype),
                           preferred_element_type=jnp.float32,
                           precision=precision) + b_ref[...]

        # u = [W_z | W_x | W_y | W_r] @ [z; x; y; r] + b_z   -- one fused matmul.
        h = jnp.tanh(affine(w_in_ref, b_in_ref, in_ref[...]).astype(act_dtype))
        h = jnp.tanh(affine(w1_ref, b1_ref, h).astype(act_dtype))
        h = jnp.tanh(affine(w2_ref, b2_ref, h).astype(act_dtype))
        h = jnp.tanh(affine(w3_ref, b3_ref, h).astype(act_dtype))
        logits = affine(w4_ref, b4_ref, h)
        o_ref[...] = jax.nn.sigmoid(logits.astype(act_dtype)).astype(o_ref.dtype)

    return kernel


def cppn_forward_fused(feats_fm, params, *, tile_n=8192,
                       compute_dtype=jnp.float32, act_dtype=jnp.float32):
    """CPPN forward on a feature-major slab.

    feats_fm: (dim_z + 3, N) = [z; x; y; r] stacked along axis 0 (feature-major).
    Returns (dim_c, N) float32 (feature-major).  No wrapper-side pad/transpose.
    """
    dim_in, N = feats_fm.shape
    ch = params["w1"].shape[0]
    dim_c = params["w4"].shape[0]
    assert tile_n % 128 == 0, "tile_n must be a multiple of 128 (lane width)"

    # Tile: as large as requested, but capped so there are >= 2 grid steps when N
    # allows it (keeps both v7x TensorCores fed); always a multiple of 128.
    half = _round_up(max(1, -(-N // 2)), 128)
    tile = max(128, min(tile_n, half))
    grid = pl.cdiv(N, tile)  # Pallas masks the partial last block on read/write.

    feats_fm = feats_fm.astype(compute_dtype)

    # Fuse l_z/l_x/l_y/l_r weights into one (ch, dim_in) matrix.  Only l_z has a
    # bias in the spec (l_x/l_y/l_r are bias=False), so b_in = b_z.
    w_in = jnp.concatenate(
        [params["wz"], params["wx"], params["wy"], params["wr"]],
        axis=1).astype(compute_dtype)
    b_in = params["bz"].astype(jnp.float32)
    w1 = params["w1"].astype(compute_dtype)
    w2 = params["w2"].astype(compute_dtype)
    w3 = params["w3"].astype(compute_dtype)
    w4 = params["w4"].astype(compute_dtype)
    b1 = params["b1"].astype(jnp.float32)
    b2 = params["b2"].astype(jnp.float32)
    b3 = params["b3"].astype(jnp.float32)
    b4 = params["b4"].astype(jnp.float32)

    full = lambda shape: pl.BlockSpec(shape, lambda i: (0, 0))
    in_specs = [
        pl.BlockSpec((dim_in, tile), lambda i: (0, i)),  # fused [z;x;y;r]
        full((ch, dim_in)), full((ch, 1)),               # W_in, b_z
        full((ch, ch)), full((ch, 1)),                   # W1, b1
        full((ch, ch)), full((ch, 1)),                   # W2, b2
        full((ch, ch)), full((ch, 1)),                   # W3, b3
        full((dim_c, ch)), full((dim_c, 1)),             # W4, b4
    ]

    out = pl.pallas_call(
        _make_cppn_kernel(compute_dtype, act_dtype),
        out_shape=jax.ShapeDtypeStruct((dim_c, N), jnp.float32),
        grid_spec=pltpu.PrefetchScalarGridSpec(
            num_scalar_prefetch=0,
            grid=(grid,),
            in_specs=in_specs,
            out_specs=pl.BlockSpec((dim_c, tile), lambda i: (0, i)),
        ),
        compiler_params=pltpu.CompilerParams(
            dimension_semantics=("parallel",),      # shards steps across v7x cores
            vmem_limit_bytes=48 * 1024 * 1024),     # big tiles clear v5e's 16MiB default
    )(feats_fm, w_in, b_in, w1, b1, w2, b2, w3, b3, w4, b4)
    return out


def cppn_forward(z, x, y, r, params, **kwargs):
    """PyTorch-signature wrapper: z (N, dim_z); x, y, r (N, 1) -> (N, dim_c) f32.

    Does one concat+transpose HBM pass; callers that already hold feature-major
    coordinates (e.g. a meshgrid) should call cppn_forward_fused directly.
    """
    feats_fm = jnp.concatenate([z, x, y, r], axis=1).T
    return cppn_forward_fused(feats_fm, params, **kwargs).T


def init_params(key, dim_z, ch, dim_c):
    """weights_init: Linear weights ~ N(0,1), biases = 0.  PyTorch (out, in) layout;
    biases stored as (out, 1) columns so they broadcast over the lane (point) axis."""
    ks = jax.random.split(key, 8)
    return {
        "wz": jax.random.normal(ks[0], (ch, dim_z), jnp.float32),
        "bz": jnp.zeros((ch, 1), jnp.float32),
        "wx": jax.random.normal(ks[1], (ch, 1), jnp.float32),
        "wy": jax.random.normal(ks[2], (ch, 1), jnp.float32),
        "wr": jax.random.normal(ks[3], (ch, 1), jnp.float32),
        "w1": jax.random.normal(ks[4], (ch, ch), jnp.float32),
        "b1": jnp.zeros((ch, 1), jnp.float32),
        "w2": jax.random.normal(ks[5], (ch, ch), jnp.float32),
        "b2": jnp.zeros((ch, 1), jnp.float32),
        "w3": jax.random.normal(ks[6], (ch, ch), jnp.float32),
        "b3": jnp.zeros((ch, 1), jnp.float32),
        "w4": jax.random.normal(ks[7], (dim_c, ch), jnp.float32),
        "b4": jnp.zeros((dim_c, 1), jnp.float32),
    }


def cppn_forward_ref(z, x, y, r, p):
    """Pure-JAX f32 reference mirroring the PyTorch forward."""
    hp = lax.Precision.HIGHEST
    u = (jnp.dot(z, p["wz"].T, precision=hp) + p["bz"].T
         + jnp.dot(x, p["wx"].T, precision=hp)
         + jnp.dot(y, p["wy"].T, precision=hp)
         + jnp.dot(r, p["wr"].T, precision=hp))
    h = jnp.tanh(u)
    h = jnp.tanh(jnp.dot(h, p["w1"].T, precision=hp) + p["b1"].T)
    h = jnp.tanh(jnp.dot(h, p["w2"].T, precision=hp) + p["b2"].T)
    h = jnp.tanh(jnp.dot(h, p["w3"].T, precision=hp) + p["b3"].T)
    return jax.nn.sigmoid(jnp.dot(h, p["w4"].T, precision=hp) + p["b4"].T)


if __name__ == "__main__":
    # Small CPPN-like shapes; N deliberately NOT a multiple of 128 to exercise the
    # partial last block (no wrapper-side padding anymore).
    N, dim_z, ch, dim_c = 1000, 8, 32, 3
    key = jax.random.PRNGKey(0)
    kz, kx, ky, kp = jax.random.split(key, 4)

    z = jax.random.normal(kz, (N, dim_z), jnp.float32)
    x = jax.random.normal(kx, (N, 1), jnp.float32)
    y = jax.random.normal(ky, (N, 1), jnp.float32)
    r = jnp.sqrt(x * x + y * y)  # radial coordinate, as in typical CPPN usage

    params = init_params(kp, dim_z, ch, dim_c)
    ref = cppn_forward_ref(z, x, y, r, params)

    # Default (exact) path: f32 MXU operands + f32 activations, matches the module.
    out_f32 = jax.block_until_ready(cppn_forward(z, x, y, r, params))
    assert out_f32.shape == (N, dim_c)
    assert bool(jnp.allclose(out_f32, ref, atol=1e-4, rtol=1e-4)), \
        "f32 mismatch vs reference"

    # Fast path (recommended on v6e/v7x): bf16 MXU operands + bf16 tanh/sigmoid,
    # f32 accumulation & bias add.  With N(0,1) weights this network is chaotic at a
    # few boundary points, so we sanity-check validity rather than tight closeness.
    out_fast = jax.block_until_ready(
        cppn_forward(z, x, y, r, params,
                     compute_dtype=jnp.bfloat16, act_dtype=jnp.bfloat16))
    assert out_fast.shape == (N, dim_c)
    assert bool(jnp.all(jnp.isfinite(out_fast)))
    assert bool(jnp.all((out_fast >= 0.0) & (out_fast <= 1.0))), \
        "sigmoid output out of range"

    print("KERNEL_OK")
</pallas_src>

<mosaic_0001>
module attributes {stable_mosaic.version = 11 : i64} {
  func.func @kernel(%arg0: i32, %arg1: memref<11x512xf32, #tpu.memory_space<vmem>>, %arg2: memref<32x11xf32, #tpu.memory_space<vmem>>, %arg3: memref<32x1xf32, #tpu.memory_space<vmem>>, %arg4: memref<32x32xf32, #tpu.memory_space<vmem>>, %arg5: memref<32x1xf32, #tpu.memory_space<vmem>>, %arg6: memref<32x32xf32, #tpu.memory_space<vmem>>, %arg7: memref<32x1xf32, #tpu.memory_space<vmem>>, %arg8: memref<32x32xf32, #tpu.memory_space<vmem>>, %arg9: memref<32x1xf32, #tpu.memory_space<vmem>>, %arg10: memref<3x32xf32, #tpu.memory_space<vmem>>, %arg11: memref<3x1xf32, #tpu.memory_space<vmem>>, %arg12: memref<3x512xf32, #tpu.memory_space<vmem>>) attributes {dimension_semantics = [#tpu.dimension_semantics<parallel>], iteration_bounds = array<i64: 2>, scalar_prefetch = 0 : i64, scratch_operands = 0 : i64, tpu.core_type = #tpu.core_type<tc>, window_params = [{transform_indices = @transform_0, window_bounds = array<i64: 11, 512>}, {pipeline_mode = #tpu.pipeline_mode<synchronous>, transform_indices = @transform_1, window_bounds = array<i64: 32, 11>}, {pipeline_mode = #tpu.pipeline_mode<synchronous>, transform_indices = @transform_2, window_bounds = array<i64: 32, 1>}, {pipeline_mode = #tpu.pipeline_mode<synchronous>, transform_indices = @transform_3, window_bounds = array<i64: 32, 32>}, {pipeline_mode = #tpu.pipeline_mode<synchronous>, transform_indices = @transform_4, window_bounds = array<i64: 32, 1>}, {pipeline_mode = #tpu.pipeline_mode<synchronous>, transform_indices = @transform_5, window_bounds = array<i64: 32, 32>}, {pipeline_mode = #tpu.pipeline_mode<synchronous>, transform_indices = @transform_6, window_bounds = array<i64: 32, 1>}, {pipeline_mode = #tpu.pipeline_mode<synchronous>, transform_indices = @transform_7, window_bounds = array<i64: 32, 32>}, {pipeline_mode = #tpu.pipeline_mode<synchronous>, transform_indices = @transform_8, window_bounds = array<i64: 32, 1>}, {pipeline_mode = #tpu.pipeline_mode<synchronous>, transform_indices = @transform_9, window_bounds = array<i64: 3, 32>}, {pipeline_mode = #tpu.pipeline_mode<synchronous>, transform_indices = @transform_10, window_bounds = array<i64: 3, 1>}, {transform_indices = @transform_11, window_bounds = array<i64: 3, 512>}]} {
    %c0 = arith.constant 0 : index
    %c0_0 = arith.constant 0 : index
    %0 = vector.load %arg1[%c0, %c0_0] : memref<11x512xf32, #tpu.memory_space<vmem>>, vector<11x512xf32>
    %c0_1 = arith.constant 0 : index
    %c0_2 = arith.constant 0 : index
    %1 = vector.load %arg2[%c0_1, %c0_2] : memref<32x11xf32, #tpu.memory_space<vmem>>, vector<32x11xf32>
    %cst = arith.constant dense<0.000000e+00> : vector<32x512xf32>
    %2 = tpu.matmul %1, %0, %cst {dimension_numbers = #tpu.dot_dimension_numbers<[1], [0], [0], [1], [0, 0, 1, 1], [], []>, precision = #tpu.contract_precision<fp32>} : vector<32x11xf32>, vector<11x512xf32>, vector<32x512xf32> -> vector<32x512xf32>
    %c0_3 = arith.constant 0 : index
    %c0_4 = arith.constant 0 : index
    %3 = vector.load %arg3[%c0_3, %c0_4] : memref<32x1xf32, #tpu.memory_space<vmem>>, vector<32x1xf32>
    %4 = vector.broadcast %3 : vector<32x1xf32> to vector<32x512xf32>
    %5 = arith.addf %2, %4 : vector<32x512xf32>
    %6 = math.tanh %5 : vector<32x512xf32>
    %c0_5 = arith.constant 0 : index
    %c0_6 = arith.constant 0 : index
    %7 = vector.load %arg4[%c0_5, %c0_6] : memref<32x32xf32, #tpu.memory_space<vmem>>, vector<32x32xf32>
    %cst_7 = arith.constant dense<0.000000e+00> : vector<32x512xf32>
    %8 = tpu.matmul %7, %6, %cst_7 {dimension_numbers = #tpu.dot_dimension_numbers<[1], [0], [0], [1], [0, 0, 1, 1], [], []>, precision = #tpu.contract_precision<fp32>} : vector<32x32xf32>, vector<32x512xf32>, vector<32x512xf32> -> vector<32x512xf32>
    %c0_8 = arith.constant 0 : index
    %c0_9 = arith.constant 0 : index
    %9 = vector.load %arg5[%c0_8, %c0_9] : memref<32x1xf32, #tpu.memory_space<vmem>>, vector<32x1xf32>
    %10 = vector.broadcast %9 : vector<32x1xf32> to vector<32x512xf32>
    %11 = arith.addf %8, %10 : vector<32x512xf32>
    %12 = math.tanh %11 : vector<32x512xf32>
    %c0_10 = arith.constant 0 : index
    %c0_11 = arith.constant 0 : index
    %13 = vector.load %arg6[%c0_10, %c0_11] : memref<32x32xf32, #tpu.memory_space<vmem>>, vector<32x32xf32>
    %cst_12 = arith.constant dense<0.000000e+00> : vector<32x512xf32>
    %14 = tpu.matmul %13, %12, %cst_12 {dimension_numbers = #tpu.dot_dimension_numbers<[1], [0], [0], [1], [0, 0, 1, 1], [], []>, precision = #tpu.contract_precision<fp32>} : vector<32x32xf32>, vector<32x512xf32>, vector<32x512xf32> -> vector<32x512xf32>
    %c0_13 = arith.constant 0 : index
    %c0_14 = arith.constant 0 : index
    %15 = vector.load %arg7[%c0_13, %c0_14] : memref<32x1xf32, #tpu.memory_space<vmem>>, vector<32x1xf32>
    %16 = vector.broadcast %15 : vector<32x1xf32> to vector<32x512xf32>
    %17 = arith.addf %14, %16 : vector<32x512xf32>
    %18 = math.tanh %17 : vector<32x512xf32>
    %c0_15 = arith.constant 0 : index
    %c0_16 = arith.constant 0 : index
    %19 = vector.load %arg8[%c0_15, %c0_16] : memref<32x32xf32, #tpu.memory_space<vmem>>, vector<32x32xf32>
    %cst_17 = arith.constant dense<0.000000e+00> : vector<32x512xf32>
    %20 = tpu.matmul %19, %18, %cst_17 {dimension_numbers = #tpu.dot_dimension_numbers<[1], [0], [0], [1], [0, 0, 1, 1], [], []>, precision = #tpu.contract_precision<fp32>} : vector<32x32xf32>, vector<32x512xf32>, vector<32x512xf32> -> vector<32x512xf32>
    %c0_18 = arith.constant 0 : index
    %c0_19 = arith.constant 0 : index
    %21 = vector.load %arg9[%c0_18, %c0_19] : memref<32x1xf32, #tpu.memory_space<vmem>>, vector<32x1xf32>
    %22 = vector.broadcast %21 : vector<32x1xf32> to vector<32x512xf32>
    %23 = arith.addf %20, %22 : vector<32x512xf32>
    %24 = math.tanh %23 : vector<32x512xf32>
    %c0_20 = arith.constant 0 : index
    %c0_21 = arith.constant 0 : index
    %25 = vector.load %arg10[%c0_20, %c0_21] : memref<3x32xf32, #tpu.memory_space<vmem>>, vector<3x32xf32>
    %cst_22 = arith.constant dense<0.000000e+00> : vector<3x512xf32>
    %26 = tpu.matmul %25, %24, %cst_22 {dimension_numbers = #tpu.dot_dimension_numbers<[1], [0], [0], [1], [0, 0, 1, 1], [], []>, precision = #tpu.contract_precision<fp32>} : vector<3x32xf32>, vector<32x512xf32>, vector<3x512xf32> -> vector<3x512xf32>
    %c0_23 = arith.constant 0 : index
    %c0_24 = arith.constant 0 : index
    %27 = vector.load %arg11[%c0_23, %c0_24] : memref<3x1xf32, #tpu.memory_space<vmem>>, vector<3x1xf32>
    %28 = vector.broadcast %27 : vector<3x1xf32> to vector<3x512xf32>
    %29 = arith.addf %26, %28 : vector<3x512xf32>
    %30 = arith.negf %29 : vector<3x512xf32>
    %31 = math.exp %30 : vector<3x512xf32>
    %cst_25 = arith.constant 1.000000e+00 : f32
    %32 = vector.broadcast %cst_25 : f32 to vector<3x512xf32>
    %33 = arith.addf %32, %31 : vector<3x512xf32>
    %34 = arith.divf %32, %33 : vector<3x512xf32>
    %c0_26 = arith.constant 0 : index
    %c0_27 = arith.constant 0 : index
    %35 = vector.load %arg12[%c0_26, %c0_27] : memref<3x512xf32, #tpu.memory_space<vmem>>, vector<3x512xf32>
    tpu.vector_store %arg12[%c0_26, %c0_27], %34 {strides = array<i32>} : memref<3x512xf32, #tpu.memory_space<vmem>>, vector<3x512xf32>,
    return
  }
  func.func @transform_0(%arg0: i32) -> (i32, i32) {
    %c0_i32 = arith.constant 0 : i32
    %c0_i32_0 = arith.constant 0 : i32
    return %c0_i32, %arg0 : i32, i32
  }
  func.func @transform_1(%arg0: i32) -> (i32, i32) {
    %c0_i32 = arith.constant 0 : i32
    %c0_i32_0 = arith.constant 0 : i32
    %c0_i32_1 = arith.constant 0 : i32
    return %c0_i32, %c0_i32_0 : i32, i32
  }
  func.func @transform_2(%arg0: i32) -> (i32, i32) {
    %c0_i32 = arith.constant 0 : i32
    %c0_i32_0 = arith.constant 0 : i32
    %c0_i32_1 = arith.constant 0 : i32
    return %c0_i32, %c0_i32_0 : i32, i32
  }
  func.func @transform_3(%arg0: i32) -> (i32, i32) {
    %c0_i32 = arith.constant 0 : i32
    %c0_i32_0 = arith.constant 0 : i32
    %c0_i32_1 = arith.constant 0 : i32
    return %c0_i32, %c0_i32_0 : i32, i32
  }
  func.func @transform_4(%arg0: i32) -> (i32, i32) {
    %c0_i32 = arith.constant 0 : i32
    %c0_i32_0 = arith.constant 0 : i32
    %c0_i32_1 = arith.constant 0 : i32
    return %c0_i32, %c0_i32_0 : i32, i32
  }
  func.func @transform_5(%arg0: i32) -> (i32, i32) {
    %c0_i32 = arith.constant 0 : i32
    %c0_i32_0 = arith.constant 0 : i32
    %c0_i32_1 = arith.constant 0 : i32
    return %c0_i32, %c0_i32_0 : i32, i32
  }
  func.func @transform_6(%arg0: i32) -> (i32, i32) {
    %c0_i32 = arith.constant 0 : i32
    %c0_i32_0 = arith.constant 0 : i32
    %c0_i32_1 = arith.constant 0 : i32
    return %c0_i32, %c0_i32_0 : i32, i32
  }
  func.func @transform_7(%arg0: i32) -> (i32, i32) {
    %c0_i32 = arith.constant 0 : i32
    %c0_i32_0 = arith.constant 0 : i32
    %c0_i32_1 = arith.constant 0 : i32
    return %c0_i32, %c0_i32_0 : i32, i32
  }
  func.func @transform_8(%arg0: i32) -> (i32, i32) {
    %c0_i32 = arith.constant 0 : i32
    %c0_i32_0 = arith.constant 0 : i32
    %c0_i32_1 = arith.constant 0 : i32
    return %c0_i32, %c0_i32_0 : i32, i32
  }
  func.func @transform_9(%arg0: i32) -> (i32, i32) {
    %c0_i32 = arith.constant 0 : i32
    %c0_i32_0 = arith.constant 0 : i32
    %c0_i32_1 = arith.constant 0 : i32
    return %c0_i32, %c0_i32_0 : i32, i32
  }
  func.func @transform_10(%arg0: i32) -> (i32, i32) {
    %c0_i32 = arith.constant 0 : i32
    %c0_i32_0 = arith.constant 0 : i32
    %c0_i32_1 = arith.constant 0 : i32
    return %c0_i32, %c0_i32_0 : i32, i32
  }
  func.func @transform_11(%arg0: i32) -> (i32, i32) {
    %c0_i32 = arith.constant 0 : i32
    %c0_i32_0 = arith.constant 0 : i32
    return %c0_i32, %arg0 : i32, i32
  }
}

</mosaic_0001>

<bundles_post_ra>
// kernel: tpu_custom_call.1
= control target key start
LH: loop header
LB: loop body
LE: loop exit
PB: predicated region body
PF: predicated region fallthrough
CT: control target
= control target key end

     0   :  { %16 = vsyncpa [#allocation4], 0  ;;  %s10100_s0 = inlined_call_operand.vmem [shape: f32[11,1000], index: 0, kind: input, shape index: {}]   ;;  %s10101_s1 = inlined_call_operand.vmem [shape: f32[32,11], index: 1, kind: input, shape index: {}]   ;;  %s10102_s2 = inlined_call_operand.vmem [shape: f32[32,1], index: 2, kind: input, shape index: {}]   ;;  %s10103_s3 = inlined_call_operand.vmem [shape: f32[32,32], index: 3, kind: input, shape index: {}]   ;;  %s10104_s4 = inlined_call_operand.vmem [shape: f32[32,1], index: 4, kind: input, shape index: {}]   ;;  %s10105_s5 = inlined_call_operand.vmem [shape: f32[32,32], index: 5, kind: input, shape index: {}]   ;;  %s10106_s6 = inlined_call_operand.vmem [shape: f32[32,1], index: 6, kind: input, shape index: {}]   ;;  %s10107_s7 = inlined_call_operand.hbm [shape: f32[32,32], index: 7, kind: input, shape index: {}]   ;;  %s10108_s8 = inlined_call_operand.vmem [shape: f32[32,1], index: 8, kind: input, shape index: {}]   ;;  %s10109_s9 = inlined_call_operand.vmem [shape: f32[3,32], index: 9, kind: input, shape index: {}]   ;;  %s10110_s10 = inlined_call_operand.vmem [shape: f32[3,1], index: 10, kind: input, shape index: {}]   ;;  %s10111_s11 = inlined_call_operand.hbm [shape: f32[3,1000], index: 11, kind: output, shape index: {}]  }
   0x1   :  { %17 = vsyncpa [#allocation5], 0 }
   0x2   :  { %19 = vsyncpa [#allocation5 + $0x1], 0  ;;  %s7701_s17 = smov 0   ;;  %s7703_s18 = smov 0  }
   0x3   :  { %s7705_s19 = smov 0   ;;  %s7707_s20 = smov 0  }
   0x4 LB: > { %s7722_s21 = sadd.s32 4294967295, %s7633_s20   ;;  %s7321_s22 = sadd.s32 4294967294, %s7633_s20   ;;  %s7633_s20 = sphi %s7707_s20, %s10357_s20   ;;  %s7629_s19 = sphi %s7705_s19, %s10361_s19   ;;  %s7625_s18 = sphi %s7703_s18, %s10360_s18   ;;  %s7621_s17 = sphi %s7701_s17, %s10359_s17  }
   0x5   : > { %s7726_s23 = sadd.s32 1, %s7633_s20   ;;  %s32_s24 = sadd.s32 1, %s7629_s19 }
   0x6   : > { %10203 = sst [smem:[#allocation9_spill]] %s7726_s23  ;;  %s29_s25 = ssub.s32 %s7633_s20, %s7726_s23 }
   0x7   : > { %p39_p0 = scmp.ne.s32.totalorder %s7629_s19, %s7625_s18  ;;  %p30_p1 = scmp.eq.s32.totalorder %s29_s25, 0 }
   0x8   : > { %p40_p2 = scmp.eq.s32.totalorder %s7633_s20, 0  ;;  %p279_p3 = scmp.eq.s32.totalorder %s7722_s21, 1 }
   0x9   : > { %p284_p4 = scmp.ne.s32.totalorder %s7625_s18, %s7621_s17  ;;  %p285_p7 = scmp.eq.s32.totalorder %s7321_s22, 1 }
   0xa   : > { %s7738_s26 = scalar_select %p30_p1, %s7629_s19, %s32_s24  }
   0xb   : > { %p7740_p5 = por %p40_p2, %p39_p0  ;;  %p7744_p6 = por %p279_p3, %p39_p0 }
   0xc   : > { %10204 = sst [smem:[#allocation10_spill]] %s7738_s26  ;;  %p7322_p8 = scmp.ge.s32.totalorder %s7633_s20, 1 }
   0xd   : > { %s10206_s28 = scalar_select %p7744_p6, 1, 0 }
   0xe   : > { %p292_p9 = scmp.lt.s32.totalorder %s7633_s20, 3  ;;  %p7750_p10 = por %p285_p7, %p284_p4 }
   0xf   : > { %p7357_p11 = scmp.eq.s32.totalorder %s7722_s21, 0  ;;  %s7635_s12 = smov [#allocation3]  }
  0x10   : > { %s10207_s29 = scalar_select %p7750_p10, 1, 0 }
  0x11   : > { %p7755_p12 = pnand %p7322_p8, %p292_p9  ;;  %s322_s13 = sshll.u32 %s7635_s12, 4  ;;  %s323_s13 = int_to_ptr.vmem [resolvable:$true] %s322_s13 }
  0x12   : > { %10208 = sst [smem:[#allocation11_spill]] %s10207_s29  ;;  %s7554_s14 = scalar_lea.vmem %s323_s13, 512 }
  0x13   : > { %p7349_p13 = pneg %p7755_p12  ;;  %p7555_p2 = scmp.ne.s32.totalorder %s323_s13, %s7554_s14 }
  0x14   : > { %p7562_p7 = scmp.lt.s32.totalorder %s323_s13, %s323_s13  ;;  %p7563_p10 = scmp.lt.s32.totalorder %s7554_s14, %s7554_s14 }
  0x15   : > { %p7350_p0 = pnand %p7357_p11, %p7349_p13 }
  0x16   : > { %p7564_p6 = por %p7563_p10, %p7562_p7 }
  0x17   : > { %p7545_p1 = pneg %p7350_p0 }
  0x19   : > { %p7557_p3 = pnand %p7555_p2, %p7545_p1 }
  0x1b   : > { %p7558_p4 = pneg %p7557_p3 }
  0x1d   : > { %p7565_p8 = pnand %p7564_p6, %p7558_p4 }
  0x1f   : > { %7568 = shalt.err (!%p7565_p8)
}
  0x20   : > { %s7636_s15 = smov 128   ;;  %s7637_s16 = smov 8  }
  0x21   : > { %7352 = dma.hbm_to_vmem [thread:$0]  (!%p7350_p0), %s10107_s7, 512, %s323_s13, [#allocation4], %s7636_s15, %s7636_s15, %s7637_s16  }
  0x22   : > { %p7324_p9 = scmp.ge.s32.totalorder %s7633_s20, 2 }
  0x24   : > { %341 = sbr.rel (%p7324_p9) target bundleno = 49 (0x31), region = 56 }
  0x29   : > { %344 = sbr.rel (!%p7740_p5) target bundleno = 49 (0x31), region = 60  ;;  %s346_s25 = sand.u32 (%p7740_p5), 1, %s7629_s19  }
  0x2a   : > { %s7341_s12 = sshll.u32 (%p7740_p5), %s7633_s20, 5  ;;  %s7325_s14 = sshll.u32 (%p7740_p5), %s346_s25, 6 }
  0x2b   : > { %s351_s29 = scalar_lea.vmem (%p7740_p5), %s10100_s0, %s7341_s12  ;;  %s348_s13 = scalar_lea.vmem (%p7740_p5), [#allocation2], %s7325_s14 }
  0x2c   : > { %v364_v0 = vld [vmem:[%s351_s29] sm:$0xff] (%p7740_p5)  ;;  %v366_v1 = vld [vmem:[%s351_s29 + $0x8] sm:$0xff] (%p7740_p5)  ;;  %v368_v2 = vld [vmem:[%s351_s29 + $0x10] sm:$0xff] (%p7740_p5) }
  0x2d   : > { %365 = vst [vmem:[%s348_s13] sm:$0xff] (%p7740_p5), %v364_v0  ;;  %367 = vst [vmem:[%s348_s13 + $0x8] sm:$0xff] (%p7740_p5), %v366_v1  ;;  %v370_v3 = vld [vmem:[%s351_s29 + $0x18] sm:$0xff] (%p7740_p5)  ;;  %v372_v4 = vld [vmem:[%s351_s29 + $0x40] sm:$0xff] (%p7740_p5) }
  0x2e   : > { %369 = vst [vmem:[%s348_s13 + $0x10] sm:$0xff] %v368_v2  ;;  %v374_v5 = vld [vmem:[%s351_s29 + $0x48] sm:$0xff]  ;;  %371 = vst [vmem:[%s348_s13 + $0x18] sm:$0xff] %v370_v3  ;;  %v376_v6 = vld [vmem:[%s351_s29 + $0x50] sm:$0xff] }
  0x2f   : > { %373 = vst [vmem:[%s348_s13 + $0x20] sm:$0xff] %v372_v4  ;;  %375 = vst [vmem:[%s348_s13 + $0x28] sm:$0xff] %v374_v5  ;;  %v378_v7 = vld [vmem:[%s351_s29 + $0x58] sm:$0xff] }
  0x30   : > { %377 = vst [vmem:[%s348_s13 + $0x30] sm:$0xff] %v376_v6  ;;  %379 = vst [vmem:[%s348_s13 + $0x38] sm:$0xff] %v378_v7 }
  0x31 PF: > { %388 = sbr.rel (%p7755_p12) target bundleno = 1501 (0x5dd), region = 83 }
  0x36   : > { %s7779_s23 = sand.u32 1, %s7625_s18  }
  0x37   : > { %s7329_s26 = sshll.u32 %s7779_s23, 6 }
  0x38   : > { %s7782_s27 = scalar_lea.vmem [#allocation2], %s7329_s26 }
  0x39   : > { %7612 = dma.done.wait (%p7357_p11), [#allocation4], 512  }
  0x3a   : > { %7614 = vsyncadd (%p7357_p11), [#allocation4], 4294966784  ;;  %v10116_v8 = vmov 0.0   ;;  %v7639_v9 = vmov 0   ;;  %vm485_vm0 = vcmask 1042432   ;;  %vm472_vm1 = vcmask 89088  }
  0x3b   : > { %566 = vmatprep.mubr.f32.mxu0 %v10116_v8  ;;  %695 = vmatprep.mubr.f32.mxu1 %v10116_v8  ;;  %v441_v10 = vld [vmem:[%s7782_s27 + $0x28] sm:$0x7]  ;;  %v440_v11 = vld [vmem:[%s7782_s27 + $0x20] sm:$0x7]  ;;  %v446_v23 = vld [vmem:[%s10101_s1 + $0x10] sm:$0xff]  ;;  %vm1818_vm2 = vcmask 261120  }
  0x3c   : > { %7398 = vset.pattern.permute.xlu1 %v7639_v9  ;;  %7397 = vset.pattern.permute.xlu0 %v7639_v9  ;;  %v437_v12 = vld [vmem:[%s7782_s27 + $0x8] sm:$0xff]  ;;  %v490_v13 = vsel %vm485_vm0, %v441_v10, 0  ;;  %v487_v14 = vsel %vm485_vm0, %v440_v11, 0  ;;  %v436_v16 = vld [vmem:[%s7782_s27] sm:$0xff]  ;;  %v447_v24 = vld [vmem:[%s10101_s1 + $0x18] sm:$0xff]  ;;  %v480_v28 = vsel %vm472_vm1, %v446_v23, 0 }
  0x3d   : > { %v7795_v15 = vand.u32 4294901760, %v437_v12  ;;  %v444_v17 = vld [vmem:[%s10101_s1] sm:$0xff]  ;;  %v445_v18 = vld [vmem:[%s10101_s1 + $0x8] sm:$0xff]  ;;  %v7804_v19 = vand.u32 4294901760, %v490_v13  ;;  %v7806_v20 = vand.u32 4294901760, %v487_v14  ;;  %v7808_v21 = vand.u32 4294901760, %v436_v16 }
  0x3e   : > { %v474_v22 = vsel %vm472_vm1, %v444_v17, 0  ;;  %v477_v27 = vsel %vm472_vm1, %v445_v18, 0  ;;  %v449_v33 = vld [vmem:[%s10102_s2 + $0x8] sm:$0xff]  ;;  %v7844_v36 = vand.u32 4294901760, %v480_v28  ;;  %v483_v37 = vsel %vm472_vm1, %v447_v24, 0  ;;  %v451_v38 = vld [vmem:[%s10102_s2 + $0x18] sm:$0xff] }
  0x3f   : > { %v7817_v25 = vand.u32 4294901760, %v474_v22  ;;  %v7820_v26 = vsub.f32 %v437_v12, %v7795_v15  ;;  %527 = vmatprep.subr.mxu0 %v7804_v19  ;;  %v7826_v29 = vsub.f32 %v490_v13, %v7804_v19  ;;  %v7829_v30 = vsub.f32 %v487_v14, %v7806_v20  ;;  %459 = vperm.xlu1 %7398, %v449_v33   ;;  %v448_v43 = vld [vmem:[%s10102_s2] sm:$0xff]  ;;  %v450_v48 = vld [vmem:[%s10102_s2 + $0x10] sm:$0xff]  ;;  %v443_v1 = vld [vmem:[%s7782_s27 + $0x38] sm:$0x7]  ;;  %s7331_s15 = sshll.u32 %s7779_s23, 4 }
  0x40   : > { %v7832_v31 = vsub.f32 %v436_v16, %v7808_v21  ;;  %v7834_v32 = vand.u32 4294901760, %v477_v27  ;;  %529 = vmatpush1.msra.mxu0 %v7806_v20  ;;  %469 = vperm.xlu0 %7397, %v451_v38   ;;  %v7868_v46 = vsub.f32 %v480_v28, %v7844_v36  ;;  %v7870_v47 = vand.u32 4294901760, %v483_v37  ;;  %v1797_v7 = vld [vmem:[%s10104_s4 + $0x18] sm:$0xff]  ;;  %v1796_v10 = vld [vmem:[%s10104_s4 + $0x10] sm:$0xff]  ;;  %v1795_v12 = vld [vmem:[%s10104_s4 + $0x8] sm:$0xff]  ;;  %s10060_s16 = scalar_lea.vmem [#allocation6], %s7331_s15 }
  0x41   : > { %v7841_v34 = vsub.f32 %v474_v22, %v7817_v25  ;;  %v653_v35 = vand.u32 4294901760, %v7820_v26  ;;  %531 = vmatprep.subr.mxu0 %v7795_v15  ;;  %v641_v39 = vand.u32 4294901760, %v7826_v29  ;;  %v647_v40 = vand.u32 4294901760, %v7829_v30  ;;  %v442_v11 = vld [vmem:[%s7782_s27 + $0x30] sm:$0x7]  ;;  %v439_v16 = vld [vmem:[%s7782_s27 + $0x18] sm:$0xff] }
  0x42   : > { %v659_v41 = vand.u32 4294901760, %v7832_v31  ;;  %v7855_v42 = vsub.f32 %v477_v27, %v7834_v32  ;;  %533 = vmatpush1.msra.mxu0 %v7808_v21  ;;  %v7889_v54 = vand.u32 4294901760, %v7868_v46  ;;  %v7892_v55 = vsub.f32 %v483_v37, %v7870_v47  ;;  %v1794_v17 = vld [vmem:[%s10104_s4] sm:$0xff]  ;;  %v438_v23 = vld [vmem:[%s7782_s27 + $0x10] sm:$0xff]  ;;  %v3234_v24 = vld [vmem:[%s10106_s6 + $0x18] sm:$0xff]  ;;  %s7342_s27 = sshll.u32 %s7722_s21, 8 }
  0x43   : > { %v7862_v44 = vand.u32 4294901760, %v7841_v34  ;;  %v654_v45 = vsub.f32 %v7820_v26, %v653_v35  ;;  %v642_v49 = vsub.f32 %v7826_v29, %v641_v39  ;;  %v648_v50 = vsub.f32 %v7829_v30, %v647_v40  ;;  %754 = vmatprep.subr.mxu0 %v7826_v29  ;;  %454 = vperm.xlu1 %7398, %v448_v43   ;;  %s7244_s22 = sshll.u32 %s10060_s16, 4  ;;  %s7242_s12 = scalar_lea.hbm %s10111_s11, %s7342_s27  ;;  %s7245_s22 = int_to_ptr.vmem [resolvable:$true] %s7244_s22 }
  0x44   : > { %v660_v51 = vsub.f32 %v7832_v31, %v659_v41  ;;  %v7883_v52 = vand.u32 4294901760, %v7855_v42  ;;  %464 = vperm.xlu0 %7397, %v450_v48   ;;  %v592_v63 = vsub.f32 %v7868_v46, %v7889_v54  ;;  %v7904_v0 = vand.u32 4294901760, %v7892_v55  ;;  %v4668_v48 = vld [vmem:[%s10108_s8 + $0x8] sm:$0xff]  ;;  %s7230_s14 = scalar_lea.sflag [#allocation5], %s7779_s23  ;;  %s7569_s13 = scalar_lea.vmem %s7245_s22, 256 }
  0x45   : > { %v570_v53 = vsub.f32 %v7841_v34, %v7862_v44  ;;  %v643_v56 = vand.u32 4294901760, %v642_v49  ;;  %v649_v57 = vand.u32 4294901760, %v648_v50  ;;  %v655_v58 = vand.u32 4294901760, %v654_v45  ;;  %v4667_v50 = vld [vmem:[%s10108_s8] sm:$0xff]  ;;  %p7570_p5 = scmp.ne.s32.totalorder %s7245_s22, %s7569_s13  ;;  %p10354_p6 = scmp.ne.s32.totalorder %s10206_s28, 0 }
  0x46   : > { %v581_v59 = vsub.f32 %v7855_v42, %v7883_v52  ;;  %v661_v61 = vand.u32 4294901760, %v660_v51  ;;  %v496_v2 = vsel %vm485_vm0, %v443_v1, 0  ;;  %v7914_v3 = vand.u32 4294901760, %v592_v63  ;;  %v6100_v51 = vld [vmem:[%s10110_s10] sm:$0x7]  ;;  %s7640_s26 = smov [#allocation6]  }
  0x47   : > { %v7896_v60 = vand.u32 4294901760, %v570_v53  ;;  %644 = vmatprep.subr.mxu1 %v643_v56  ;;  %v603_v4 = vsub.f32 %v7892_v55, %v7904_v0  ;;  %v7922_v5 = vand.u32 4294901760, %v496_v2  ;;  %1810 = vperm.xlu1 %7398, %v1796_v10   ;;  %v493_v13 = vsel %vm485_vm0, %v442_v11, 0  ;;  %p7571_p10 = pnand %p7570_p5, %p10354_p6  ;;  %s7573_s29 = sshll.u32 %s7640_s26, 4  ;;  %s7574_s29 = int_to_ptr.vmem [resolvable:$false] %s7573_s29 }
  0x48   : > { %650 = vmatpush1.msra.mxu1 %v649_v57  ;;  %v7899_v62 = vand.u32 4294901760, %v581_v59  ;;  %1815 = vperm.xlu0 %7397, %v1797_v7   ;;  %v7962_v18 = vand.u32 4294901760, %v493_v13  ;;  %v7969_v22 = vand.u32 4294901760, %v439_v16  ;;  %v7985_v27 = vand.u32 4294901760, %v438_v23  ;;  %s7575_s21 = scalar_lea.vmem %s7574_s29, 512  ;;  %p7576_p12 = scmp.lt.s32.totalorder %s7245_s22, %s7574_s29 }
  0x49   : > { %572 = vmatmul.mubr.f32.vlgmr.msra.gmra.mxu0 %v7896_v60  ;;  %656 = vmatprep.subr.mxu1 %v655_v58  ;;  %v7928_v6 = vand.u32 4294901760, %v603_v4  ;;  %v7937_v9 = vsub.f32 %v496_v2, %v7922_v5  ;;  %p7572_p11 = pneg %p7571_p10  ;;  %p7577_p13 = scmp.lt.s32.totalorder %s7575_s21, %s7569_s13 }
  0x4a   : > { %577 = vmatprep.mubr.f32.mxu0 %v10116_v8  ;;  %662 = vmatpush1.msra.mxu1 %v661_v61  ;;  %v7990_v29 = vsub.f32 %v439_v16, %v7969_v22 }
  0x4b   : > { %757 = vmatpush1.msra.mxu0 %v7829_v30  ;;  %697 = vmatmul.mubr.f32.vlgmr.msra.gmra.mxu1 %v7817_v25  ;;  %v1279_v14 = vand.u32 4294901760, %v7937_v9  ;;  %p7578_p0 = por %p7577_p13, %p7576_p12 }
  0x4c   : > { %858 = vmatprep.subr.mxu1 %v7804_v19  ;;  %702 = vmatprep.mubr.f32.mxu1 %v10116_v8  ;;  %v1291_v33 = vand.u32 4294901760, %v7990_v29 }
  0x4d   : > { %583 = vmatmul.mubr.f32.gmra.mxu0 %v7899_v62  ;;  %860 = vmatpush1.msra.mxu1 %v7806_v20  ;;  %p7579_p1 = pnand %p7578_p0, %p7572_p11 }
  0x4e   : > { %588 = vmatprep.mubr.f32.mxu0 %v10116_v8  ;;  %760 = vmatprep.subr.mxu0 %v7820_v26  ;;  %v7983_v26 = vsub.f32 %v493_v13, %v7962_v18 }
  0x4f   : > { %862 = vmatprep.subr.mxu1 %v7795_v15  ;;  %704 = vmatmul.mubr.f32.gmra.mxu1 %v7834_v32 }
  0x50   : > { %763 = vmatpush1.msra.mxu0 %v7832_v31  ;;  %709 = vmatprep.mubr.f32.mxu1 %v10116_v8  ;;  %v1285_v30 = vand.u32 4294901760, %v7983_v26  ;;  %v8005_v31 = vsub.f32 %v438_v23, %v7985_v27 }
  0x51   : > { %594 = vmatmul.mubr.f32.gmra.mxu0 %v7914_v3  ;;  %864 = vmatpush1.msra.mxu1 %v7808_v21 }
  0x52   : > { %599 = vmatprep.mubr.f32.mxu0 %v10116_v8  ;;  %965 = vmatprep.subr.mxu0 %v641_v39  ;;  %v1286_v37 = vsub.f32 %v7983_v26, %v1285_v30  ;;  %v1297_v38 = vand.u32 4294901760, %v8005_v31  ;;  %v1292_v39 = vsub.f32 %v7990_v29, %v1291_v33 }
  0x53   : > { %1068 = vmatprep.subr.mxu1 %v7804_v19  ;;  %711 = vmatmul.mubr.f32.gmra.mxu1 %v7844_v36  ;;  %v1280_v19 = vsub.f32 %v7937_v9, %v1279_v14 }
  0x54   : > { %716 = vmatprep.mubr.f32.mxu1 %v10116_v8  ;;  %1805 = vperm.xlu0 %7397, %v1795_v12   ;;  %v1298_v43 = vsub.f32 %v8005_v31, %v1297_v38  ;;  %v1293_v45 = vand.u32 4294901760, %v1292_v39 }
  0x55   : > { %605 = vmatmul.mubr.f32.gmra.mxu0 %v7928_v6  ;;  %1800 = vperm.xlu1 %7398, %v1794_v17   ;;  %v1281_v28 = vand.u32 4294901760, %v1280_v19 }
  0x56   : > { %796 = vmatprep.mubr.f32.mxu0 %v10116_v8  ;;  %v1299_v49 = vand.u32 4294901760, %v1298_v43 }
  0x57   : > { %718 = vmatmul.mubr.f32.gmra.mxu1 %v7870_v47 }
  0x58   : > { %897 = vmatprep.mubr.f32.mxu1 %v10116_v8  ;;  %3252 = vperm.xlu0 %7397, %v3234_v24  }
  0x59   : > { %799 = vmatmul.mubr.f32.vlgmr.msra.gmra.mxu0 %v7841_v34 }
  0x5a   : > { %804 = vmatprep.mubr.f32.mxu0 %v10116_v8  ;;  %969 = vmatpush1.msra.mxu0 %v647_v40  ;;  %v4669_v40 = vld [vmem:[%s10108_s8 + $0x10] sm:$0xff] }
  0x5b   : > { %973 = vmatprep.subr.mxu0 %v653_v35  ;;  %901 = vmatmul.mubr.f32.vlgmr.msra.gmra.mxu1 %v7862_v44  ;;  %v3231_v35 = vld [vmem:[%s10106_s6] sm:$0xff] }
  0x5c   : > { %977 = vmatpush1.msra.mxu0 %v659_v41  ;;  %906 = vmatprep.mubr.f32.mxu1 %v10116_v8  ;;  %v1287_v41 = vand.u32 4294901760, %v1286_v37 }
  0x5d   : > { %807 = vmatmul.mubr.f32.gmra.mxu0 %v7855_v42  ;;  %1070 = vmatpush1.msra.mxu1 %v7806_v20  ;;  %v3233_v20 = vld [vmem:[%s10106_s6 + $0x10] sm:$0xff] }
  0x5e   : > { %812 = vmatprep.mubr.f32.mxu0 %v10116_v8  ;;  %1072 = vmatprep.subr.mxu1 %v7795_v15  ;;  %v3232_v15 = vld [vmem:[%s10106_s6 + $0x8] sm:$0xff] }
  0x5f   : > { %1165 = vmatprep.subr.mxu0 %v7922_v5  ;;  %910 = vmatmul.mubr.f32.gmra.mxu1 %v7883_v52 }
  0x60   : > { %915 = vmatprep.mubr.f32.mxu1 %v10116_v8  ;;  %1074 = vmatpush1.msra.mxu1 %v7808_v21  ;;  %v4670_v21 = vld [vmem:[%s10108_s8 + $0x18] sm:$0xff] }
  0x61   : > { %815 = vmatmul.mubr.f32.gmra.mxu0 %v7868_v46  ;;  %1282 = vmatprep.subr.mxu1 %v1281_v28 }
  0x62   : > { %820 = vmatprep.mubr.f32.mxu0 %v10116_v8  ;;  %3247 = vperm.xlu1 %7398, %v3233_v20  }
  0x63   : > { %919 = vmatmul.mubr.f32.gmra.mxu1 %v7889_v54  ;;  %3242 = vperm.xlu0 %7397, %v3232_v15  }
  0x64   : > { %924 = vmatprep.mubr.f32.mxu1 %v10116_v8 }
  0x65   : > { %823 = vmatmul.mubr.f32.gmra.mxu0 %v7892_v55 }
  0x66   : > { %1010 = vmatprep.mubr.f32.mxu0 %v10116_v8  ;;  %3237 = vperm.xlu1 %7398, %v3231_v35  }
  0x67   : > { %928 = vmatmul.mubr.f32.gmra.mxu1 %v7904_v0  ;;  %4688 = vperm.xlu0 %7397, %v4670_v21  }
  0x68   : > { %1107 = vmatprep.mubr.f32.mxu1 %v10116_v8 }
  0x69   : > { %1012 = vmatmul.mubr.f32.vlgmr.msra.gmra.mxu0 %v7817_v25 }
  0x6a   : > { %1017 = vmatprep.mubr.f32.mxu0 %v10116_v8  ;;  %1167 = vmatpush1.msra.mxu0 %v7962_v18 }
  0x6b   : > { %1169 = vmatprep.subr.mxu0 %v7969_v22  ;;  %4683 = vperm.xlu1 %7398, %v4669_v40  }
  0x6c   : > { %1109 = vmatmul.mubr.f32.vlgmr.msra.gmra.mxu1 %v7817_v25  ;;  %1171 = vmatpush1.msra.mxu0 %v7985_v27 }
  0x6d   : > { %1019 = vmatmul.mubr.f32.gmra.mxu0 %v7834_v32  ;;  %1114 = vmatprep.mubr.f32.mxu1 %v10116_v8 }
  0x6e   : > { %1024 = vmatprep.mubr.f32.mxu0 %v10116_v8  ;;  %1288 = vmatpush1.msra.mxu1 %v1287_v41 }
  0x6f   : > { %1294 = vmatprep.subr.mxu1 %v1293_v45  ;;  %1392 = vmatprep.subr.mxu0 %v7937_v9 }
  0x70   : > { %1116 = vmatmul.mubr.f32.gmra.mxu1 %v7834_v32  ;;  %4678 = vperm.xlu0 %7397, %v4668_v48  }
  0x71   : > { %1026 = vmatmul.mubr.f32.gmra.mxu0 %v7844_v36  ;;  %1121 = vmatprep.mubr.f32.mxu1 %v10116_v8 }
  0x72   : > { %1031 = vmatprep.mubr.f32.mxu0 %v10116_v8  ;;  %1300 = vmatpush1.msra.mxu1 %v1299_v49 }
  0x73   : > { %1496 = vmatprep.subr.mxu1 %v7922_v5  ;;  %4673 = vperm.xlu1 %7398, %v4667_v50  }
  0x74   : > { %1123 = vmatmul.mubr.f32.gmra.mxu1 %v7844_v36  ;;  %6103 = vperm.xlu0 %7397, %v6100_v51  }
  0x75   : > { %1033 = vmatmul.mubr.f32.gmra.mxu0 %v7870_v47  ;;  %1128 = vmatprep.mubr.f32.mxu1 %v10116_v8 }
  0x76   : > { %1204 = vmatprep.mubr.f32.mxu0 %v10116_v8 }
  0x78   : > { %1130 = vmatmul.mubr.f32.gmra.mxu1 %v7870_v47 }
  0x79   : > { %1210 = vmatmul.mubr.f32.vlgmr.msra.gmra.mxu0 %v7896_v60  ;;  %1333 = vmatprep.mubr.f32.mxu1 %v10116_v8 }
  0x7a   : > { %1215 = vmatprep.mubr.f32.mxu0 %v10116_v8  ;;  %1395 = vmatpush1.msra.mxu0 %v7983_v26 }
  0x7b   : > { %1398 = vmatprep.subr.mxu0 %v7990_v29 }
  0x7c   : > { %1335 = vmatmul.mubr.f32.vlgmr.msra.gmra.mxu1 %v7817_v25  ;;  %1401 = vmatpush1.msra.mxu0 %v8005_v31 }
  0x7d   : > { %1221 = vmatmul.mubr.f32.gmra.mxu0 %v7899_v62  ;;  %1340 = vmatprep.mubr.f32.mxu1 %v10116_v8 }
  0x7e   : > { %1226 = vmatprep.mubr.f32.mxu0 %v10116_v8  ;;  %1498 = vmatpush1.msra.mxu1 %v7962_v18 }
  0x7f   : > { %1500 = vmatprep.subr.mxu1 %v7969_v22  ;;  %1603 = vmatprep.subr.mxu0 %v1279_v14 }
  0x80   : > { %1342 = vmatmul.mubr.f32.gmra.mxu1 %v7834_v32 }
  0x81   : > { %1232 = vmatmul.mubr.f32.gmra.mxu0 %v7914_v3  ;;  %1347 = vmatprep.mubr.f32.mxu1 %v10116_v8 }
  0x82   : > { %1237 = vmatprep.mubr.f32.mxu0 %v10116_v8  ;;  %1502 = vmatpush1.msra.mxu1 %v7985_v27 }
  0x83   : > { %1706 = vmatprep.subr.mxu1 %v7922_v5 }
  0x84   : > { %1349 = vmatmul.mubr.f32.gmra.mxu1 %v7844_v36 }
  0x85   : > { %1243 = vmatmul.mubr.f32.gmra.mxu0 %v7928_v6  ;;  %1354 = vmatprep.mubr.f32.mxu1 %v10116_v8 }
  0x86   : > { %1434 = vmatprep.mubr.f32.mxu0 %v10116_v8 }
  0x88   : > { %1356 = vmatmul.mubr.f32.gmra.mxu1 %v7870_v47 }
  0x89   : > { %1437 = vmatmul.mubr.f32.vlgmr.msra.gmra.mxu0 %v7841_v34  ;;  %1535 = vmatprep.mubr.f32.mxu1 %v10116_v8 }
  0x8a   : > { %1442 = vmatprep.mubr.f32.mxu0 %v10116_v8  ;;  %1607 = vmatpush1.msra.mxu0 %v1285_v30 }
  0x8b   : > { %1611 = vmatprep.subr.mxu0 %v1291_v33 }
  0x8c   : > { %1539 = vmatmul.mubr.f32.vlgmr.msra.gmra.mxu1 %v7862_v44  ;;  %1615 = vmatpush1.msra.mxu0 %v1297_v38 }
  0x8d   : > { %1445 = vmatmul.mubr.f32.gmra.mxu0 %v7855_v42  ;;  %1544 = vmatprep.mubr.f32.mxu1 %v10116_v8 }
  0x8e   : > { %1450 = vmatprep.mubr.f32.mxu0 %v10116_v8  ;;  %1708 = vmatpush1.msra.mxu1 %v7962_v18 }
  0x8f   : > { %1710 = vmatprep.subr.mxu1 %v7969_v22 }
  0x90   : > { %1548 = vmatmul.mubr.f32.gmra.mxu1 %v7883_v52 }
  0x91   : > { %1453 = vmatmul.mubr.f32.gmra.mxu0 %v7868_v46  ;;  %1553 = vmatprep.mubr.f32.mxu1 %v10116_v8 }
  0x92   : > { %1458 = vmatprep.mubr.f32.mxu0 %v10116_v8  ;;  %1712 = vmatpush1.msra.mxu1 %v7985_v27 }
  0x94   : > { %1557 = vmatmul.mubr.f32.gmra.mxu1 %v7889_v54 }
  0x95   : > { %1461 = vmatmul.mubr.f32.gmra.mxu0 %v7892_v55  ;;  %1562 = vmatprep.mubr.f32.mxu1 %v10116_v8 }
  0x96   : > { %1648 = vmatprep.mubr.f32.mxu0 %v10116_v8 }
  0x98   : > { %1566 = vmatmul.mubr.f32.gmra.mxu1 %v7904_v0 }
  0x99   : > { %1650 = vmatmul.mubr.f32.vlgmr.msra.gmra.mxu0 %v7817_v25  ;;  %1745 = vmatprep.mubr.f32.mxu1 %v10116_v8 }
  0x9a   : > { %1655 = vmatprep.mubr.f32.mxu0 %v10116_v8 }
  0x9c   : > { %1747 = vmatmul.mubr.f32.vlgmr.msra.gmra.mxu1 %v7817_v25 }
  0x9d   : > { %1657 = vmatmul.mubr.f32.gmra.mxu0 %v7834_v32  ;;  %1752 = vmatprep.mubr.f32.mxu1 %v10116_v8 }
  0x9e   : > { %1662 = vmatprep.mubr.f32.mxu0 %v10116_v8 }
  0xa0   : > { %1754 = vmatmul.mubr.f32.gmra.mxu1 %v7834_v32 }
  0xa1   : > { %1664 = vmatmul.mubr.f32.gmra.mxu0 %v7844_v36  ;;  %1759 = vmatprep.mubr.f32.mxu1 %v10116_v8 }
  0xa2   : > { %1669 = vmatprep.mubr.f32.mxu0 %v10116_v8 }
  0xa4   : > { %1761 = vmatmul.mubr.f32.gmra.mxu1 %v7844_v36 }
  0xa5   : > { %1671 = vmatmul.mubr.f32.gmra.mxu0 %v7870_v47  ;;  %1766 = vmatprep.mubr.f32.mxu1 %v10116_v8 }
  0xa6   : > { %1903 = vmatprep.mubr.f32.mxu0 %v10116_v8 }
  0xa8   : > { %1768 = vmatmul.mubr.f32.gmra.mxu1 %v7870_v47 }
  0xa9   : > { %2052 = vmatprep.mubr.f32.mxu1 %v10116_v8 }
  0xba   : > { %v8131_v6 = vpop.permute.xlu1 %459 }
  0xbb   : > { %v8129_v2 = vpop.permute.xlu0 %469 }
  0xbe   : > { %v8136_v17 = vpop.permute.xlu1 %454 }
  0xbf   : > { %v8134_v12 = vpop.permute.xlu0 %464 }
 0x109   : > { %v573_v25 = vpop.f32.mrf.mxu0 }
 0x10a   : > { %v574_v28 = vadd.f32 %v573_v25, %v8136_v17 }
 0x10b   : > { %v575_v32 = vpop.f32.mrf.mxu0  ;;  %v698_v34 = vpop.f32.mrf.mxu1 }
 0x10c   : > { %v576_v27 = vadd.f32 %v575_v32, %v8136_v17  ;;  %v699_v45 = vadd.f32 %v698_v34, %v574_v28 }
 0x10d   : > { %v584_v42 = vpop.f32.mrf.mxu0  ;;  %v700_v44 = vpop.f32.mrf.mxu1 }
 0x10e   : > { %v585_v11 = vadd.f32 %v584_v42, %v8131_v6  ;;  %v701_v21 = vadd.f32 %v700_v44, %v576_v27 }
 0x10f   : > { %v586_v46 = vpop.f32.mrf.mxu0  ;;  %v705_v52 = vpop.f32.mrf.mxu1 }
 0x110   : > { %v587_v22 = vadd.f32 %v586_v46, %v8131_v6  ;;  %v706_v23 = vadd.f32 %v705_v52, %v585_v11 }
 0x111   : > { %v595_v53 = vpop.f32.mrf.mxu0  ;;  %v707_v54 = vpop.f32.mrf.mxu1 }
 0x112   : > { %v596_v18 = vadd.f32 %v595_v53, %v8134_v12  ;;  %v708_v29 = vadd.f32 %v707_v54, %v587_v22 }
 0x113   : > { %v597_v36 = vpop.f32.mrf.mxu0  ;;  %v712_v55 = vpop.f32.mrf.mxu1 }
 0x114   : > { %v598_v30 = vadd.f32 %v597_v36, %v8134_v12  ;;  %v713_v33 = vadd.f32 %v712_v55, %v596_v18 }
 0x115   : > { %v606_v56 = vpop.f32.mrf.mxu0  ;;  %v714_v57 = vpop.f32.mrf.mxu1 }
 0x116   : > { %v607_v31 = vadd.f32 %v606_v56, %v8129_v2  ;;  %v715_v40 = vadd.f32 %v714_v57, %v598_v30 }
 0x117   : > { %v608_v58 = vpop.f32.mrf.mxu0  ;;  %v719_v59 = vpop.f32.mrf.mxu1 }
 0x118   : > { %v609_v25 = vadd.f32 %v608_v58, %v8129_v2  ;;  %v720_v32 = vadd.f32 %v719_v59, %v607_v31 }
 0x119   : > { %v800_v60 = vpop.f32.mrf.mxu0  ;;  %v721_v61 = vpop.f32.mrf.mxu1 }
 0x11a   : > { %v801_v53 = vadd.f32 %v800_v60, %v699_v45  ;;  %v722_v56 = vadd.f32 %v721_v61, %v609_v25 }
 0x11b   : > { %v802_v47 = vpop.f32.mrf.mxu0  ;;  %v902_v62 = vpop.f32.mrf.mxu1 }
 0x11c   : > { %v803_v48 = vadd.f32 %v802_v47, %v701_v21  ;;  %v903_v47 = vadd.f32 %v902_v62, %v801_v53  ;;  %v1791_v21 = vld [vmem:[%s10103_s3 + $0x8] sm:$0xff] }
 0x11d   : > { %v808_v63 = vpop.f32.mrf.mxu0  ;;  %v904_v0 = vpop.f32.mrf.mxu1 }
 0x11e   : > { %v809_v20 = vadd.f32 %v808_v63, %v706_v23  ;;  %v905_v54 = vadd.f32 %v904_v0, %v803_v48 }
 0x11f   : > { %v810_v1 = vpop.f32.mrf.mxu0  ;;  %v911_v3 = vpop.f32.mrf.mxu1 }
 0x120   : > { %v811_v37 = vadd.f32 %v810_v1, %v708_v29  ;;  %v912_v38 = vadd.f32 %v911_v3, %v809_v20 }
 0x121   : > { %v816_v4 = vpop.f32.mrf.mxu0  ;;  %v913_v5 = vpop.f32.mrf.mxu1 }
 0x122   : > { %v817_v41 = vadd.f32 %v816_v4, %v713_v33  ;;  %v914_v49 = vadd.f32 %v913_v5, %v811_v37 }
 0x123   : > { %v818_v7 = vpop.f32.mrf.mxu0  ;;  %v920_v9 = vpop.f32.mrf.mxu1 }
 0x124   : > { %v819_v42 = vadd.f32 %v818_v7, %v715_v40  ;;  %v921_v46 = vadd.f32 %v920_v9, %v817_v41  ;;  %v1823_v41 = vsel %vm1818_vm2, %v1791_v21, 0 }
 0x125   : > { %v824_v10 = vpop.f32.mrf.mxu0  ;;  %v922_v13 = vpop.f32.mrf.mxu1 }
 0x126   : > { %v825_v57 = vadd.f32 %v824_v10, %v720_v32  ;;  %v923_v63 = vadd.f32 %v922_v13, %v819_v42  ;;  %v8187_v42 = vand.u32 4294901760, %v1823_v41 }
 0x127   : > { %v826_v14 = vpop.f32.mrf.mxu0  ;;  %v929_v16 = vpop.f32.mrf.mxu1 }
 0x128   : > { %v827_v11 = vadd.f32 %v826_v14, %v722_v56  ;;  %v930_v58 = vadd.f32 %v929_v16, %v825_v57 }
 0x129   : > { %v1013_v19 = vpop.f32.mrf.mxu0  ;;  %v931_v24 = vpop.f32.mrf.mxu1 }
 0x12a   : > { %v1014_v18 = vadd.f32 %v1013_v19, %v903_v47  ;;  %v932_v22 = vadd.f32 %v931_v24, %v827_v11  ;;  %v1790_v19 = vld [vmem:[%s10103_s3] sm:$0xff] }
 0x12b   : > { %v1015_v26 = vpop.f32.mrf.mxu0 }
 0x12c   : > { %v1110_v15 = vpop.f32.mrf.mxu1  ;;  %v1016_v3 = vadd.f32 %v1015_v26, %v905_v54 }
 0x12d   : > { %v1020_v35 = vpop.f32.mrf.mxu0  ;;  %v1111_v13 = vadd.f32 %v1110_v15, %v1014_v18  ;;  %v1820_v15 = vsel %vm1818_vm2, %v1790_v19, 0 }
 0x12e   : > { %v1112_v39 = vpop.f32.mrf.mxu1  ;;  %v1021_v50 = vadd.f32 %v1020_v35, %v912_v38  ;;  %v8163_v35 = vand.u32 4294901760, %v1820_v15 }
 0x12f   : > { %v1022_v43 = vpop.f32.mrf.mxu0  ;;  %v1113_v60 = vadd.f32 %v1112_v39, %v1016_v3 }
 0x130   : > { %v1117_v51 = vpop.f32.mrf.mxu1  ;;  %v1023_v44 = vadd.f32 %v1022_v43, %v914_v49  ;;  %v8178_v48 = vsub.f32 %v1820_v15, %v8163_v35 }
 0x131   : > { %v1027_v52 = vpop.f32.mrf.mxu0  ;;  %v1118_v36 = vadd.f32 %v1117_v51, %v1021_v50  ;;  %v1792_v51 = vld [vmem:[%s10103_s3 + $0x10] sm:$0xff] }
 0x132   : > { %v1119_v55 = vpop.f32.mrf.mxu1  ;;  %v1028_v1 = vadd.f32 %v1027_v52, %v921_v46  ;;  %10210 = vst [vmem:[#allocation12_spill] sm:$0xff] %v8178_v48  ;;  %v8200_v56 = vand.u32 4294901760, %v8178_v48  ;;  %v1826_v57 = vsel %vm1818_vm2, %v1792_v51, 0 }
 0x133   : > { %v1029_v34 = vpop.f32.mrf.mxu0  ;;  %v1120_v4 = vadd.f32 %v1119_v55, %v1023_v44  ;;  %7399 = vtanh.f32 %v1118_v36 }
 0x134   : > { %v1124_v5 = vpop.f32.mrf.mxu1  ;;  %v1030_v59 = vadd.f32 %v1029_v34, %v923_v63  ;;  %10211 = vst [vmem:[#allocation13_spill] sm:$0xff] %v8200_v56 }
 0x135   : > { %v1034_v7 = vpop.f32.mrf.mxu0  ;;  %v1125_v9 = vadd.f32 %v1124_v5, %v1028_v1 }
 0x136   : > { %v1126_v0 = vpop.f32.mrf.mxu1  ;;  %v1035_v23 = vadd.f32 %v1034_v7, %v930_v58 }
 0x137   : > { %7401 = vtanh.f32 %v1125_v9  ;;  %v1036_v61 = vpop.f32.mrf.mxu0  ;;  %v1127_v10 = vadd.f32 %v1126_v0, %v1030_v59  ;;  %v8220_v59 = vsub.f32 %v1823_v41, %v8187_v42  ;;  %v8232_v0 = vand.u32 4294901760, %v1826_v57 }
 0x138   : > { %7403 = vtanh.f32 %v1120_v4  ;;  %v1131_v62 = vpop.f32.mrf.mxu1  ;;  %v1037_v26 = vadd.f32 %v1036_v61, %v932_v22  ;;  %v1793_v4 = vld [vmem:[%s10103_s3 + $0x18] sm:$0xff]  ;;  %v1907_v61 = vsub.f32 %v8178_v48, %v8200_v56 }
 0x139   : > { %7405 = vtanh.f32 %v1127_v10  ;;  %v1132_v27 = vadd.f32 %v1131_v62, %v1035_v23  ;;  %v8145_v14 = vpop.f32.mrf.mxu0  ;;  %10214 = vst [vmem:[#allocation16_spill] sm:$0xff] %v8220_v59  ;;  %10216 = vst [vmem:[#allocation18_spill] sm:$0xff] %v8232_v0  ;;  %v8259_v15 = vand.u32 4294901760, %v8220_v59 }
 0x13a   : > { %7407 = vtanh.f32 %v1113_v60  ;;  %v1133_v16 = vpop.f32.mrf.mxu1 }
 0x13b   : > { %7409 = vtanh.f32 %v1132_v27  ;;  %v1134_v24 = vadd.f32 %v1133_v16, %v1037_v26  ;;  %v8150_v28 = vpop.f32.mrf.mxu0  ;;  %10219 = vst [vmem:[#allocation21_spill] sm:$0xff] %v8259_v15 }
 0x13c   : > { %7411 = vtanh.f32 %v1111_v13  ;;  %v8152_v29 = vpop.f32.mrf.mxu1  ;;  %v1829_v13 = vsel %vm1818_vm2, %v1793_v4, 0 }
 0x13d   : > { %7413 = vtanh.f32 %v1134_v24  ;;  %v8154_v20 = vpop.f32.mrf.mxu0  ;;  %v8272_v51 = vand.u32 4294901760, %v1829_v13 }
 0x13e   : > { %v8157_v30 = vpop.f32.mrf.mxu1 }
 0x13f   : > { %v8159_v31 = vpop.f32.mrf.mxu0  ;;  %10221 = vst [vmem:[#allocation23_spill] sm:$0xff] %v8272_v51 }
 0x140   : > { %v8161_v33 = vpop.f32.mrf.mxu1  ;;  %v7400_v39 = vpop.eup %7399 }
 0x141   : > { %v8168_v37 = vpop.f32.mrf.mxu0  ;;  %v8207_v47 = vand.u32 4294901760, %v7400_v39 }
 0x142   : > { %v8170_v38 = vpop.f32.mrf.mxu1 }
 0x143   : > { %v8172_v40 = vpop.f32.mrf.mxu0  ;;  %10212 = vst [vmem:[#allocation14_spill] sm:$0xff] %v8207_v47  ;;  %v8253_v19 = vsub.f32 %v7400_v39, %v8207_v47  ;;  %v8270_v39 = vsub.f32 %v1826_v57, %v8232_v0  ;;  %v8287_v57 = vand.u32 4294901760, %v1907_v61 }
 0x144   : > { %v7402_v43 = vpop.eup %7401  ;;  %v8175_v45 = vpop.f32.mrf.mxu1 }
 0x145   : > { %v7404_v49 = vpop.eup %7403  ;;  %v8180_v50 = vpop.f32.mrf.mxu0  ;;  %v8193_v54 = vand.u32 4294901760, %v7402_v43  ;;  %10220 = vst [vmem:[#allocation22_spill] sm:$0xff] %v8270_v39  ;;  %10223 = vst [vmem:[#allocation25_spill] sm:$0xff] %v8287_v57 }
 0x146   : > { %v7406_v25 = vpop.eup %7405  ;;  %v8185_v32 = vpop.f32.mrf.mxu1  ;;  %v8197_v55 = vand.u32 4294901760, %v7404_v49 }
 0x147   : > { %v7408_v46 = vpop.eup %7407  ;;  %v8189_v52 = vpop.f32.mrf.mxu0  ;;  %v8191_v53 = vand.u32 4294901760, %v7406_v25  ;;  %v8230_v60 = vsub.f32 %v7402_v43, %v8193_v54 }
 0x148   : > { %v7410_v44 = vpop.eup %7409  ;;  %v8195_v36 = vpop.f32.mrf.mxu1  ;;  %v8217_v58 = vand.u32 4294901760, %v7408_v46  ;;  %v8241_v10 = vsub.f32 %v7404_v49, %v8197_v55 }
 0x149   : > { %v7412_v63 = vpop.eup %7411  ;;  %v8203_v1 = vpop.f32.mrf.mxu0  ;;  %v8205_v34 = vand.u32 4294901760, %v7410_v44  ;;  %v8210_v3 = vsub.f32 %v7406_v25, %v8191_v53  ;;  %v10224_v0 = vand.u32 4294901760, %v8230_v60 }
 0x14a   : > { %v7414_v5 = vpop.eup %7413  ;;  %v8215_v11 = vpop.f32.mrf.mxu1  ;;  %10213 = vst [vmem:[#allocation15_spill] sm:$0xff] %v8217_v58  ;;  %v8236_v23 = vand.u32 4294901760, %v7412_v63  ;;  %v8262_v21 = vsub.f32 %v7408_v46, %v8217_v58 }
 0x14b   : > { %v8222_v7 = vpop.f32.mrf.mxu0  ;;  %v8224_v9 = vand.u32 4294901760, %v7414_v5  ;;  %v8227_v18 = vsub.f32 %v7410_v44, %v8205_v34  ;;  %v10124_v16 = vand.u32 4294901760, %v8210_v3 }
 0x14c   : > { %v8234_v22 = vpop.f32.mrf.mxu1  ;;  %10218 = vst [vmem:[#allocation20_spill] sm:$0xff] %v8236_v23  ;;  %v8282_v4 = vsub.f32 %v7412_v63, %v8236_v23  ;;  %v1918_v63 = vsub.f32 %v8220_v59, %v8259_v15  ;;  %v10226_v15 = vand.u32 4294901760, %v8241_v10 }
 0x14d   : > { %10215 = vst [vmem:[#allocation17_spill] sm:$0xff] %v8227_v18  ;;  %10217 = vst [vmem:[#allocation19_spill] sm:$0xff] %v8234_v22  ;;  %v8244_v62 = vpop.f32.mrf.mxu0  ;;  %1856 = vmatprep.subr.mxu0 %v8224_v9  ;;  %v8248_v26 = vsub.f32 %v7414_v5, %v8224_v9  ;;  %v10118_v27 = vand.u32 4294901760, %v8227_v18  ;;  %v1987_v49 = vsub.f32 %v8210_v3, %v10124_v16 }
 0x14e   : > { %v8255_v24 = vpop.f32.mrf.mxu1  ;;  %1858 = vmatpush1.msra.mxu0 %v8205_v34  ;;  %v1993_v16 = vsub.f32 %v8230_v60, %v10224_v0  ;;  %v8312_v22 = vsub.f32 %v1829_v13, %v8272_v51  ;;  %v1999_v59 = vsub.f32 %v8241_v10, %v10226_v15  ;;  %v10227_v13 = vand.u32 4294901760, %v8253_v19 }
 0x14f   : > { %v8264_v41 = vpop.f32.mrf.mxu0  ;;  %1860 = vmatprep.subr.mxu0 %v8191_v53  ;;  %v10121_v43 = vand.u32 4294901760, %v8248_v26  ;;  %v1981_v46 = vsub.f32 %v8227_v18, %v10118_v27  ;;  %v8309_v27 = vand.u32 4294901760, %v8270_v39  ;;  %v1988_v0 = vand.u32 4294901760, %v1987_v49 }
 0x150   : > { %v8274_v25 = vpop.f32.mrf.mxu1  ;;  %1862 = vmatpush1.msra.mxu0 %v8193_v54  ;;  %v2005_v51 = vsub.f32 %v8253_v19, %v10227_v13  ;;  %v10228_v15 = vand.u32 4294901760, %v8262_v21  ;;  %v8341_v13 = vand.u32 4294901760, %v8312_v22 }
 0x151   : > { %10222 = vst [vmem:[#allocation24_spill] sm:$0xff] %v8274_v25  ;;  %v8284_v5 = vpop.f32.mrf.mxu0  ;;  %1864 = vmatprep.subr.mxu0 %v8197_v55  ;;  %v1975_v8 = vsub.f32 %v8248_v26, %v10121_v43  ;;  %10225 = vst [vmem:[#allocation26_spill] sm:$0xff] %v8309_v27  ;;  %v1982_v61 = vand.u32 4294901760, %v1981_v46  ;;  %v8330_v46 = vand.u32 4294901760, %v1918_v63  ;;  %v1929_v49 = vsub.f32 %v8270_v39, %v8309_v27 }
 0x152   : > { %v8296_v44 = vpop.f32.mrf.mxu1  ;;  %1866 = vmatpush1.msra.mxu0 %v8207_v47 }
 0x153   : > { %v8302_v56 = vpop.f32.mrf.mxu0  ;;  %1868 = vmatprep.subr.mxu0 %v8217_v58  ;;  %v1976_v43 = vand.u32 4294901760, %v1975_v8  ;;  %v2011_v8 = vsub.f32 %v8262_v21, %v10228_v15  ;;  %v10230_v15 = vand.u32 4294901760, %v8282_v4 }
 0x154   : > { %v8314_v48 = vpop.f32.mrf.mxu1  ;;  %1870 = vmatpush1.msra.mxu0 %v8236_v23 }
 0x155   : > { %v8321_v58 = vpop.f32.mrf.mxu0  ;;  %1909 = vmatmul.mubr.f32.vlgmr.msra.gmra.mxu0 %v8287_v57  ;;  %1977 = vmatprep.subr.mxu1 %v1976_v43  ;;  %v1994_v43 = vand.u32 4294901760, %v1993_v16  ;;  %v2000_v57 = vand.u32 4294901760, %v1999_v59  ;;  %v2017_v47 = vsub.f32 %v8282_v4, %v10230_v15  ;;  %v2006_v16 = vand.u32 4294901760, %v2005_v51 }
 0x156   : > { %2107 = vmatprep.subr.mxu0 %v8248_v26  ;;  %v8328_v23 = vpop.f32.mrf.mxu1  ;;  %1983 = vmatpush1.msra.mxu1 %v1982_v61  ;;  %v10229_v61 = vmov 0.0   ;;  %v2012_v39 = vand.u32 4294901760, %v2011_v8  ;;  %v1214_v59 = vadd.f32 %v8150_v28, %v8136_v17  ;;  %v1940_v51 = vsub.f32 %v8312_v22, %v8341_v13 }
 0x157   : > { %v8335_v25 = vpop.f32.mrf.mxu0  ;;  %2110 = vmatpush1.msra.mxu0 %v8227_v18  ;;  %1989 = vmatprep.subr.mxu1 %v1988_v0  ;;  %v1212_v0 = vadd.f32 %v8145_v14, %v8136_v17  ;;  %v2018_v17 = vand.u32 4294901760, %v2017_v47  ;;  %v1223_v28 = vadd.f32 %v8154_v20, %v8131_v6  ;;  %v1245_v47 = vadd.f32 %v8180_v50, %v8129_v2 }
 0x158   : > { %2113 = vmatprep.subr.mxu0 %v8210_v3  ;;  %v8344_v63 = vpop.f32.mrf.mxu1  ;;  %1914 = vmatprep.mubr.f32.mxu0 %v10229_v61 }
 0x159   : > { %v8350_v18 = vpop.f32.mrf.mxu0  ;;  %1995 = vmatpush1.msra.mxu1 %v1994_v43  ;;  %2116 = vmatpush1.msra.mxu0 %v8230_v60  ;;  %v8363_v43 = vand.u32 4294901760, %v1929_v49  ;;  %v1337_v14 = vadd.f32 %v8152_v29, %v1212_v0  ;;  %v1339_v49 = vadd.f32 %v8157_v30, %v1214_v59  ;;  %v1247_v30 = vadd.f32 %v8189_v52, %v8129_v2 }
 0x15a   : > { %1920 = vmatmul.mubr.f32.gmra.mxu0 %v8330_v46  ;;  %2001 = vmatprep.subr.mxu1 %v2000_v57  ;;  %v8356_v27 = vpop.f32.mrf.mxu1  ;;  %v1234_v57 = vadd.f32 %v8168_v37, %v8134_v12  ;;  %v1225_v37 = vadd.f32 %v8159_v31, %v8131_v6  ;;  %v8396_v31 = vand.u32 4294901760, %v1940_v51  ;;  %v1358_v50 = vadd.f32 %v8195_v36, %v1245_v47 }
 0x15b   : > { %2119 = vmatprep.subr.mxu0 %v8241_v10  ;;  %v8361_v15 = vpop.f32.mrf.mxu0  ;;  %2007 = vmatpush1.msra.mxu1 %v2006_v16  ;;  %v1236_v16 = vadd.f32 %v8172_v40, %v8134_v12  ;;  %v1344_v12 = vadd.f32 %v8161_v33, %v1223_v28  ;;  %v10231_v33 = vand.u32 4294901760, %v8248_v26  ;;  %v1360_v52 = vadd.f32 %v8215_v11, %v1247_v30 }
 0x15c   : > { %2122 = vmatpush1.msra.mxu0 %v8253_v19  ;;  %2013 = vmatprep.subr.mxu1 %v2012_v39  ;;  %v8371_v8 = vpop.f32.mrf.mxu1  ;;  %v1351_v39 = vadd.f32 %v8175_v45, %v1234_v57  ;;  %v1346_v45 = vadd.f32 %v8170_v38, %v1225_v37  ;;  %v1441_v38 = vadd.f32 %v8222_v7, %v1339_v49  ;;  %v10233_v49 = vld [vmem:[#allocation24_spill] sm:$0xff] }
 0x15d   : > { %2125 = vmatprep.subr.mxu0 %v8262_v21  ;;  %v8379_v29 = vpop.f32.mrf.mxu0  ;;  %1925 = vmatprep.mubr.f32.mxu0 %v10229_v61  ;;  %v1353_v40 = vadd.f32 %v8185_v32, %v1236_v16  ;;  %v1439_v32 = vadd.f32 %v8203_v1, %v1337_v14  ;;  %v1447_v11 = vadd.f32 %v8244_v62, %v1344_v12  ;;  %v10235_v12 = vld [vmem:[#allocation20_spill] sm:$0xff] }
 0x15e   : > { %2019 = vmatpush1.msra.mxu1 %v2018_v17  ;;  %2128 = vmatpush1.msra.mxu0 %v8282_v4  ;;  %v8388_v20 = vpop.f32.mrf.mxu1  ;;  %v1455_v0 = vadd.f32 %v8284_v5, %v1351_v39  ;;  %v1449_v36 = vadd.f32 %v8264_v41, %v1346_v45  ;;  %v1543_v41 = vadd.f32 %v8255_v24, %v1441_v38  ;;  %v10232_v17 = vld [vmem:[#allocation14_spill] sm:$0xff]  ;;  %v10237_v45 = vld [vmem:[#allocation19_spill] sm:$0xff] }
 0x15f   : > { %1931 = vmatmul.mubr.f32.gmra.mxu0 %v8363_v43  ;;  %2054 = vmatmul.mubr.f32.vlgmr.msra.gmra.mxu1 %v8163_v35  ;;  %v1660_v6 = vpop.f32.mrf.mxu0  ;;  %v1457_v59 = vadd.f32 %v8302_v56, %v1353_v40  ;;  %v1463_v56 = vadd.f32 %v8321_v58, %v1358_v50  ;;  %v1465_v62 = vadd.f32 %v8335_v25, %v1360_v52  ;;  %v10239_v52 = vld [vmem:[#allocation17_spill] sm:$0xff] }
 0x160   : > { %2219 = vmatprep.subr.mxu1 %v8224_v9  ;;  %2330 = vmatprep.subr.mxu0 %v10231_v33  ;;  %v1755_v2 = vpop.f32.mrf.mxu1  ;;  %v1559_v5 = vadd.f32 %v8314_v48, %v1455_v0  ;;  %v1552_v48 = vadd.f32 %v8296_v44, %v1449_v36  ;;  %v1550_v24 = vadd.f32 %v10233_v49, %v1447_v11  ;;  %v10234_v44 = vld [vmem:[#allocation15_spill] sm:$0xff]  ;;  %v10238_v33 = vld [vmem:[#allocation18_spill] sm:$0xff]  ;;  %v10241_v36 = vand.u32 4294901760, %v8210_v3 }
 0x161   : > { %2221 = vmatpush1.msra.mxu1 %v8205_v34  ;;  %v1665_v51 = vpop.f32.mrf.mxu0  ;;  %1936 = vmatprep.mubr.f32.mxu0 %v10229_v61  ;;  %v1561_v26 = vadd.f32 %v8328_v23, %v1457_v59  ;;  %v1568_v58 = vadd.f32 %v8344_v63, %v1463_v56  ;;  %v1570_v39 = vadd.f32 %v8356_v27, %v1465_v62  ;;  %v10236_v63 = vld [vmem:[#allocation12_spill] sm:$0xff]  ;;  %v10240_v59 = vand.u32 4294901760, %v10239_v52 }
 0x162   : > { %2223 = vmatprep.subr.mxu1 %v8191_v53  ;;  %2059 = vmatprep.mubr.f32.mxu1 %v10229_v61  ;;  %v1757_v1 = vpop.f32.mrf.mxu1  ;;  %v1666_v14 = vadd.f32 %v1665_v51, %v1559_v5  ;;  %v1661_v16 = vadd.f32 %v1660_v6, %v1552_v48  ;;  %v1541_v50 = vadd.f32 %v10237_v45, %v1439_v32 }
 0x163   : > { %2225 = vmatpush1.msra.mxu1 %v8193_v54  ;;  %1942 = vmatmul.mubr.f32.gmra.mxu0 %v8396_v31  ;;  %v1667_v7 = vpop.f32.mrf.mxu0  ;;  %v1659_v0 = vadd.f32 %v8379_v29, %v1550_v24  ;;  %v1654_v27 = vadd.f32 %v8361_v15, %v1543_v41 }
 0x164   : > { %2061 = vmatmul.mubr.f32.gmra.mxu1 %v8187_v42  ;;  %2227 = vmatprep.subr.mxu1 %v8197_v55  ;;  %v1762_v57 = vpop.f32.mrf.mxu1  ;;  %v1668_v23 = vadd.f32 %v1667_v7, %v1561_v26  ;;  %v1758_v6 = vadd.f32 %v1757_v1, %v1661_v16  ;;  %v1652_v32 = vadd.f32 %v8350_v18, %v1541_v50  ;;  %v10242_v1 = vand.u32 4294901760, %v8230_v60  ;;  %v10244_v18 = vld [vmem:[#allocation23_spill] sm:$0xff]  ;;  %v10250_v26 = vld [vmem:[#allocation13_spill] sm:$0xff] }
 0x165   : > { %2229 = vmatpush1.msra.mxu1 %v10232_v17  ;;  %v1672_v28 = vpop.f32.mrf.mxu0  ;;  %2066 = vmatprep.mubr.f32.mxu1 %v10229_v61  ;;  %v1763_v37 = vadd.f32 %v1762_v57, %v1666_v14  ;;  %v1756_v29 = vadd.f32 %v1755_v2, %v1659_v0  ;;  %v1751_v15 = vadd.f32 %v8388_v20, %v1654_v27  ;;  %v10245_v2 = vld [vmem:[#allocation16_spill] sm:$0xff]  ;;  %v10246_v60 = vand.u32 4294901760, %v8253_v19  ;;  %v10251_v19 = vld [vmem:[#allocation21_spill] sm:$0xff] }
 0x166   : > { %2231 = vmatprep.subr.mxu1 %v10234_v44  ;;  %2161 = vmatprep.mubr.f32.mxu0 %v10229_v61  ;;  %v1764_v47 = vpop.f32.mrf.mxu1  ;;  %v1673_v25 = vadd.f32 %v1672_v28, %v1568_v58  ;;  %v1749_v56 = vadd.f32 %v8371_v8, %v1652_v32  ;;  %v10247_v20 = vand.u32 4294901760, %v8262_v21  ;;  %v10249_v8 = vld [vmem:[#allocation22_spill] sm:$0xff] }
 0x167   : > { %2233 = vmatpush1.msra.mxu1 %v10235_v12  ;;  %2164 = vmatmul.mubr.f32.vlgmr.msra.gmra.mxu0 %v10236_v63  ;;  %v1674_v30 = vpop.f32.mrf.mxu0  ;;  %v1765_v40 = vadd.f32 %v1764_v47, %v1668_v23 }
 0x168   : > { %2068 = vmatmul.mubr.f32.gmra.mxu1 %v10238_v33  ;;  %2334 = vmatpush1.msra.mxu0 %v10240_v59  ;;  %v1769_v51 = vpop.f32.mrf.mxu1  ;;  %v1675_v38 = vadd.f32 %v1674_v30, %v1570_v39 }
 0x169   : > { %2445 = vmatprep.subr.mxu1 %v8224_v9  ;;  %7415 = vtanh.f32 %v1765_v40  ;;  %2338 = vmatprep.subr.mxu0 %v10241_v36  ;;  %v1770_v5 = vadd.f32 %v1769_v51, %v1673_v25  ;;  %v10243_v9 = vand.u32 4294901760, %v8241_v10  ;;  %v10248_v10 = vand.u32 4294901760, %v8282_v4 }
 0x16a   : > { %7417 = vtanh.f32 %v1763_v37  ;;  %2342 = vmatpush1.msra.mxu0 %v10242_v1  ;;  %2073 = vmatprep.mubr.f32.mxu1 %v10229_v61  ;;  %v1771_v11 = vpop.f32.mrf.mxu1 }
 0x16b   : > { %7419 = vtanh.f32 %v1770_v5  ;;  %2169 = vmatprep.mubr.f32.mxu0 %v10229_v61  ;;  %2346 = vmatprep.subr.mxu0 %v10243_v9  ;;  %v1772_v3 = vadd.f32 %v1771_v11, %v1675_v38  ;;  %v10253_v5 = vld [vmem:[#allocation25_spill] sm:$0xff] }
 0x16c   : > { %7421 = vtanh.f32 %v1758_v6  ;;  %2075 = vmatmul.mubr.f32.gmra.mxu1 %v10244_v18  ;;  %2172 = vmatmul.mubr.f32.gmra.mxu0 %v10245_v2 }
 0x16d   : > { %2350 = vmatpush1.msra.mxu0 %v10246_v60  ;;  %7423 = vtanh.f32 %v1772_v3  ;;  %2177 = vmatprep.mubr.f32.mxu0 %v10229_v61 }
 0x16e   : > { %7425 = vtanh.f32 %v1756_v29  ;;  %2354 = vmatprep.subr.mxu0 %v10247_v20  ;;  %2266 = vmatprep.mubr.f32.mxu1 %v10229_v61 }
 0x16f   : > { %7427 = vtanh.f32 %v1751_v15  ;;  %2358 = vmatpush1.msra.mxu0 %v10248_v10 }
 0x170   : > { %7429 = vtanh.f32 %v1749_v56  ;;  %2180 = vmatmul.mubr.f32.gmra.mxu0 %v10249_v8  ;;  %2270 = vmatmul.mubr.f32.vlgmr.msra.gmra.mxu1 %v10250_v26 }
 0x171   : > { %2447 = vmatpush1.msra.mxu1 %v8205_v34  ;;  %2185 = vmatprep.mubr.f32.mxu0 %v10229_v61 }
 0x172   : > { %2449 = vmatprep.subr.mxu1 %v8191_v53  ;;  %2275 = vmatprep.mubr.f32.mxu1 %v10229_v61 }
 0x173   : > { %2451 = vmatpush1.msra.mxu1 %v8193_v54 }
 0x174   : > { %2453 = vmatprep.subr.mxu1 %v8197_v55  ;;  %2188 = vmatmul.mubr.f32.gmra.mxu0 %v8312_v22  ;;  %v10252_v55 = vld [vmem:[#allocation26_spill] sm:$0xff] }
 0x175   : > { %2279 = vmatmul.mubr.f32.gmra.mxu1 %v10251_v19  ;;  %2391 = vmatprep.mubr.f32.mxu0 %v10229_v61 }
 0x176   : > { %v7416_v21 = vpop.eup %7415  ;;  %2455 = vmatpush1.msra.mxu1 %v10232_v17  ;;  %2284 = vmatprep.mubr.f32.mxu1 %v10229_v61 }
 0x177   : > { %v7418_v34 = vpop.eup %7417  ;;  %2457 = vmatprep.subr.mxu1 %v10234_v44  ;;  %v8481_v7 = vand.u32 4294901760, %v7416_v21 }
 0x178   : > { %v7420_v53 = vpop.eup %7419  ;;  %2459 = vmatpush1.msra.mxu1 %v10235_v12  ;;  %2393 = vmatmul.mubr.f32.vlgmr.msra.gmra.mxu0 %v8163_v35  ;;  %v8486_v57 = vand.u32 4294901760, %v7418_v34 }
 0x179   : > { %v7422_v54 = vpop.eup %7421  ;;  %2288 = vmatmul.mubr.f32.gmra.mxu1 %v10252_v55  ;;  %2398 = vmatprep.mubr.f32.mxu0 %v10229_v61  ;;  %v8479_v4 = vand.u32 4294901760, %v7420_v53  ;;  %v8500_v49 = vsub.f32 %v7416_v21, %v8481_v7 }
 0x17a   : > { %v7424_v41 = vpop.eup %7423  ;;  %2293 = vmatprep.mubr.f32.mxu1 %v10229_v61  ;;  %v8494_v17 = vand.u32 4294901760, %v7422_v54  ;;  %v8511_v37 = vsub.f32 %v7418_v34, %v8486_v57 }
 0x17b   : > { %v7426_v48 = vpop.eup %7425  ;;  %v8484_v14 = vand.u32 4294901760, %v7424_v41  ;;  %v8490_v58 = vsub.f32 %v7420_v53, %v8479_v4  ;;  %v2676_v12 = vand.u32 4294901760, %v8500_v49 }
 0x17c   : > { %v7428_v62 = vpop.eup %7427  ;;  %2400 = vmatmul.mubr.f32.gmra.mxu0 %v8187_v42  ;;  %v8504_v24 = vand.u32 4294901760, %v7426_v48  ;;  %v8525_v30 = vsub.f32 %v7422_v54, %v8494_v17  ;;  %v2682_v45 = vand.u32 4294901760, %v8511_v37 }
 0x17d   : > { %v7430_v23 = vpop.eup %7429  ;;  %2297 = vmatmul.mubr.f32.gmra.mxu1 %v8341_v13  ;;  %2405 = vmatprep.mubr.f32.mxu0 %v10229_v61  ;;  %v8497_v28 = vsub.f32 %v7424_v41, %v8484_v14  ;;  %v8507_v16 = vand.u32 4294901760, %v7428_v62  ;;  %v2670_v39 = vand.u32 4294901760, %v8490_v58  ;;  %v2677_v59 = vsub.f32 %v8500_v49, %v2676_v12 }
 0x17e   : > { %2492 = vmatprep.mubr.f32.mxu1 %v10229_v61  ;;  %2546 = vmatprep.subr.mxu0 %v8484_v14  ;;  %v8515_v47 = vand.u32 4294901760, %v7430_v23  ;;  %v8530_v40 = vsub.f32 %v7426_v48, %v8504_v24  ;;  %v2688_v51 = vand.u32 4294901760, %v8525_v30  ;;  %v2683_v38 = vsub.f32 %v8511_v37, %v2682_v45 }
 0x17f   : > { %2548 = vmatpush1.msra.mxu0 %v8479_v4  ;;  %v2664_v44 = vand.u32 4294901760, %v8497_v28  ;;  %v8535_v50 = vsub.f32 %v7428_v62, %v8507_v16  ;;  %v2671_v6 = vsub.f32 %v8490_v58, %v2670_v39  ;;  %v2678_v1 = vand.u32 4294901760, %v2677_v59 }
 0x180   : > { %2407 = vmatmul.mubr.f32.gmra.mxu0 %v10238_v33  ;;  %2550 = vmatprep.subr.mxu0 %v8481_v7  ;;  %v8542_v52 = vsub.f32 %v7430_v23, %v8515_v47  ;;  %v2694_v27 = vand.u32 4294901760, %v8530_v40  ;;  %v2689_v11 = vsub.f32 %v8525_v30, %v2688_v51  ;;  %v2684_v9 = vand.u32 4294901760, %v2683_v38 }
 0x181   : > { %2494 = vmatmul.mubr.f32.vlgmr.msra.gmra.mxu1 %v8163_v35  ;;  %2412 = vmatprep.mubr.f32.mxu0 %v10229_v61  ;;  %v2665_v25 = vsub.f32 %v8497_v28, %v2664_v44  ;;  %v2700_v36 = vand.u32 4294901760, %v8535_v50  ;;  %v2672_v32 = vand.u32 4294901760, %v2671_v6 }
 0x182   : > { %2499 = vmatprep.mubr.f32.mxu1 %v10229_v61  ;;  %2552 = vmatpush1.msra.mxu0 %v8486_v57  ;;  %v2706_v29 = vand.u32 4294901760, %v8542_v52  ;;  %v2695_v15 = vsub.f32 %v8530_v40, %v2694_v27  ;;  %v2690_v60 = vand.u32 4294901760, %v2689_v11 }
 0x183   : > { %2554 = vmatprep.subr.mxu0 %v8494_v17  ;;  %v2666_v0 = vand.u32 4294901760, %v2665_v25  ;;  %v2701_v3 = vsub.f32 %v8535_v50, %v2700_v36 }
 0x184   : > { %2414 = vmatmul.mubr.f32.gmra.mxu0 %v10244_v18  ;;  %v2707_v56 = vsub.f32 %v8542_v52, %v2706_v29  ;;  %v2696_v20 = vand.u32 4294901760, %v2695_v15 }
 0x185   : > { %2501 = vmatmul.mubr.f32.gmra.mxu1 %v8187_v42  ;;  %2556 = vmatpush1.msra.mxu0 %v8504_v24  ;;  %v2702_v10 = vand.u32 4294901760, %v2701_v3 }
 0x186   : > { %2558 = vmatprep.subr.mxu0 %v8507_v16  ;;  %2506 = vmatprep.mubr.f32.mxu1 %v10229_v61  ;;  %v2708_v21 = vand.u32 4294901760, %v2707_v56 }
 0x187   : > { %2560 = vmatpush1.msra.mxu0 %v8515_v47  ;;  %2593 = vmatprep.mubr.f32.mxu0 %v10229_v61 }
 0x188   : > { %2599 = vmatmul.mubr.f32.vlgmr.msra.gmra.mxu0 %v10253_v5  ;;  %2667 = vmatprep.subr.mxu1 %v2666_v0 }
 0x189   : > { %2508 = vmatmul.mubr.f32.gmra.mxu1 %v10238_v33  ;;  %2797 = vmatprep.subr.mxu0 %v8497_v28 }
 0x18a   : > { %2673 = vmatpush1.msra.mxu1 %v2672_v32  ;;  %2800 = vmatpush1.msra.mxu0 %v8490_v58 }
 0x18b   : > { %2679 = vmatprep.subr.mxu1 %v2678_v1  ;;  %2803 = vmatprep.subr.mxu0 %v8500_v49 }
 0x18c   : > { %2513 = vmatprep.mubr.f32.mxu1 %v10229_v61  ;;  %2604 = vmatprep.mubr.f32.mxu0 %v10229_v61 }
 0x18d   : > { %2685 = vmatpush1.msra.mxu1 %v2684_v9  ;;  %2806 = vmatpush1.msra.mxu0 %v8511_v37 }
 0x18e   : > { %2515 = vmatmul.mubr.f32.gmra.mxu1 %v10244_v18  ;;  %2610 = vmatmul.mubr.f32.gmra.mxu0 %v8330_v46 }
 0x18f   : > { %2691 = vmatprep.subr.mxu1 %v2690_v60  ;;  %2809 = vmatprep.subr.mxu0 %v8525_v30 }
 0x190   : > { %2697 = vmatpush1.msra.mxu1 %v2696_v20  ;;  %2812 = vmatpush1.msra.mxu0 %v8530_v40 }
 0x191   : > { %2703 = vmatprep.subr.mxu1 %v2702_v10  ;;  %2815 = vmatprep.subr.mxu0 %v8535_v50 }
 0x192   : > { %2615 = vmatprep.mubr.f32.mxu0 %v10229_v61  ;;  %2709 = vmatpush1.msra.mxu1 %v2708_v21 }
 0x193   : > { %2742 = vmatprep.mubr.f32.mxu1 %v10229_v61  ;;  %2818 = vmatpush1.msra.mxu0 %v8542_v52 }
 0x194   : > { %2621 = vmatmul.mubr.f32.gmra.mxu0 %v8363_v43  ;;  %2744 = vmatmul.mubr.f32.vlgmr.msra.gmra.mxu1 %v8163_v35 }
 0x195   : > { %2909 = vmatprep.subr.mxu1 %v8484_v14  ;;  %3020 = vmatprep.subr.mxu0 %v2664_v44  ;;  %v8666_v44 = vpop.permute.xlu1 %1810 }
 0x196   : > { %2911 = vmatpush1.msra.mxu1 %v8479_v4  ;;  %2626 = vmatprep.mubr.f32.mxu0 %v10229_v61 }
 0x197   : > { %2913 = vmatprep.subr.mxu1 %v8481_v7  ;;  %2749 = vmatprep.mubr.f32.mxu1 %v10229_v61 }
 0x198   : > { %2915 = vmatpush1.msra.mxu1 %v8486_v57  ;;  %2632 = vmatmul.mubr.f32.gmra.mxu0 %v8396_v31 }
 0x199   : > { %2751 = vmatmul.mubr.f32.gmra.mxu1 %v8187_v42  ;;  %2917 = vmatprep.subr.mxu1 %v8494_v17  ;;  %v8672_v6 = vpop.permute.xlu1 %1800 }
 0x19a   : > { %2919 = vmatpush1.msra.mxu1 %v8504_v24  ;;  %2756 = vmatprep.mubr.f32.mxu1 %v10229_v61 }
 0x19b   : > { %2921 = vmatprep.subr.mxu1 %v8507_v16  ;;  %2851 = vmatprep.mubr.f32.mxu0 %v10229_v61 }
 0x19c   : > { %2923 = vmatpush1.msra.mxu1 %v8515_v47  ;;  %2854 = vmatmul.mubr.f32.vlgmr.msra.gmra.mxu0 %v10236_v63 }
 0x19d   : > { %2758 = vmatmul.mubr.f32.gmra.mxu1 %v10238_v33  ;;  %3024 = vmatpush1.msra.mxu0 %v2670_v39 }
 0x19e   : > { %3135 = vmatprep.subr.mxu1 %v8484_v14  ;;  %3028 = vmatprep.subr.mxu0 %v2676_v12 }
 0x19f   : > { %3032 = vmatpush1.msra.mxu0 %v2682_v45  ;;  %2763 = vmatprep.mubr.f32.mxu1 %v10229_v61 }
 0x1a0   : > { %2859 = vmatprep.mubr.f32.mxu0 %v10229_v61  ;;  %3036 = vmatprep.subr.mxu0 %v2688_v51 }
 0x1a1   : > { %2765 = vmatmul.mubr.f32.gmra.mxu1 %v10244_v18  ;;  %2862 = vmatmul.mubr.f32.gmra.mxu0 %v10245_v2 }
 0x1a2   : > { %3040 = vmatpush1.msra.mxu0 %v2694_v27  ;;  %2867 = vmatprep.mubr.f32.mxu0 %v10229_v61 }
 0x1a3   : > { %3044 = vmatprep.subr.mxu0 %v2700_v36  ;;  %2956 = vmatprep.mubr.f32.mxu1 %v10229_v61 }
 0x1a4   : > { %3048 = vmatpush1.msra.mxu0 %v2706_v29 }
 0x1a5   : > { %2870 = vmatmul.mubr.f32.gmra.mxu0 %v10249_v8  ;;  %2960 = vmatmul.mubr.f32.vlgmr.msra.gmra.mxu1 %v10250_v26 }
 0x1a6   : > { %3137 = vmatpush1.msra.mxu1 %v8479_v4  ;;  %2875 = vmatprep.mubr.f32.mxu0 %v10229_v61 }
 0x1a7   : > { %3139 = vmatprep.subr.mxu1 %v8481_v7  ;;  %2965 = vmatprep.mubr.f32.mxu1 %v10229_v61 }
 0x1a8   : > { %3141 = vmatpush1.msra.mxu1 %v8486_v57 }
 0x1a9   : > { %3143 = vmatprep.subr.mxu1 %v8494_v17  ;;  %2878 = vmatmul.mubr.f32.gmra.mxu0 %v8312_v22  ;;  %v8664_v17 = vpop.permute.xlu0 %1815 }
 0x1aa   : > { %2969 = vmatmul.mubr.f32.gmra.mxu1 %v10251_v19  ;;  %3081 = vmatprep.mubr.f32.mxu0 %v10229_v61 }
 0x1ab   : > { %3145 = vmatpush1.msra.mxu1 %v8504_v24  ;;  %2974 = vmatprep.mubr.f32.mxu1 %v10229_v61 }
 0x1ac   : > { %3147 = vmatprep.subr.mxu1 %v8507_v16 }
 0x1ad   : > { %3149 = vmatpush1.msra.mxu1 %v8515_v47  ;;  %3083 = vmatmul.mubr.f32.vlgmr.msra.gmra.mxu0 %v8163_v35  ;;  %v8668_v39 = vpop.permute.xlu0 %1805 }
 0x1ae   : > { %2978 = vmatmul.mubr.f32.gmra.mxu1 %v10252_v55  ;;  %3088 = vmatprep.mubr.f32.mxu0 %v10229_v61 }
 0x1af   : > { %2983 = vmatprep.mubr.f32.mxu1 %v10229_v61 }
 0x1b1   : > { %3090 = vmatmul.mubr.f32.gmra.mxu0 %v8187_v42 }
 0x1b2   : > { %2987 = vmatmul.mubr.f32.gmra.mxu1 %v8341_v13  ;;  %3095 = vmatprep.mubr.f32.mxu0 %v10229_v61 }
 0x1b3   : > { %3182 = vmatprep.mubr.f32.mxu1 %v10229_v61 }
 0x1b5   : > { %3097 = vmatmul.mubr.f32.gmra.mxu0 %v10238_v33 }
 0x1b6   : > { %3184 = vmatmul.mubr.f32.vlgmr.msra.gmra.mxu1 %v8163_v35  ;;  %3102 = vmatprep.mubr.f32.mxu0 %v10229_v61 }
 0x1b7   : > { %3189 = vmatprep.mubr.f32.mxu1 %v10229_v61 }
 0x1b9   : > { %3104 = vmatmul.mubr.f32.gmra.mxu0 %v10244_v18 }
 0x1ba   : > { %3191 = vmatmul.mubr.f32.gmra.mxu1 %v8187_v42  ;;  %3339 = vmatprep.mubr.f32.mxu0 %v10229_v61 }
 0x1bb   : > { %3196 = vmatprep.mubr.f32.mxu1 %v10229_v61 }
 0x1be   : > { %3198 = vmatmul.mubr.f32.gmra.mxu1 %v10238_v33 }
 0x1bf   : > { %3203 = vmatprep.mubr.f32.mxu1 %v10229_v61 }
 0x1c2   : > { %3205 = vmatmul.mubr.f32.gmra.mxu1 %v10244_v18 }
 0x1c3   : > { %3488 = vmatprep.mubr.f32.mxu1 %v10229_v61 }
 0x215   : > { %v1910_v35 = vpop.f32.mrf.mxu0 }
 0x216   : > { %v1911_v32 = vadd.f32 %v1910_v35, %v8672_v6 }
 0x217   : > { %v1912_v22 = vpop.f32.mrf.mxu0 }
 0x218   : > { %v1913_v51 = vadd.f32 %v1912_v22, %v8672_v6 }
 0x21a   : > { %v1921_v46 = vpop.f32.mrf.mxu0 }
 0x21b   : > { %v1922_v52 = vadd.f32 %v1921_v46, %v8668_v39 }
 0x21c   : > { %v1923_v13 = vpop.f32.mrf.mxu0 }
 0x21d   : > { %v1924_v12 = vadd.f32 %v1923_v13, %v8668_v39 }
 0x21f   : > { %v1932_v43 = vpop.f32.mrf.mxu0  ;;  %v2055_v31 = vpop.f32.mrf.mxu1 }
 0x220   : > { %v1933_v45 = vadd.f32 %v1932_v43, %v8666_v44  ;;  %v2056_v60 = vadd.f32 %v2055_v31, %v1911_v32 }
 0x221   : > { %v1934_v63 = vpop.f32.mrf.mxu0  ;;  %v2057_v42 = vpop.f32.mrf.mxu1 }
 0x222   : > { %v1935_v27 = vadd.f32 %v1934_v63, %v8666_v44  ;;  %v2058_v11 = vadd.f32 %v2057_v42, %v1913_v51 }
 0x223   : > { %v1943_v2 = vpop.f32.mrf.mxu0 }
 0x224   : > { %v2062_v8 = vpop.f32.mrf.mxu1  ;;  %v1944_v20 = vadd.f32 %v1943_v2, %v8664_v17 }
 0x225   : > { %v1945_v26 = vpop.f32.mrf.mxu0  ;;  %v2063_v29 = vadd.f32 %v2062_v8, %v1922_v52 }
 0x226   : > { %v2064_v19 = vpop.f32.mrf.mxu1 }
 0x227   : > { %v2165_v34 = vpop.f32.mrf.mxu0  ;;  %v2065_v50 = vadd.f32 %v2064_v19, %v1924_v12  ;;  %v1946_v19 = vadd.f32 %v1945_v26, %v8664_v17 }
 0x228   : > { %v2069_v33 = vpop.f32.mrf.mxu1  ;;  %v2166_v35 = vadd.f32 %v2165_v34, %v2056_v60 }
 0x229   : > { %v2167_v53 = vpop.f32.mrf.mxu0  ;;  %v2070_v38 = vadd.f32 %v2069_v33, %v1933_v45 }
 0x22a   : > { %v2071_v54 = vpop.f32.mrf.mxu1  ;;  %v2168_v22 = vadd.f32 %v2167_v53, %v2058_v11 }
 0x22b   : > { %v2072_v15 = vadd.f32 %v2071_v54, %v1935_v27 }
 0x22c   : > { %v2076_v55 = vpop.f32.mrf.mxu1  ;;  %v2173_v18 = vpop.f32.mrf.mxu0 }
 0x22d   : > { %v2174_v10 = vadd.f32 %v2173_v18, %v2063_v29  ;;  %v2077_v8 = vadd.f32 %v2076_v55, %v1944_v20  ;;  %v3228_v29 = vld [vmem:[%s10105_s5 + $0x8] sm:$0xff] }
 0x22e   : > { %v2078_v4 = vpop.f32.mrf.mxu1  ;;  %v2175_v7 = vpop.f32.mrf.mxu0 }
 0x22f   : > { %v2176_v36 = vadd.f32 %v2175_v7, %v2065_v50  ;;  %v2079_v2 = vadd.f32 %v2078_v4, %v1946_v19 }
 0x230   : > { %v2181_v41 = vpop.f32.mrf.mxu0  ;;  %v2271_v48 = vpop.f32.mrf.mxu1 }
 0x231   : > { %v2182_v9 = vadd.f32 %v2181_v41, %v2070_v38 }
 0x232   : > { %v2183_v14 = vpop.f32.mrf.mxu0  ;;  %v2273_v57 = vpop.f32.mrf.mxu1 }
 0x233   : > { %v2184_v46 = vadd.f32 %v2183_v14, %v2072_v15  ;;  %v2274_v54 = vadd.f32 %v2273_v57, %v2168_v22  ;;  %v2272_v14 = vadd.f32 %v2271_v48, %v2166_v35 }
 0x234   : > { %v2189_v62 = vpop.f32.mrf.mxu0 }
 0x235   : > { %v2280_v58 = vpop.f32.mrf.mxu1  ;;  %v2190_v18 = vadd.f32 %v2189_v62, %v2077_v8 }
 0x236   : > { %v2191_v23 = vpop.f32.mrf.mxu0  ;;  %v2281_v33 = vadd.f32 %v2280_v58, %v2174_v10 }
 0x237   : > { %v2282_v28 = vpop.f32.mrf.mxu1  ;;  %v2192_v26 = vadd.f32 %v2191_v23, %v2079_v2 }
 0x238   : > { %v2394_v49 = vpop.f32.mrf.mxu0  ;;  %v2283_v3 = vadd.f32 %v2282_v28, %v2176_v36 }
 0x239   : > { %v2289_v24 = vpop.f32.mrf.mxu1  ;;  %v2395_v57 = vadd.f32 %v2394_v49, %v2272_v14  ;;  %v3227_v49 = vld [vmem:[%s10105_s5] sm:$0xff] }
 0x23a   : > { %v2396_v16 = vpop.f32.mrf.mxu0  ;;  %v2290_v13 = vadd.f32 %v2289_v24, %v2182_v9  ;;  %v3259_v9 = vsel %vm1818_vm2, %v3228_v29, 0 }
 0x23b   : > { %v2291_v37 = vpop.f32.mrf.mxu1  ;;  %v2397_v24 = vadd.f32 %v2396_v16, %v2274_v54 }
 0x23c   : > { %v2401_v47 = vpop.f32.mrf.mxu0  ;;  %v2292_v7 = vadd.f32 %v2291_v37, %v2184_v46 }
 0x23d   : > { %v2298_v25 = vpop.f32.mrf.mxu1  ;;  %v2402_v12 = vadd.f32 %v2401_v47, %v2281_v33 }
 0x23e   : > { %v2403_v30 = vpop.f32.mrf.mxu0  ;;  %v2299_v34 = vadd.f32 %v2298_v25, %v2190_v18 }
 0x23f   : > { %v2300_v40 = vpop.f32.mrf.mxu1  ;;  %v2404_v43 = vadd.f32 %v2403_v30, %v2283_v3 }
 0x240   : > { %v2408_v0 = vpop.f32.mrf.mxu0  ;;  %v2301_v52 = vadd.f32 %v2300_v40, %v2192_v26 }
 0x241   : > { %v2495_v59 = vpop.f32.mrf.mxu1  ;;  %v2409_v41 = vadd.f32 %v2408_v0, %v2290_v13 }
 0x242   : > { %v2410_v5 = vpop.f32.mrf.mxu0  ;;  %v2496_v4 = vadd.f32 %v2495_v59, %v2395_v57  ;;  %v3256_v59 = vsel %vm1818_vm2, %v3227_v49, 0 }
 0x243   : > { %v2497_v1 = vpop.f32.mrf.mxu1  ;;  %v2411_v30 = vadd.f32 %v2410_v5, %v2292_v7  ;;  %v8700_v32 = vand.u32 4294901760, %v3256_v59 }
 0x244   : > { %v2415_v56 = vpop.f32.mrf.mxu0  ;;  %v2498_v37 = vadd.f32 %v2497_v1, %v2397_v24 }
 0x245   : > { %v2502_v21 = vpop.f32.mrf.mxu1  ;;  %v2416_v51 = vadd.f32 %v2415_v56, %v2299_v34  ;;  %v8713_v60 = vsub.f32 %v3256_v59, %v8700_v32 }
 0x246   : > { %v2417_v63 = vpop.f32.mrf.mxu0  ;;  %v2503_v55 = vadd.f32 %v2502_v21, %v2402_v12  ;;  %v3229_v21 = vld [vmem:[%s10105_s5 + $0x10] sm:$0xff] }
 0x247   : > { %v2504_v42 = vpop.f32.mrf.mxu1  ;;  %v2418_v16 = vadd.f32 %v2417_v63, %v2301_v52  ;;  %10254 = vst [vmem:[#allocation14_spill] sm:$0xff] %v8713_v60  ;;  %v8735_v54 = vand.u32 4294901760, %v8713_v60  ;;  %v3262_v7 = vsel %vm1818_vm2, %v3229_v21, 0 }
 0x248   : > { %v2505_v28 = vadd.f32 %v2504_v42, %v2404_v43  ;;  %v8680_v31 = vpop.f32.mrf.mxu0  ;;  %v8724_v43 = vand.u32 4294901760, %v3259_v9  ;;  %v8767_v57 = vand.u32 4294901760, %v3262_v7 }
 0x249   : > { %v2509_v53 = vpop.f32.mrf.mxu1  ;;  %10255 = vst [vmem:[#allocation24_spill] sm:$0xff] %v8735_v54 }
 0x24a   : > { %v2510_v45 = vadd.f32 %v2509_v53, %v2409_v41  ;;  %v8682_v50 = vpop.f32.mrf.mxu0  ;;  %7431 = vtanh.f32 %v2505_v28  ;;  %v3230_v53 = vld [vmem:[%s10105_s5 + $0x18] sm:$0xff]  ;;  %10258 = vst [vmem:[#allocation12_spill] sm:$0xff] %v8767_v57 }
 0x24b   : > { %v2511_v58 = vpop.f32.mrf.mxu1 }
 0x24c   : > { %v2512_v0 = vadd.f32 %v2511_v58, %v2411_v30  ;;  %7433 = vtanh.f32 %v2510_v45  ;;  %v8753_v30 = vsub.f32 %v3259_v9, %v8724_v43 }
 0x24e   : > { %7435 = vtanh.f32 %v2512_v0  ;;  %v2516_v62 = vpop.f32.mrf.mxu1  ;;  %v8684_v48 = vpop.f32.mrf.mxu0  ;;  %10257 = vst [vmem:[#allocation20_spill] sm:$0xff] %v8753_v30  ;;  %v3343_v0 = vsub.f32 %v8713_v60, %v8735_v54 }
 0x24f   : > { %7437 = vtanh.f32 %v2503_v55  ;;  %v2517_v47 = vadd.f32 %v2516_v62, %v2416_v51  ;;  %v3265_v51 = vsel %vm1818_vm2, %v3230_v53, 0 }
 0x250   : > { %7439 = vtanh.f32 %v2498_v37  ;;  %v2518_v23 = vpop.f32.mrf.mxu1  ;;  %v8686_v25 = vpop.f32.mrf.mxu0  ;;  %v8807_v21 = vand.u32 4294901760, %v3265_v51 }
 0x251   : > { %7441 = vtanh.f32 %v2517_v47  ;;  %v2519_v40 = vadd.f32 %v2518_v23, %v2418_v16 }
 0x252   : > { %7443 = vtanh.f32 %v2496_v4  ;;  %10262 = vst [vmem:[#allocation23_spill] sm:$0xff] %v8807_v21 }
 0x253   : > { %7445 = vtanh.f32 %v2519_v40  ;;  %v8792_v40 = vand.u32 4294901760, %v8753_v30 }
 0x254   : > { %v8692_v27 = vpop.f32.mrf.mxu0  ;;  %v8694_v38 = vpop.f32.mrf.mxu1 }
 0x255   : > { %10259 = vst [vmem:[#allocation19_spill] sm:$0xff] %v8792_v40 }
 0x256   : > { %v8696_v36 = vpop.f32.mrf.mxu0  ;;  %v8698_v5 = vpop.f32.mrf.mxu1 }
 0x257   : > { %v7432_v11 = vpop.eup %7431 }
 0x258   : > { %v8705_v1 = vpop.f32.mrf.mxu0  ;;  %v8732_v42 = vand.u32 4294901760, %v7432_v11 }
 0x259   : > { %v8707_v15 = vpop.f32.mrf.mxu1  ;;  %v7434_v3 = vpop.eup %7433 }
 0x25a   : > { %v8710_v56 = vpop.f32.mrf.mxu0  ;;  %v8728_v35 = vand.u32 4294901760, %v7434_v3  ;;  %v8774_v52 = vsub.f32 %v7432_v11, %v8732_v42 }
 0x25b   : > { %v7436_v20 = vpop.eup %7435  ;;  %v8715_v10 = vpop.f32.mrf.mxu1 }
 0x25c   : > { %v7438_v22 = vpop.eup %7437  ;;  %v8720_v46 = vpop.f32.mrf.mxu0  ;;  %v8722_v13 = vand.u32 4294901760, %v7436_v20  ;;  %v8765_v58 = vsub.f32 %v7434_v3, %v8728_v35 }
 0x25d   : > { %v7440_v63 = vpop.eup %7439  ;;  %v8726_v19 = vpop.f32.mrf.mxu1  ;;  %v8742_v18 = vand.u32 4294901760, %v7438_v22 }
 0x25e   : > { %v7442_v8 = vpop.eup %7441  ;;  %v8730_v33 = vpop.f32.mrf.mxu0  ;;  %v8745_v12 = vsub.f32 %v7436_v20, %v8722_v13  ;;  %v8750_v24 = vand.u32 4294901760, %v7440_v63  ;;  %v8805_v20 = vsub.f32 %v3262_v7, %v8767_v57  ;;  %v8822_v7 = vand.u32 4294901760, %v3343_v0 }
 0x25f   : > { %v7444_v41 = vpop.eup %7443  ;;  %v8738_v28 = vpop.f32.mrf.mxu1  ;;  %v8740_v2 = vand.u32 4294901760, %v7442_v8  ;;  %v8788_v49 = vsub.f32 %v7438_v22, %v8742_v18 }
 0x260   : > { %v7446_v14 = vpop.eup %7445  ;;  %10256 = vst [vmem:[#allocation15_spill] sm:$0xff] %v8750_v24  ;;  %v8769_v37 = vand.u32 4294901760, %v7444_v41  ;;  %v10151_v23 = vand.u32 4294901760, %v8745_v12  ;;  %v8795_v59 = vsub.f32 %v7440_v63, %v8750_v24  ;;  %10261 = vst [vmem:[#allocation17_spill] sm:$0xff] %v8805_v20  ;;  %v8845_v63 = vsub.f32 %v3265_v51, %v8807_v21 }
 0x261   : > { %v8755_v45 = vpop.f32.mrf.mxu1  ;;  %v8757_v26 = vpop.f32.mrf.mxu0  ;;  %v8759_v34 = vand.u32 4294901760, %v7446_v14  ;;  %v8762_v55 = vsub.f32 %v7442_v8, %v8740_v2  ;;  %10264 = vst [vmem:[#allocation22_spill] sm:$0xff] %v8822_v7  ;;  %v10269_v51 = vand.u32 4294901760, %v8788_v49 }
 0x262   : > { %v8815_v8 = vsub.f32 %v7444_v41, %v8769_v37  ;;  %v3354_v41 = vsub.f32 %v8753_v30, %v8792_v40  ;;  %v10267_v40 = vand.u32 4294901760, %v8774_v52 }
 0x263   : > { %v8777_v4 = vpop.f32.mrf.mxu1  ;;  %v8779_v62 = vpop.f32.mrf.mxu0  ;;  %3292 = vmatprep.subr.mxu0 %v8759_v34  ;;  %v8783_v16 = vsub.f32 %v7446_v14, %v8759_v34  ;;  %v10145_v47 = vand.u32 4294901760, %v8762_v55  ;;  %v3441_v21 = vsub.f32 %v8788_v49, %v10269_v51  ;;  %v8874_v51 = vand.u32 4294901760, %v8845_v63 }
 0x264   : > { %3294 = vmatpush1.msra.mxu0 %v8740_v2  ;;  %v3435_v30 = vsub.f32 %v8774_v52, %v10267_v40  ;;  %v10271_v40 = vand.u32 4294901760, %v8795_v59 }
 0x265   : > { %v8797_v29 = vpop.f32.mrf.mxu0  ;;  %v8799_v11 = vpop.f32.mrf.mxu1  ;;  %3296 = vmatprep.subr.mxu0 %v8722_v13  ;;  %v10148_v9 = vand.u32 4294901760, %v8783_v16  ;;  %v3417_v22 = vsub.f32 %v8762_v55, %v10145_v47  ;;  %v3423_v47 = vsub.f32 %v8745_v12, %v10151_v23  ;;  %v8842_v23 = vand.u32 4294901760, %v8805_v20 }
 0x266   : > { %10260 = vst [vmem:[#allocation18_spill] sm:$0xff] %v8799_v11  ;;  %3298 = vmatpush1.msra.mxu0 %v8728_v35 }
 0x267   : > { %v8817_v53 = vpop.f32.mrf.mxu0  ;;  %v8819_v14 = vpop.f32.mrf.mxu1  ;;  %3300 = vmatprep.subr.mxu0 %v8732_v42  ;;  %v3411_v3 = vsub.f32 %v8783_v16, %v10148_v9  ;;  %v10265_v9 = vand.u32 4294901760, %v8765_v58  ;;  %10266 = vst [vmem:[#allocation13_spill] sm:$0xff] %v8842_v23  ;;  %v3418_v54 = vand.u32 4294901760, %v3417_v22  ;;  %v8863_v22 = vand.u32 4294901760, %v3354_v41 }
 0x268   : > { %10263 = vst [vmem:[#allocation16_spill] sm:$0xff] %v8819_v14  ;;  %3302 = vmatpush1.msra.mxu0 %v8742_v18  ;;  %v10273_v41 = vand.u32 4294901760, %v8815_v8 }
 0x269   : > { %v8835_v11 = vpop.f32.mrf.mxu0  ;;  %3304 = vmatprep.subr.mxu0 %v8750_v24  ;;  %v3412_v0 = vand.u32 4294901760, %v3411_v3  ;;  %v3429_v57 = vsub.f32 %v8765_v58, %v10265_v9  ;;  %v3424_v9 = vand.u32 4294901760, %v3423_v47  ;;  %10270 = vst [vmem:[#allocation26_spill] sm:$0xff] %v8863_v22  ;;  %v3447_v3 = vsub.f32 %v8795_v59, %v10271_v40 }
 0x26a   : > { %v8847_v14 = vpop.f32.mrf.mxu1  ;;  %3306 = vmatpush1.msra.mxu0 %v8769_v37  ;;  %v3453_v40 = vsub.f32 %v8815_v8, %v10273_v41  ;;  %v3376_v41 = vsub.f32 %v8845_v63, %v8874_v51 }
 0x26b   : > { %v8854_v60 = vpop.f32.mrf.mxu0  ;;  %3345 = vmatmul.mubr.f32.vlgmr.msra.gmra.mxu0 %v8822_v7  ;;  %3413 = vmatprep.subr.mxu1 %v3412_v0  ;;  %v3430_v47 = vand.u32 4294901760, %v3429_v57  ;;  %v3365_v0 = vsub.f32 %v8805_v20, %v8842_v23  ;;  %v3442_v57 = vand.u32 4294901760, %v3441_v21  ;;  %v3448_v23 = vand.u32 4294901760, %v3447_v3 }
 0x26c   : > { %10268 = vst [vmem:[#allocation21_spill] sm:$0xff] %v8854_v60  ;;  %v8860_v24 = vpop.f32.mrf.mxu1  ;;  %3543 = vmatprep.subr.mxu0 %v8783_v16  ;;  %3419 = vmatpush1.msra.mxu1 %v3418_v54  ;;  %v3436_v54 = vand.u32 4294901760, %v3435_v30  ;;  %v3454_v21 = vand.u32 4294901760, %v3453_v40  ;;  %v2601_v3 = vadd.f32 %v8680_v31, %v8672_v6  ;;  %v8917_v31 = vand.u32 4294901760, %v3376_v41 }
 0x26d   : > { %v8868_v60 = vpop.f32.mrf.mxu0  ;;  %3546 = vmatpush1.msra.mxu0 %v8762_v55  ;;  %3425 = vmatprep.subr.mxu1 %v3424_v9  ;;  %v8890_v30 = vand.u32 4294901760, %v3365_v0  ;;  %v2603_v0 = vadd.f32 %v8682_v50, %v8672_v6  ;;  %v2625_v50 = vadd.f32 %v8696_v36, %v8666_v44 }
 0x26e   : > { %10272 = vst [vmem:[#allocation25_spill] sm:$0xff] %v8868_v60  ;;  %v8876_v7 = vpop.f32.mrf.mxu1  ;;  %3549 = vmatprep.subr.mxu0 %v8745_v12  ;;  %3350 = vmatprep.mubr.f32.mxu0 %v10229_v61  ;;  %v2746_v6 = vadd.f32 %v8694_v38, %v2601_v3 }
 0x26f   : > { %v8883_v60 = vpop.f32.mrf.mxu0  ;;  %3431 = vmatpush1.msra.mxu1 %v3430_v47  ;;  %3552 = vmatpush1.msra.mxu0 %v8765_v58  ;;  %v2612_v47 = vadd.f32 %v8684_v48, %v8668_v39  ;;  %v2614_v48 = vadd.f32 %v8686_v25, %v8668_v39  ;;  %v10275_v25 = vand.u32 4294901760, %v8783_v16 }
 0x270   : > { %10274 = vst [vmem:[#allocation27_spill] sm:$0xff] %v8883_v60  ;;  %v8886_v9 = vpop.f32.mrf.mxu1  ;;  %3356 = vmatmul.mubr.f32.gmra.mxu0 %v8863_v22  ;;  %3437 = vmatprep.subr.mxu1 %v3436_v54  ;;  %v2856_v36 = vadd.f32 %v8720_v46, %v2746_v6 }
 0x271   : > { %v3091_v20 = vpop.f32.mrf.mxu0  ;;  %3555 = vmatprep.subr.mxu0 %v8774_v52  ;;  %3443 = vmatpush1.msra.mxu1 %v3442_v57  ;;  %v2753_v40 = vadd.f32 %v8707_v15, %v2612_v47  ;;  %v2755_v38 = vadd.f32 %v8715_v10, %v2614_v48  ;;  %v10277_v48 = vld [vmem:[#allocation14_spill] sm:$0xff] }
 0x272   : > { %v8894_v60 = vpop.f32.mrf.mxu1  ;;  %3558 = vmatpush1.msra.mxu0 %v8788_v49  ;;  %3449 = vmatprep.subr.mxu1 %v3448_v23  ;;  %v2623_v23 = vadd.f32 %v8692_v27, %v8666_v44  ;;  %v2634_v27 = vadd.f32 %v8705_v1, %v8664_v17  ;;  %v2636_v44 = vadd.f32 %v8710_v56, %v8664_v17 }
 0x273   : > { %v8899_v54 = vpop.f32.mrf.mxu0  ;;  %3561 = vmatprep.subr.mxu0 %v8795_v59  ;;  %3361 = vmatprep.mubr.f32.mxu0 %v10229_v61  ;;  %v2864_v41 = vadd.f32 %v8757_v26, %v2753_v40  ;;  %v2762_v1 = vadd.f32 %v8738_v28, %v2625_v50  ;;  %v2866_v10 = vadd.f32 %v8779_v62, %v2755_v38  ;;  %v10279_v40 = vld [vmem:[#allocation21_spill] sm:$0xff]  ;;  %v10280_v50 = vld [vmem:[#allocation12_spill] sm:$0xff] }
 0x274   : > { %v8907_v57 = vpop.f32.mrf.mxu1  ;;  %3455 = vmatpush1.msra.mxu1 %v3454_v21  ;;  %3564 = vmatpush1.msra.mxu0 %v8815_v8  ;;  %v2748_v21 = vadd.f32 %v8698_v5, %v2603_v0  ;;  %v2760_v15 = vadd.f32 %v8726_v19, %v2623_v23  ;;  %v2767_v56 = vadd.f32 %v8755_v45, %v2634_v27  ;;  %v10276_v0 = vld [vmem:[#allocation15_spill] sm:$0xff]  ;;  %v10278_v23 = vld [vmem:[#allocation16_spill] sm:$0xff]  ;;  %v10282_v27 = vand.u32 4294901760, %v8745_v12 }
 0x275   : > { %v3098_v22 = vpop.f32.mrf.mxu0  ;;  %3367 = vmatmul.mubr.f32.gmra.mxu0 %v8890_v30  ;;  %3490 = vmatmul.mubr.f32.vlgmr.msra.gmra.mxu1 %v8700_v32  ;;  %v2971_v26 = vadd.f32 %v8847_v14, %v2864_v41  ;;  %v2874_v28 = vadd.f32 %v8817_v53, %v2762_v1  ;;  %v2973_v62 = vadd.f32 %v8860_v24, %v2866_v10  ;;  %v10286_v12 = vand.u32 4294901760, %v8774_v52  ;;  %v10288_v10 = vld [vmem:[#allocation23_spill] sm:$0xff] }
 0x276   : > { %v8923_v39 = vpop.f32.mrf.mxu1  ;;  %3655 = vmatprep.subr.mxu1 %v8759_v34  ;;  %3766 = vmatprep.subr.mxu0 %v10275_v25  ;;  %v2872_v19 = vadd.f32 %v8797_v29, %v2760_v15  ;;  %v2858_v17 = vadd.f32 %v8730_v33, %v2748_v21  ;;  %v2769_v33 = vadd.f32 %v8777_v4, %v2636_v44  ;;  %v10281_v21 = vand.u32 4294901760, %v8762_v55  ;;  %v10283_v15 = vld [vmem:[#allocation18_spill] sm:$0xff] }
 0x277   : > { %3657 = vmatpush1.msra.mxu1 %v8740_v2  ;;  %3372 = vmatprep.mubr.f32.mxu0 %v10229_v61  ;;  %v3100_v5 = vpop.f32.mrf.mxu0  ;;  %v3092_v14 = vadd.f32 %v3091_v20, %v2971_v26  ;;  %v2880_v45 = vadd.f32 %v8835_v11, %v2767_v56  ;;  %v2982_v53 = vadd.f32 %v8886_v9, %v2874_v28  ;;  %v10284_v44 = vld [vmem:[#allocation27_spill] sm:$0xff]  ;;  %v10285_v26 = vand.u32 4294901760, %v8765_v58  ;;  %v10289_v58 = vld [vmem:[#allocation20_spill] sm:$0xff] }
 0x278   : > { %v3187_v16 = vpop.f32.mrf.mxu1  ;;  %3659 = vmatprep.subr.mxu1 %v8722_v13  ;;  %3495 = vmatprep.mubr.f32.mxu1 %v10229_v61  ;;  %v2980_v29 = vadd.f32 %v8876_v7, %v2872_v19  ;;  %v2964_v4 = vadd.f32 %v10278_v23, %v2858_v17  ;;  %v2882_v11 = vadd.f32 %v10279_v40, %v2769_v33  ;;  %v10290_v28 = vand.u32 4294901760, %v8788_v49  ;;  %v10294_v49 = vld [vmem:[#allocation24_spill] sm:$0xff] }
 0x279   : > { %3661 = vmatpush1.msra.mxu1 %v8728_v35  ;;  %3378 = vmatmul.mubr.f32.gmra.mxu0 %v8917_v31  ;;  %v3105_v47 = vpop.f32.mrf.mxu0  ;;  %v3094_v24 = vadd.f32 %v8899_v54, %v2973_v62  ;;  %v2989_v9 = vadd.f32 %v8894_v60, %v2880_v45  ;;  %v2962_v41 = vadd.f32 %v10283_v15, %v2856_v36  ;;  %v10287_v36 = vld [vmem:[#allocation25_spill] sm:$0xff]  ;;  %v10292_v33 = vand.u32 4294901760, %v8815_v8 }
 0x27a   : > { %v3192_v46 = vpop.f32.mrf.mxu1  ;;  %3497 = vmatmul.mubr.f32.gmra.mxu1 %v8724_v43  ;;  %3663 = vmatprep.subr.mxu1 %v8732_v42  ;;  %v3099_v7 = vadd.f32 %v3098_v22, %v2980_v29  ;;  %v3101_v22 = vadd.f32 %v3100_v5, %v2982_v53  ;;  %v3087_v38 = vadd.f32 %v10284_v44, %v2964_v4  ;;  %v10293_v45 = vld [vmem:[#allocation17_spill] sm:$0xff] }
 0x27b   : > { %3665 = vmatpush1.msra.mxu1 %v8742_v18  ;;  %3502 = vmatprep.mubr.f32.mxu1 %v10229_v61  ;;  %v3193_v20 = vadd.f32 %v3192_v46, %v3092_v14  ;;  %v3107_v54 = vpop.f32.mrf.mxu0  ;;  %v2991_v60 = vadd.f32 %v8907_v57, %v2882_v11  ;;  %v3106_v55 = vadd.f32 %v3105_v47, %v2989_v9 }
 0x27c   : > { %v3194_v3 = vpop.f32.mrf.mxu1  ;;  %3667 = vmatprep.subr.mxu1 %v10276_v0  ;;  %3597 = vmatprep.mubr.f32.mxu0 %v10229_v61  ;;  %v3085_v5 = vadd.f32 %v10287_v36, %v2962_v41  ;;  %v3188_v17 = vadd.f32 %v3187_v16, %v3087_v38  ;;  %v10291_v16 = vand.u32 4294901760, %v8795_v59  ;;  %v10295_v59 = vld [vmem:[#allocation19_spill] sm:$0xff]  ;;  %v10297_v36 = vld [vmem:[#allocation22_spill] sm:$0xff] }
 0x27d   : > { %3669 = vmatpush1.msra.mxu1 %v8769_v37  ;;  %3600 = vmatmul.mubr.f32.vlgmr.msra.gmra.mxu0 %v10277_v48  ;;  %v3195_v1 = vadd.f32 %v3194_v3, %v3094_v24  ;;  %7447 = vtanh.f32 %v3193_v20  ;;  %v3108_v46 = vadd.f32 %v3107_v54, %v2991_v60 }
 0x27e   : > { %v3199_v6 = vpop.f32.mrf.mxu1  ;;  %3504 = vmatmul.mubr.f32.gmra.mxu1 %v10280_v50  ;;  %3770 = vmatpush1.msra.mxu0 %v10281_v21  ;;  %v3186_v52 = vadd.f32 %v8923_v39, %v3085_v5 }
 0x27f   : > { %v3200_v25 = vadd.f32 %v3199_v6, %v3099_v7  ;;  %3881 = vmatprep.subr.mxu1 %v8759_v34  ;;  %3774 = vmatprep.subr.mxu0 %v10282_v27 }
 0x280   : > { %v3201_v19 = vpop.f32.mrf.mxu1  ;;  %3778 = vmatpush1.msra.mxu0 %v10285_v26  ;;  %3509 = vmatprep.mubr.f32.mxu1 %v10229_v61 }
 0x281   : > { %v3202_v34 = vadd.f32 %v3201_v19, %v3101_v22  ;;  %3605 = vmatprep.mubr.f32.mxu0 %v10229_v61  ;;  %3782 = vmatprep.subr.mxu0 %v10286_v12  ;;  %7449 = vtanh.f32 %v3200_v25 }
 0x282   : > { %v3206_v56 = vpop.f32.mrf.mxu1  ;;  %3511 = vmatmul.mubr.f32.gmra.mxu1 %v10288_v10  ;;  %3608 = vmatmul.mubr.f32.gmra.mxu0 %v10289_v58 }
 0x283   : > { %7451 = vtanh.f32 %v3202_v34  ;;  %v3207_v57 = vadd.f32 %v3206_v56, %v3106_v55  ;;  %3786 = vmatpush1.msra.mxu0 %v10290_v28  ;;  %3613 = vmatprep.mubr.f32.mxu0 %v10229_v61 }
 0x284   : > { %7453 = vtanh.f32 %v3195_v1  ;;  %v3208_v29 = vpop.f32.mrf.mxu1  ;;  %3790 = vmatprep.subr.mxu0 %v10291_v16  ;;  %3702 = vmatprep.mubr.f32.mxu1 %v10229_v61 }
 0x285   : > { %7455 = vtanh.f32 %v3207_v57  ;;  %v3209_v14 = vadd.f32 %v3208_v29, %v3108_v46  ;;  %3794 = vmatpush1.msra.mxu0 %v10292_v33 }
 0x286   : > { %7457 = vtanh.f32 %v3188_v17  ;;  %3616 = vmatmul.mubr.f32.gmra.mxu0 %v10293_v45  ;;  %3706 = vmatmul.mubr.f32.vlgmr.msra.gmra.mxu1 %v10294_v49 }
 0x287   : > { %7459 = vtanh.f32 %v3209_v14  ;;  %3883 = vmatpush1.msra.mxu1 %v8740_v2  ;;  %3621 = vmatprep.mubr.f32.mxu0 %v10229_v61  ;;  %v10298_v14 = vld [vmem:[#allocation26_spill] sm:$0xff] }
 0x288   : > { %7461 = vtanh.f32 %v3186_v52  ;;  %3885 = vmatprep.subr.mxu1 %v8722_v13  ;;  %3711 = vmatprep.mubr.f32.mxu1 %v10229_v61 }
 0x289   : > { %3887 = vmatpush1.msra.mxu1 %v8728_v35  ;;  %v10296_v35 = vld [vmem:[#allocation13_spill] sm:$0xff] }
 0x28a   : > { %3889 = vmatprep.subr.mxu1 %v8732_v42  ;;  %3624 = vmatmul.mubr.f32.gmra.mxu0 %v8845_v63  ;;  %v7448_v2 = vpop.eup %7447 }
 0x28b   : > { %3715 = vmatmul.mubr.f32.gmra.mxu1 %v10295_v59  ;;  %3827 = vmatprep.mubr.f32.mxu0 %v10229_v61  ;;  %v9029_v23 = vand.u32 4294901760, %v7448_v2 }
 0x28c   : > { %3891 = vmatpush1.msra.mxu1 %v8742_v18  ;;  %3720 = vmatprep.mubr.f32.mxu1 %v10229_v61 }
 0x28d   : > { %3893 = vmatprep.subr.mxu1 %v10276_v0  ;;  %v9058_v27 = vsub.f32 %v7448_v2, %v9029_v23 }
 0x28e   : > { %3895 = vmatpush1.msra.mxu1 %v8769_v37  ;;  %3829 = vmatmul.mubr.f32.vlgmr.msra.gmra.mxu0 %v8700_v32  ;;  %v7450_v13 = vpop.eup %7449 }
 0x28f   : > { %3724 = vmatmul.mubr.f32.gmra.mxu1 %v10296_v35  ;;  %3834 = vmatprep.mubr.f32.mxu0 %v10229_v61  ;;  %v9015_v62 = vand.u32 4294901760, %v7450_v13  ;;  %v4130_v60 = vand.u32 4294901760, %v9058_v27 }
 0x290   : > { %v7452_v42 = vpop.eup %7451  ;;  %3729 = vmatprep.mubr.f32.mxu1 %v10229_v61 }
 0x291   : > { %v7454_v8 = vpop.eup %7453  ;;  %v9012_v39 = vand.u32 4294901760, %v7452_v42  ;;  %v9038_v11 = vsub.f32 %v7450_v13, %v9015_v62  ;;  %v4131_v46 = vsub.f32 %v9058_v27, %v4130_v60 }
 0x292   : > { %v7456_v18 = vpop.eup %7455  ;;  %3836 = vmatmul.mubr.f32.gmra.mxu0 %v8724_v43  ;;  %v9022_v0 = vand.u32 4294901760, %v7454_v8 }
 0x293   : > { %v7458_v47 = vpop.eup %7457  ;;  %3733 = vmatmul.mubr.f32.gmra.mxu1 %v8874_v51  ;;  %3841 = vmatprep.mubr.f32.mxu0 %v10229_v61  ;;  %v9019_v37 = vand.u32 4294901760, %v7456_v18  ;;  %v9025_v53 = vsub.f32 %v7452_v42, %v9012_v39  ;;  %v4118_v15 = vand.u32 4294901760, %v9038_v11  ;;  %v4132_v16 = vand.u32 4294901760, %v4131_v46 }
 0x294   : > { %v7460_v3 = vpop.eup %7459  ;;  %3928 = vmatprep.mubr.f32.mxu1 %v10229_v61  ;;  %v9035_v40 = vand.u32 4294901760, %v7458_v47  ;;  %v9052_v22 = vsub.f32 %v7454_v8, %v9022_v0 }
 0x295   : > { %v7462_v7 = vpop.eup %7461  ;;  %v9027_v20 = vand.u32 4294901760, %v7460_v3  ;;  %v9032_v4 = vsub.f32 %v7456_v18, %v9019_v37  ;;  %v4112_v9 = vand.u32 4294901760, %v9025_v53  ;;  %v4119_v55 = vsub.f32 %v9038_v11, %v4118_v15 }
 0x296   : > { %3843 = vmatmul.mubr.f32.gmra.mxu0 %v10280_v50  ;;  %v9048_v21 = vand.u32 4294901760, %v7462_v7  ;;  %v9063_v41 = vsub.f32 %v7458_v47, %v9035_v40  ;;  %v4124_v1 = vand.u32 4294901760, %v9052_v22 }
 0x297   : > { %3930 = vmatmul.mubr.f32.vlgmr.msra.gmra.mxu1 %v8700_v32  ;;  %3982 = vmatprep.subr.mxu0 %v9027_v20  ;;  %v9043_v24 = vsub.f32 %v7460_v3, %v9027_v20  ;;  %v4106_v6 = vand.u32 4294901760, %v9032_v4  ;;  %v4113_v54 = vsub.f32 %v9025_v53, %v4112_v9  ;;  %v4120_v57 = vand.u32 4294901760, %v4119_v55 }
 0x298   : > { %3984 = vmatpush1.msra.mxu0 %v9019_v37  ;;  %3848 = vmatprep.mubr.f32.mxu0 %v10229_v61  ;;  %v9078_v19 = vsub.f32 %v7462_v7, %v9048_v21  ;;  %v4136_v34 = vand.u32 4294901760, %v9063_v41  ;;  %v4125_v17 = vsub.f32 %v9052_v22, %v4124_v1 }
 0x299   : > { %3986 = vmatprep.subr.mxu0 %v9012_v39  ;;  %3935 = vmatprep.mubr.f32.mxu1 %v10229_v61  ;;  %v4100_v25 = vand.u32 4294901760, %v9043_v24  ;;  %v4107_v38 = vsub.f32 %v9032_v4, %v4106_v6  ;;  %v4114_v5 = vand.u32 4294901760, %v4113_v54 }
 0x29a   : > { %3988 = vmatpush1.msra.mxu0 %v9015_v62  ;;  %v4142_v56 = vand.u32 4294901760, %v9078_v19  ;;  %v4137_v28 = vsub.f32 %v9063_v41, %v4136_v34  ;;  %v4126_v52 = vand.u32 4294901760, %v4125_v17 }
 0x29b   : > { %3850 = vmatmul.mubr.f32.gmra.mxu0 %v10288_v10  ;;  %3937 = vmatmul.mubr.f32.gmra.mxu1 %v8724_v43  ;;  %v4101_v44 = vsub.f32 %v9043_v24, %v4100_v25  ;;  %v4108_v12 = vand.u32 4294901760, %v4107_v38 }
 0x29c   : > { %3990 = vmatprep.subr.mxu0 %v9022_v0  ;;  %3942 = vmatprep.mubr.f32.mxu1 %v10229_v61  ;;  %v4143_v29 = vsub.f32 %v9078_v19, %v4142_v56  ;;  %v4138_v33 = vand.u32 4294901760, %v4137_v28 }
 0x29d   : > { %3992 = vmatpush1.msra.mxu0 %v9029_v23  ;;  %4029 = vmatprep.mubr.f32.mxu0 %v10229_v61  ;;  %v4102_v26 = vand.u32 4294901760, %v4101_v44 }
 0x29e   : > { %3994 = vmatprep.subr.mxu0 %v9035_v40  ;;  %v4144_v2 = vand.u32 4294901760, %v4143_v29 }
 0x29f   : > { %3996 = vmatpush1.msra.mxu0 %v9048_v21  ;;  %3944 = vmatmul.mubr.f32.gmra.mxu1 %v10280_v50 }
 0x2a0   : > { %4035 = vmatmul.mubr.f32.vlgmr.msra.gmra.mxu0 %v10297_v36  ;;  %4103 = vmatprep.subr.mxu1 %v4102_v26 }
 0x2a1   : > { %4233 = vmatprep.subr.mxu0 %v9043_v24  ;;  %4109 = vmatpush1.msra.mxu1 %v4108_v12 }
 0x2a2   : > { %4236 = vmatpush1.msra.mxu0 %v9032_v4  ;;  %4115 = vmatprep.subr.mxu1 %v4114_v5 }
 0x2a3   : > { %4239 = vmatprep.subr.mxu0 %v9025_v53  ;;  %3949 = vmatprep.mubr.f32.mxu1 %v10229_v61 }
 0x2a4   : > { %4040 = vmatprep.mubr.f32.mxu0 %v10229_v61  ;;  %4121 = vmatpush1.msra.mxu1 %v4120_v57 }
 0x2a5   : > { %4242 = vmatpush1.msra.mxu0 %v9038_v11  ;;  %3951 = vmatmul.mubr.f32.gmra.mxu1 %v10288_v10  ;;  %v9190_v11 = vpop.permute.xlu0 %3252 }
 0x2a6   : > { %4046 = vmatmul.mubr.f32.gmra.mxu0 %v10298_v14  ;;  %4127 = vmatprep.subr.mxu1 %v4126_v52 }
 0x2a7   : > { %4245 = vmatprep.subr.mxu0 %v9052_v22  ;;  %4133 = vmatpush1.msra.mxu1 %v4132_v16 }
 0x2a8   : > { %4248 = vmatpush1.msra.mxu0 %v9058_v27  ;;  %4139 = vmatprep.subr.mxu1 %v4138_v33 }
 0x2a9   : > { %4251 = vmatprep.subr.mxu0 %v9063_v41  ;;  %4051 = vmatprep.mubr.f32.mxu0 %v10229_v61 }
 0x2aa   : > { %4145 = vmatpush1.msra.mxu1 %v4144_v2  ;;  %4178 = vmatprep.mubr.f32.mxu1 %v10229_v61 }
 0x2ab   : > { %4254 = vmatpush1.msra.mxu0 %v9078_v19  ;;  %4180 = vmatmul.mubr.f32.vlgmr.msra.gmra.mxu1 %v8700_v32 }
 0x2ac   : > { %4057 = vmatmul.mubr.f32.gmra.mxu0 %v8890_v30  ;;  %4345 = vmatprep.subr.mxu1 %v9027_v20 }
 0x2ad   : > { %4456 = vmatprep.subr.mxu0 %v4100_v25  ;;  %4347 = vmatpush1.msra.mxu1 %v9019_v37 }
 0x2ae   : > { %4349 = vmatprep.subr.mxu1 %v9012_v39  ;;  %4062 = vmatprep.mubr.f32.mxu0 %v10229_v61 }
 0x2af   : > { %4185 = vmatprep.mubr.f32.mxu1 %v10229_v61  ;;  %4351 = vmatpush1.msra.mxu1 %v9015_v62 }
 0x2b0   : > { %4068 = vmatmul.mubr.f32.gmra.mxu0 %v8917_v31  ;;  %4187 = vmatmul.mubr.f32.gmra.mxu1 %v8724_v43 }
 0x2b1   : > { %4353 = vmatprep.subr.mxu1 %v9022_v0  ;;  %4192 = vmatprep.mubr.f32.mxu1 %v10229_v61 }
 0x2b2   : > { %4355 = vmatpush1.msra.mxu1 %v9029_v23  ;;  %4287 = vmatprep.mubr.f32.mxu0 %v10229_v61 }
 0x2b3   : > { %4357 = vmatprep.subr.mxu1 %v9035_v40 }
 0x2b4   : > { %4359 = vmatpush1.msra.mxu1 %v9048_v21  ;;  %4290 = vmatmul.mubr.f32.vlgmr.msra.gmra.mxu0 %v10277_v48 }
 0x2b5   : > { %4194 = vmatmul.mubr.f32.gmra.mxu1 %v10280_v50  ;;  %4460 = vmatpush1.msra.mxu0 %v4106_v6 }
 0x2b6   : > { %4571 = vmatprep.subr.mxu1 %v9027_v20  ;;  %4464 = vmatprep.subr.mxu0 %v4112_v9 }
 0x2b7   : > { %4468 = vmatpush1.msra.mxu0 %v4118_v15  ;;  %4199 = vmatprep.mubr.f32.mxu1 %v10229_v61  ;;  %v9194_v15 = vpop.permute.xlu0 %3242 }
 0x2b8   : > { %4295 = vmatprep.mubr.f32.mxu0 %v10229_v61  ;;  %4472 = vmatprep.subr.mxu0 %v4124_v1 }
 0x2b9   : > { %4201 = vmatmul.mubr.f32.gmra.mxu1 %v10288_v10  ;;  %4298 = vmatmul.mubr.f32.gmra.mxu0 %v10289_v58 }
 0x2ba   : > { %4476 = vmatpush1.msra.mxu0 %v4130_v60  ;;  %4303 = vmatprep.mubr.f32.mxu0 %v10229_v61 }
 0x2bb   : > { %4480 = vmatprep.subr.mxu0 %v4136_v34  ;;  %4392 = vmatprep.mubr.f32.mxu1 %v10229_v61 }
 0x2bc   : > { %4484 = vmatpush1.msra.mxu0 %v4142_v56 }
 0x2bd   : > { %4306 = vmatmul.mubr.f32.gmra.mxu0 %v10293_v45  ;;  %4396 = vmatmul.mubr.f32.vlgmr.msra.gmra.mxu1 %v10294_v49 }
 0x2be   : > { %4573 = vmatpush1.msra.mxu1 %v9019_v37  ;;  %4311 = vmatprep.mubr.f32.mxu0 %v10229_v61 }
 0x2bf   : > { %4575 = vmatprep.subr.mxu1 %v9012_v39  ;;  %4401 = vmatprep.mubr.f32.mxu1 %v10229_v61 }
 0x2c0   : > { %4577 = vmatpush1.msra.mxu1 %v9015_v62 }
 0x2c1   : > { %4579 = vmatprep.subr.mxu1 %v9022_v0  ;;  %4314 = vmatmul.mubr.f32.gmra.mxu0 %v8845_v63 }
 0x2c2   : > { %4405 = vmatmul.mubr.f32.gmra.mxu1 %v10295_v59  ;;  %4517 = vmatprep.mubr.f32.mxu0 %v10229_v61 }
 0x2c3   : > { %4581 = vmatpush1.msra.mxu1 %v9029_v23  ;;  %4410 = vmatprep.mubr.f32.mxu1 %v10229_v61 }
 0x2c4   : > { %4583 = vmatprep.subr.mxu1 %v9035_v40 }
 0x2c5   : > { %4585 = vmatpush1.msra.mxu1 %v9048_v21  ;;  %4519 = vmatmul.mubr.f32.vlgmr.msra.gmra.mxu0 %v8700_v32  ;;  %v9192_v21 = vpop.permute.xlu1 %3247 }
 0x2c6   : > { %4414 = vmatmul.mubr.f32.gmra.mxu1 %v10296_v35  ;;  %4524 = vmatprep.mubr.f32.mxu0 %v10229_v61 }
 0x2c7   : > { %4419 = vmatprep.mubr.f32.mxu1 %v10229_v61 }
 0x2c9   : > { %4526 = vmatmul.mubr.f32.gmra.mxu0 %v8724_v43  ;;  %v9198_v1 = vpop.permute.xlu1 %3237 }
 0x2ca   : > { %4423 = vmatmul.mubr.f32.gmra.mxu1 %v8874_v51  ;;  %4531 = vmatprep.mubr.f32.mxu0 %v10229_v61 }
 0x2cb   : > { %4618 = vmatprep.mubr.f32.mxu1 %v10229_v61 }
 0x2cd   : > { %4533 = vmatmul.mubr.f32.gmra.mxu0 %v10280_v50 }
 0x2ce   : > { %4620 = vmatmul.mubr.f32.vlgmr.msra.gmra.mxu1 %v8700_v32  ;;  %4538 = vmatprep.mubr.f32.mxu0 %v10229_v61 }
 0x2cf   : > { %4625 = vmatprep.mubr.f32.mxu1 %v10229_v61 }
 0x2d1   : > { %4540 = vmatmul.mubr.f32.gmra.mxu0 %v10288_v10 }
 0x2d2   : > { %4627 = vmatmul.mubr.f32.gmra.mxu1 %v8724_v43  ;;  %4775 = vmatprep.mubr.f32.mxu0 %v10229_v61 }
 0x2d3   : > { %4632 = vmatprep.mubr.f32.mxu1 %v10229_v61 }
 0x2d6   : > { %4634 = vmatmul.mubr.f32.gmra.mxu1 %v10280_v50 }
 0x2d7   : > { %4639 = vmatprep.mubr.f32.mxu1 %v10229_v61 }
 0x2da   : > { %4641 = vmatmul.mubr.f32.gmra.mxu1 %v10288_v10 }
 0x2db   : > { %4924 = vmatprep.mubr.f32.mxu1 %v10229_v61 }
 0x32b   : > { %v3346_v32 = vpop.f32.mrf.mxu0 }
 0x32c   : > { %v3347_v46 = vadd.f32 %v3346_v32, %v9198_v1 }
 0x32d   : > { %v3348_v63 = vpop.f32.mrf.mxu0 }
 0x32e   : > { %v3349_v34 = vadd.f32 %v3348_v63, %v9198_v1 }
 0x330   : > { %v3357_v51 = vpop.f32.mrf.mxu0 }
 0x331   : > { %v3358_v19 = vadd.f32 %v3357_v51, %v9194_v15 }
 0x332   : > { %v3359_v30 = vpop.f32.mrf.mxu0 }
 0x333   : > { %v3360_v38 = vadd.f32 %v3359_v30, %v9194_v15 }
 0x335   : > { %v3368_v31 = vpop.f32.mrf.mxu0  ;;  %v3491_v48 = vpop.f32.mrf.mxu1 }
 0x336   : > { %v3369_v41 = vadd.f32 %v3368_v31, %v9192_v21  ;;  %v3492_v51 = vadd.f32 %v3491_v48, %v3347_v46 }
 0x337   : > { %v3370_v58 = vpop.f32.mrf.mxu0  ;;  %v3493_v43 = vpop.f32.mrf.mxu1 }
 0x338   : > { %v3371_v26 = vadd.f32 %v3370_v58, %v9192_v21  ;;  %v3494_v57 = vadd.f32 %v3493_v43, %v3349_v34 }
 0x339   : > { %v3379_v45 = vpop.f32.mrf.mxu0 }
 0x33a   : > { %v3498_v49 = vpop.f32.mrf.mxu1  ;;  %v3380_v16 = vadd.f32 %v3379_v45, %v9190_v11 }
 0x33b   : > { %v3381_v59 = vpop.f32.mrf.mxu0  ;;  %v3499_v5 = vadd.f32 %v3498_v49, %v3358_v19 }
 0x33c   : > { %v3500_v13 = vpop.f32.mrf.mxu1  ;;  %v3382_v30 = vadd.f32 %v3381_v59, %v9190_v11 }
 0x33d   : > { %v3601_v35 = vpop.f32.mrf.mxu0  ;;  %v3501_v12 = vadd.f32 %v3500_v13, %v3360_v38 }
 0x33e   : > { %v3505_v50 = vpop.f32.mrf.mxu1  ;;  %v3602_v43 = vadd.f32 %v3601_v35, %v3492_v51  ;;  %v4665_v51 = vld [vmem:[#allocation3 + $0x10] sm:$0xff] }
 0x33f   : > { %v3603_v42 = vpop.f32.mrf.mxu0  ;;  %v3506_v60 = vadd.f32 %v3505_v50, %v3369_v41 }
 0x340   : > { %v3507_v8 = vpop.f32.mrf.mxu1  ;;  %v3604_v63 = vadd.f32 %v3603_v42, %v3494_v57 }
 0x341   : > { %v3508_v17 = vadd.f32 %v3507_v8, %v3371_v26 }
 0x342   : > { %v3512_v39 = vpop.f32.mrf.mxu1  ;;  %v3609_v10 = vpop.f32.mrf.mxu0 }
 0x343   : > { %v3610_v14 = vadd.f32 %v3609_v10, %v3499_v5  ;;  %v3513_v13 = vadd.f32 %v3512_v39, %v3380_v16  ;;  %v4664_v5 = vld [vmem:[#allocation3 + $0x8] sm:$0xff] }
 0x344   : > { %v3514_v18 = vpop.f32.mrf.mxu1  ;;  %v3611_v62 = vpop.f32.mrf.mxu0 }
 0x345   : > { %v3612_v28 = vadd.f32 %v3611_v62, %v3501_v12  ;;  %v3515_v62 = vadd.f32 %v3514_v18, %v3382_v30 }
 0x346   : > { %v3617_v47 = vpop.f32.mrf.mxu0  ;;  %v3707_v37 = vpop.f32.mrf.mxu1 }
 0x347   : > { %v3618_v56 = vadd.f32 %v3617_v47, %v3506_v60  ;;  %v3708_v59 = vadd.f32 %v3707_v37, %v3602_v43  ;;  %v4698_v43 = vsel %vm1818_vm2, %v4665_v51, 0 }
 0x348   : > { %v3619_v3 = vpop.f32.mrf.mxu0  ;;  %v3709_v0 = vpop.f32.mrf.mxu1 }
 0x349   : > { %v3620_v33 = vadd.f32 %v3619_v3, %v3508_v17  ;;  %v3710_v47 = vadd.f32 %v3709_v0, %v3604_v63 }
 0x34a   : > { %v3625_v53 = vpop.f32.mrf.mxu0 }
 0x34b   : > { %v3716_v7 = vpop.f32.mrf.mxu1  ;;  %v3626_v45 = vadd.f32 %v3625_v53, %v3513_v13 }
 0x34c   : > { %v3627_v20 = vpop.f32.mrf.mxu0  ;;  %v3717_v50 = vadd.f32 %v3716_v7, %v3610_v14 }
 0x34d   : > { %v3718_v23 = vpop.f32.mrf.mxu1  ;;  %v3628_v26 = vadd.f32 %v3627_v20, %v3515_v62 }
 0x34e   : > { %v9188_v4 = vpop.f32.mrf.mxu0  ;;  %v3719_v31 = vadd.f32 %v3718_v23, %v3612_v28  ;;  %v4695_v28 = vsel %vm1818_vm2, %v4664_v5, 0 }
 0x34f   : > { %v3725_v40 = vpop.f32.mrf.mxu1  ;;  %v3831_v35 = vadd.f32 %v9188_v4, %v3708_v59  ;;  %v9240_v63 = vand.u32 4294901760, %v4695_v28 }
 0x350   : > { %v3832_v24 = vpop.f32.mrf.mxu0  ;;  %v3726_v2 = vadd.f32 %v3725_v40, %v3618_v56 }
 0x351   : > { %v3727_v6 = vpop.f32.mrf.mxu1  ;;  %v3833_v42 = vadd.f32 %v3832_v24, %v3710_v47 }
 0x352   : > { %v3837_v9 = vpop.f32.mrf.mxu0  ;;  %v3728_v8 = vadd.f32 %v3727_v6, %v3620_v33 }
 0x353   : > { %v3734_v22 = vpop.f32.mrf.mxu1  ;;  %v3838_v10 = vadd.f32 %v3837_v9, %v3717_v50 }
 0x354   : > { %v3839_v25 = vpop.f32.mrf.mxu0  ;;  %v3735_v39 = vadd.f32 %v3734_v22, %v3626_v45  ;;  %v4663_v22 = vld [vmem:[#allocation3] sm:$0xff] }
 0x355   : > { %v3736_v27 = vpop.f32.mrf.mxu1  ;;  %v3840_v41 = vadd.f32 %v3839_v25, %v3719_v31  ;;  %v4692_v4 = vsel %vm1818_vm2, %v4663_v22, 0 }
 0x356   : > { %v3844_v44 = vpop.f32.mrf.mxu0  ;;  %v3737_v0 = vadd.f32 %v3736_v27, %v3628_v26 }
 0x357   : > { %v3931_v54 = vpop.f32.mrf.mxu1  ;;  %v3845_v32 = vadd.f32 %v3844_v44, %v3726_v2 }
 0x358   : > { %v3846_v55 = vpop.f32.mrf.mxu0  ;;  %v3932_v9 = vadd.f32 %v3931_v54, %v3831_v35 }
 0x359   : > { %v3933_v36 = vpop.f32.mrf.mxu1  ;;  %v3847_v3 = vadd.f32 %v3846_v55, %v3728_v8 }
 0x35a   : > { %v3934_v18 = vadd.f32 %v3933_v36, %v3833_v42  ;;  %v9222_v36 = vand.u32 4294901760, %v4692_v4  ;;  %v9268_v42 = vsub.f32 %v4695_v28, %v9240_v63 }
 0x35b   : > { %v3851_v52 = vpop.f32.mrf.mxu0  ;;  %v3938_v29 = vpop.f32.mrf.mxu1 }
 0x35c   : > { %v3939_v7 = vadd.f32 %v3938_v29, %v3838_v10  ;;  %v3852_v53 = vadd.f32 %v3851_v52, %v3735_v39  ;;  %v9232_v29 = vsub.f32 %v4692_v4, %v9222_v36  ;;  %v4666_v10 = vld [vmem:[#allocation3 + $0x18] sm:$0xff]  ;;  %10302 = vst [vmem:[#allocation21_spill] sm:$0xff] %v9268_v42  ;;  %v9278_v39 = vand.u32 4294901760, %v4698_v43 }
 0x35d   : > { %v3853_v58 = vpop.f32.mrf.mxu0  ;;  %v3940_v49 = vpop.f32.mrf.mxu1 }
 0x35e   : > { %v3941_v23 = vadd.f32 %v3940_v49, %v3840_v41  ;;  %v3854_v37 = vadd.f32 %v3853_v58, %v3737_v0  ;;  %10299 = vst [vmem:[#allocation15_spill] sm:$0xff] %v9232_v29  ;;  %10303 = vst [vmem:[#allocation12_spill] sm:$0xff] %v9278_v39  ;;  %v9316_v28 = vsub.f32 %v4698_v43, %v9278_v39 }
 0x35f   : > { %v3945_v38 = vpop.f32.mrf.mxu1 }
 0x360   : > { %v3946_v40 = vadd.f32 %v3945_v38, %v3845_v32  ;;  %v9206_v48 = vpop.f32.mrf.mxu0  ;;  %v9251_v32 = vand.u32 4294901760, %v9232_v29  ;;  %10306 = vst [vmem:[#allocation25_spill] sm:$0xff] %v9316_v28 }
 0x361   : > { %v3947_v19 = vpop.f32.mrf.mxu1 }
 0x362   : > { %v3948_v6 = vadd.f32 %v3947_v19, %v3847_v3  ;;  %v9208_v44 = vpop.f32.mrf.mxu0  ;;  %7463 = vtanh.f32 %v3946_v40  ;;  %10300 = vst [vmem:[#allocation14_spill] sm:$0xff] %v9251_v32 }
 0x364   : > { %7465 = vtanh.f32 %v3948_v6 }
 0x365   : > { %7467 = vtanh.f32 %v3941_v23  ;;  %v3952_v25 = vpop.f32.mrf.mxu1 }
 0x366   : > { %7469 = vtanh.f32 %v3939_v7  ;;  %v3953_v24 = vadd.f32 %v3952_v25, %v3852_v53  ;;  %v9211_v60 = vpop.f32.mrf.mxu0  ;;  %v4701_v53 = vsel %vm1818_vm2, %v4666_v10, 0 }
 0x367   : > { %7471 = vtanh.f32 %v3934_v18  ;;  %v3954_v20 = vpop.f32.mrf.mxu1  ;;  %v4779_v18 = vsub.f32 %v9232_v29, %v9251_v32 }
 0x368   : > { %7473 = vtanh.f32 %v3953_v24  ;;  %v3955_v55 = vadd.f32 %v3954_v20, %v3854_v37  ;;  %v9213_v34 = vpop.f32.mrf.mxu0 }
 0x369   : > { %7475 = vtanh.f32 %v3932_v9  ;;  %v9333_v43 = vand.u32 4294901760, %v4779_v18 }
 0x36a   : > { %7477 = vtanh.f32 %v3955_v55  ;;  %v9307_v55 = vand.u32 4294901760, %v9268_v42 }
 0x36b   : > { %v9216_v27 = vpop.f32.mrf.mxu1  ;;  %10308 = vst [vmem:[#allocation20_spill] sm:$0xff] %v9333_v43 }
 0x36c   : > { %v9218_v54 = vpop.f32.mrf.mxu0  ;;  %10305 = vst [vmem:[#allocation27_spill] sm:$0xff] %v9307_v55 }
 0x36d   : > { %v9220_v12 = vpop.f32.mrf.mxu1 }
 0x36e   : > { %v9224_v17 = vpop.f32.mrf.mxu0 }
 0x36f   : > { %v7464_v56 = vpop.eup %7463 }
 0x370   : > { %v9226_v46 = vpop.f32.mrf.mxu0  ;;  %v9228_v57 = vpop.f32.mrf.mxu1  ;;  %v9244_v49 = vand.u32 4294901760, %v7464_v56 }
 0x371   : > { %v7466_v52 = vpop.eup %7465 }
 0x372   : > { %v7468_v16 = vpop.eup %7467  ;;  %v9234_v14 = vpop.f32.mrf.mxu0  ;;  %v9238_v2 = vand.u32 4294901760, %v7466_v52  ;;  %v9276_v26 = vsub.f32 %v7464_v56, %v9244_v49  ;;  %v9355_v56 = vand.u32 4294901760, %v9316_v28 }
 0x373   : > { %v9236_v33 = vpop.f32.mrf.mxu1  ;;  %v7470_v30 = vpop.eup %7469  ;;  %v9248_v8 = vand.u32 4294901760, %v7468_v16 }
 0x374   : > { %v7472_v31 = vpop.eup %7471  ;;  %v9242_v58 = vpop.f32.mrf.mxu0  ;;  %v9258_v38 = vand.u32 4294901760, %v7470_v30  ;;  %v9261_v45 = vsub.f32 %v7466_v52, %v9238_v2  ;;  %v9318_v52 = vand.u32 4294901760, %v4701_v53  ;;  %v10309_v32 = vand.u32 4294901760, %v9276_v26  ;;  %10310 = vst [vmem:[#allocation17_spill] sm:$0xff] %v9355_v56 }
 0x375   : > { %v7474_v13 = vpop.eup %7473  ;;  %v9246_v50 = vpop.f32.mrf.mxu1  ;;  %v9265_v59 = vand.u32 4294901760, %v7472_v31  ;;  %v9289_v0 = vsub.f32 %v7468_v16, %v9248_v8 }
 0x376   : > { %v7476_v62 = vpop.eup %7475  ;;  %v9254_v47 = vpop.f32.mrf.mxu0  ;;  %v9256_v41 = vand.u32 4294901760, %v7474_v13  ;;  %v10172_v37 = vand.u32 4294901760, %v9261_v45  ;;  %v9299_v24 = vsub.f32 %v7470_v30, %v9258_v38  ;;  %10307 = vst [vmem:[#allocation23_spill] sm:$0xff] %v9318_v52  ;;  %v9358_v39 = vsub.f32 %v4701_v53, %v9318_v52 }
 0x377   : > { %v7478_v3 = vpop.eup %7477  ;;  %v9263_v40 = vpop.f32.mrf.mxu1  ;;  %10301 = vst [vmem:[#allocation16_spill] sm:$0xff] %v9265_v59  ;;  %v9284_v35 = vand.u32 4294901760, %v7476_v62  ;;  %v9310_v4 = vsub.f32 %v7472_v31, %v9265_v59  ;;  %v10312_v18 = vand.u32 4294901760, %v9289_v0 }
 0x378   : > { %v9270_v23 = vand.u32 4294901760, %v7478_v3  ;;  %v9273_v19 = vsub.f32 %v7474_v13, %v9256_v41  ;;  %v10313_v53 = vand.u32 4294901760, %v9299_v24 }
 0x379   : > { %v9280_v7 = vpop.f32.mrf.mxu1  ;;  %v9282_v6 = vpop.f32.mrf.mxu0  ;;  %10304 = vst [vmem:[#allocation18_spill] sm:$0xff] %v9284_v35  ;;  %v9330_v13 = vsub.f32 %v7476_v62, %v9284_v35  ;;  %v4790_v62 = vsub.f32 %v9268_v42, %v9307_v55  ;;  %v4871_v42 = vsub.f32 %v9289_v0, %v10312_v18  ;;  %v10315_v18 = vand.u32 4294901760, %v9310_v4 }
 0x37a   : > { %4728 = vmatprep.subr.mxu0 %v9270_v23  ;;  %v9294_v9 = vsub.f32 %v7478_v3, %v9270_v23  ;;  %v10168_v25 = vand.u32 4294901760, %v9273_v19  ;;  %v4859_v3 = vsub.f32 %v9261_v45, %v10172_v37  ;;  %v4865_v37 = vsub.f32 %v9276_v26, %v10309_v32 }
 0x37b   : > { %v9301_v20 = vpop.f32.mrf.mxu1  ;;  %v9303_v22 = vpop.f32.mrf.mxu0  ;;  %4730 = vmatpush1.msra.mxu0 %v9256_v41  ;;  %v4877_v52 = vsub.f32 %v9299_v24, %v10313_v53  ;;  %v9387_v53 = vand.u32 4294901760, %v9358_v39 }
 0x37c   : > { %4732 = vmatprep.subr.mxu0 %v9238_v2  ;;  %v10169_v5 = vand.u32 4294901760, %v9294_v9  ;;  %v4853_v30 = vsub.f32 %v9273_v19, %v10168_v25  ;;  %v4860_v32 = vand.u32 4294901760, %v4859_v3  ;;  %v4801_v3 = vsub.f32 %v9316_v28, %v9355_v56 }
 0x37d   : > { %v9320_v16 = vpop.f32.mrf.mxu0  ;;  %v9322_v51 = vpop.f32.mrf.mxu1  ;;  %4734 = vmatpush1.msra.mxu0 %v9244_v49 }
 0x37e   : > { %4736 = vmatprep.subr.mxu0 %v9248_v8  ;;  %v4847_v10 = vsub.f32 %v9294_v9, %v10169_v5  ;;  %v4854_v55 = vand.u32 4294901760, %v4853_v30  ;;  %v9376_v30 = vand.u32 4294901760, %v4790_v62  ;;  %v10317_v62 = vand.u32 4294901760, %v9330_v13 }
 0x37f   : > { %v9342_v25 = vpop.f32.mrf.mxu0  ;;  %v9344_v31 = vpop.f32.mrf.mxu1  ;;  %4738 = vmatpush1.msra.mxu0 %v9258_v38 }
 0x380   : > { %4740 = vmatprep.subr.mxu0 %v9265_v59  ;;  %v4848_v5 = vand.u32 4294901760, %v4847_v10  ;;  %v4883_v10 = vsub.f32 %v9310_v4, %v10315_v18  ;;  %v4889_v18 = vsub.f32 %v9330_v13, %v10317_v62  ;;  %v4812_v62 = vsub.f32 %v9358_v39, %v9387_v53 }
 0x381   : > { %v9360_v29 = vpop.f32.mrf.mxu0  ;;  %4742 = vmatpush1.msra.mxu0 %v9284_v35 }
 0x382   : > { %10311 = vst [vmem:[#allocation24_spill] sm:$0xff] %v9360_v29  ;;  %v9367_v59 = vpop.f32.mrf.mxu1  ;;  %4781 = vmatmul.mubr.f32.vlgmr.msra.gmra.mxu0 %v9333_v43  ;;  %4849 = vmatprep.subr.mxu1 %v4848_v5  ;;  %v4866_v5 = vand.u32 4294901760, %v4865_v37  ;;  %v4878_v37 = vand.u32 4294901760, %v4877_v52  ;;  %v4884_v56 = vand.u32 4294901760, %v4883_v10  ;;  %v4890_v52 = vand.u32 4294901760, %v4889_v18 }
 0x383   : > { %v9373_v29 = vpop.f32.mrf.mxu0  ;;  %4979 = vmatprep.subr.mxu0 %v9294_v9  ;;  %4855 = vmatpush1.msra.mxu1 %v4854_v55  ;;  %v4872_v55 = vand.u32 4294901760, %v4871_v42  ;;  %v9403_v42 = vand.u32 4294901760, %v4801_v3  ;;  %v4039_v10 = vadd.f32 %v9208_v44, %v9198_v1  ;;  %v4048_v3 = vadd.f32 %v9211_v60, %v9194_v15 }
 0x384   : > { %10314 = vst [vmem:[#allocation19_spill] sm:$0xff] %v9373_v29  ;;  %v9381_v35 = vpop.f32.mrf.mxu1  ;;  %4982 = vmatpush1.msra.mxu0 %v9273_v19  ;;  %4861 = vmatprep.subr.mxu1 %v4860_v32  ;;  %v9429_v18 = vand.u32 4294901760, %v4812_v62  ;;  %v4059_v60 = vadd.f32 %v9218_v54, %v9192_v21 }
 0x385   : > { %v9389_v43 = vpop.f32.mrf.mxu0  ;;  %4985 = vmatprep.subr.mxu0 %v9261_v45  ;;  %4786 = vmatprep.mubr.f32.mxu0 %v10229_v61 }
 0x386   : > { %10316 = vst [vmem:[#allocation13_spill] sm:$0xff] %v9389_v43  ;;  %v9396_v29 = vpop.f32.mrf.mxu1  ;;  %4867 = vmatpush1.msra.mxu1 %v4866_v5  ;;  %4988 = vmatpush1.msra.mxu0 %v9276_v26  ;;  %v4037_v5 = vadd.f32 %v9206_v48, %v9198_v1  ;;  %v4184_v1 = vadd.f32 %v9220_v12, %v4039_v10 }
 0x387   : > { %v4522_v32 = vpop.f32.mrf.mxu0  ;;  %4792 = vmatmul.mubr.f32.gmra.mxu0 %v9376_v30  ;;  %4873 = vmatprep.subr.mxu1 %v4872_v55  ;;  %v4189_v12 = vadd.f32 %v9228_v57, %v4048_v3  ;;  %v4196_v54 = vadd.f32 %v9246_v50, %v4059_v60  ;;  %v10319_v3 = vld [vmem:[#allocation16_spill] sm:$0xff]  ;;  %v10321_v60 = vld [vmem:[#allocation15_spill] sm:$0xff] }
 0x388   : > { %v9400_v28 = vpop.f32.mrf.mxu1  ;;  %4991 = vmatprep.subr.mxu0 %v9289_v0  ;;  %4879 = vmatpush1.msra.mxu1 %v4878_v37  ;;  %v4182_v48 = vadd.f32 %v9216_v27, %v4037_v5  ;;  %v10318_v27 = vand.u32 4294901760, %v9294_v9  ;;  %v4294_v5 = vadd.f32 %v9254_v47, %v4184_v1  ;;  %v10320_v1 = vld [vmem:[#allocation18_spill] sm:$0xff] }
 0x389   : > { %v9407_v43 = vpop.f32.mrf.mxu0  ;;  %4994 = vmatpush1.msra.mxu0 %v9299_v24  ;;  %4885 = vmatprep.subr.mxu1 %v4884_v56  ;;  %v4050_v56 = vadd.f32 %v9213_v34, %v9194_v15  ;;  %v4070_v15 = vadd.f32 %v9226_v46, %v9190_v11 }
 0x38a   : > { %v9414_v55 = vpop.f32.mrf.mxu1  ;;  %4997 = vmatprep.subr.mxu0 %v9310_v4  ;;  %4797 = vmatprep.mubr.f32.mxu0 %v10229_v61 }
 0x38b   : > { %v4529_v37 = vpop.f32.mrf.mxu0  ;;  %4891 = vmatpush1.msra.mxu1 %v4890_v52  ;;  %5000 = vmatpush1.msra.mxu0 %v9330_v13  ;;  %v4061_v52 = vadd.f32 %v9224_v17, %v9192_v21  ;;  %v4191_v62 = vadd.f32 %v9236_v33, %v4050_v56  ;;  %v4072_v21 = vadd.f32 %v9234_v14, %v9190_v11 }
 0x38c   : > { %v9425_v44 = vpop.f32.mrf.mxu1  ;;  %4803 = vmatmul.mubr.f32.gmra.mxu0 %v9403_v42  ;;  %4926 = vmatmul.mubr.f32.vlgmr.msra.gmra.mxu1 %v9222_v36  ;;  %v4292_v17 = vadd.f32 %v9242_v58, %v4182_v48  ;;  %v4400_v33 = vadd.f32 %v9344_v31, %v4294_v5  ;;  %v4203_v11 = vadd.f32 %v9280_v7, %v4070_v15 }
 0x38d   : > { %v4534_v34 = vpop.f32.mrf.mxu0  ;;  %5091 = vmatprep.subr.mxu1 %v9270_v23  ;;  %5202 = vmatprep.subr.mxu0 %v10318_v27  ;;  %v4198_v46 = vadd.f32 %v9263_v40, %v4061_v52  ;;  %v4302_v57 = vadd.f32 %v9303_v22, %v4191_v62  ;;  %v4300_v14 = vadd.f32 %v9282_v6, %v4189_v12  ;;  %v10322_v52 = vld [vmem:[#allocation24_spill] sm:$0xff]  ;;  %v10324_v27 = vand.u32 4294901760, %v9273_v19  ;;  %v10325_v12 = vld [vmem:[#allocation19_spill] sm:$0xff]  ;;  %v10328_v19 = vld [vmem:[#allocation13_spill] sm:$0xff] }
 0x38e   : > { %v9443_v10 = vpop.f32.mrf.mxu1  ;;  %5093 = vmatpush1.msra.mxu1 %v9256_v41  ;;  %4808 = vmatprep.mubr.f32.mxu0 %v10229_v61  ;;  %v4308_v58 = vadd.f32 %v9320_v16, %v4196_v54  ;;  %v4205_v50 = vadd.f32 %v9301_v20, %v4072_v21  ;;  %v4523_v22 = vadd.f32 %v4522_v32, %v4400_v33  ;;  %v10326_v21 = vand.u32 4294901760, %v9261_v45 }
 0x38f   : > { %5095 = vmatprep.subr.mxu1 %v9238_v2  ;;  %4931 = vmatprep.mubr.f32.mxu1 %v10229_v61  ;;  %v4536_v47 = vpop.f32.mrf.mxu0  ;;  %v4409_v40 = vadd.f32 %v9381_v35, %v4302_v57  ;;  %v4398_v7 = vadd.f32 %v9322_v51, %v4292_v17  ;;  %v4310_v6 = vadd.f32 %v9342_v25, %v4198_v46  ;;  %v10327_v17 = vand.u32 4294901760, %v9276_v26  ;;  %v10330_v26 = vld [vmem:[#allocation23_spill] sm:$0xff] }
 0x390   : > { %v4623_v9 = vpop.f32.mrf.mxu1  ;;  %5097 = vmatpush1.msra.mxu1 %v9244_v49  ;;  %4814 = vmatmul.mubr.f32.gmra.mxu0 %v9429_v18  ;;  %v4416_v16 = vadd.f32 %v9396_v29, %v4308_v58  ;;  %v4407_v20 = vadd.f32 %v9367_v59, %v4300_v14  ;;  %v4316_v51 = vadd.f32 %v10322_v52, %v4203_v11  ;;  %v10323_v29 = vld [vmem:[#allocation12_spill] sm:$0xff]  ;;  %v10329_v45 = vand.u32 4294901760, %v9289_v0 }
 0x391   : > { %4933 = vmatmul.mubr.f32.gmra.mxu1 %v9240_v63  ;;  %5099 = vmatprep.subr.mxu1 %v9248_v8  ;;  %v4530_v56 = vadd.f32 %v4529_v37, %v4409_v40  ;;  %v4624_v35 = vadd.f32 %v4623_v9, %v4523_v22  ;;  %v4541_v32 = vpop.f32.mrf.mxu0  ;;  %v4418_v25 = vadd.f32 %v9400_v28, %v4310_v6  ;;  %v10331_v9 = vld [vmem:[#allocation21_spill] sm:$0xff]  ;;  %v10332_v58 = vand.u32 4294901760, %v9299_v24  ;;  %v10336_v24 = vld [vmem:[#allocation14_spill] sm:$0xff] }
 0x392   : > { %v4628_v31 = vpop.f32.mrf.mxu1  ;;  %5101 = vmatpush1.msra.mxu1 %v9258_v38  ;;  %4938 = vmatprep.mubr.f32.mxu1 %v10229_v61  ;;  %v4535_v15 = vadd.f32 %v4534_v34, %v4416_v16  ;;  %v4318_v59 = vadd.f32 %v10325_v12, %v4205_v50  ;;  %v4528_v37 = vadd.f32 %v9407_v43, %v4407_v20  ;;  %v10334_v22 = vand.u32 4294901760, %v9330_v13 }
 0x393   : > { %5103 = vmatprep.subr.mxu1 %v10319_v3  ;;  %5033 = vmatprep.mubr.f32.mxu0 %v10229_v61  ;;  %v4425_v54 = vadd.f32 %v9414_v55, %v4316_v51  ;;  %v4537_v28 = vadd.f32 %v4536_v47, %v4418_v25  ;;  %v4521_v46 = vadd.f32 %v10328_v19, %v4398_v7  ;;  %7479 = vtanh.f32 %v4624_v35  ;;  %v4543_v57 = vpop.f32.mrf.mxu0 }
 0x394   : > { %v4630_v48 = vpop.f32.mrf.mxu1  ;;  %5105 = vmatpush1.msra.mxu1 %v10320_v1  ;;  %5036 = vmatmul.mubr.f32.vlgmr.msra.gmra.mxu0 %v10321_v60  ;;  %v4629_v43 = vadd.f32 %v4628_v31, %v4528_v37  ;;  %v10335_v31 = vld [vmem:[#allocation25_spill] sm:$0xff] }
 0x395   : > { %4940 = vmatmul.mubr.f32.gmra.mxu1 %v10323_v29  ;;  %5206 = vmatpush1.msra.mxu0 %v10324_v27  ;;  %v4631_v62 = vadd.f32 %v4630_v48, %v4530_v56  ;;  %v4542_v55 = vadd.f32 %v4541_v32, %v4425_v54  ;;  %v4622_v11 = vadd.f32 %v9443_v10, %v4521_v46 }
 0x396   : > { %v4635_v5 = vpop.f32.mrf.mxu1  ;;  %5317 = vmatprep.subr.mxu1 %v9270_v23  ;;  %5210 = vmatprep.subr.mxu0 %v10326_v21  ;;  %v4427_v23 = vadd.f32 %v9425_v44, %v4318_v59  ;;  %v10333_v44 = vand.u32 4294901760, %v9310_v4  ;;  %v10337_v4 = vld [vmem:[#allocation27_spill] sm:$0xff] }
 0x397   : > { %v4636_v34 = vadd.f32 %v4635_v5, %v4535_v15  ;;  %5214 = vmatpush1.msra.mxu0 %v10327_v17  ;;  %4945 = vmatprep.mubr.f32.mxu1 %v10229_v61 }
 0x398   : > { %v4637_v33 = vpop.f32.mrf.mxu1  ;;  %5041 = vmatprep.mubr.f32.mxu0 %v10229_v61  ;;  %5218 = vmatprep.subr.mxu0 %v10329_v45  ;;  %v4544_v0 = vadd.f32 %v4543_v57, %v4427_v23 }
 0x399   : > { %7481 = vtanh.f32 %v4636_v34  ;;  %v4638_v47 = vadd.f32 %v4637_v33, %v4537_v28  ;;  %4947 = vmatmul.mubr.f32.gmra.mxu1 %v10330_v26  ;;  %5044 = vmatmul.mubr.f32.gmra.mxu0 %v10331_v9 }
 0x39a   : > { %7483 = vtanh.f32 %v4631_v62  ;;  %v4642_v14 = vpop.f32.mrf.mxu1  ;;  %5222 = vmatpush1.msra.mxu0 %v10332_v58  ;;  %5049 = vmatprep.mubr.f32.mxu0 %v10229_v61 }
 0x39b   : > { %7485 = vtanh.f32 %v4638_v47  ;;  %v4643_v50 = vadd.f32 %v4642_v14, %v4542_v55  ;;  %5226 = vmatprep.subr.mxu0 %v10333_v44  ;;  %5138 = vmatprep.mubr.f32.mxu1 %v10229_v61  ;;  %v10339_v55 = vld [vmem:[#allocation20_spill] sm:$0xff] }
 0x39c   : > { %7487 = vtanh.f32 %v4629_v43  ;;  %v4644_v40 = vpop.f32.mrf.mxu1  ;;  %5230 = vmatpush1.msra.mxu0 %v10334_v22 }
 0x39d   : > { %7489 = vtanh.f32 %v4643_v50  ;;  %v4645_v10 = vadd.f32 %v4644_v40, %v4544_v0  ;;  %5052 = vmatmul.mubr.f32.gmra.mxu0 %v10335_v31  ;;  %5142 = vmatmul.mubr.f32.vlgmr.msra.gmra.mxu1 %v10336_v24 }
 0x39e   : > { %7491 = vtanh.f32 %v4622_v11  ;;  %5319 = vmatpush1.msra.mxu1 %v9256_v41  ;;  %5057 = vmatprep.mubr.f32.mxu0 %v10229_v61 }
 0x39f   : > { %7493 = vtanh.f32 %v4645_v10  ;;  %5321 = vmatprep.subr.mxu1 %v9238_v2  ;;  %5147 = vmatprep.mubr.f32.mxu1 %v10229_v61 }
 0x3a0   : > { %5323 = vmatpush1.msra.mxu1 %v9244_v49  ;;  %v7480_v41 = vpop.eup %7479  ;;  %v10338_v49 = vld [vmem:[#allocation17_spill] sm:$0xff] }
 0x3a1   : > { %5325 = vmatprep.subr.mxu1 %v9248_v8  ;;  %5060 = vmatmul.mubr.f32.gmra.mxu0 %v9358_v39  ;;  %v9544_v52 = vand.u32 4294901760, %v7480_v41 }
 0x3a2   : > { %5151 = vmatmul.mubr.f32.gmra.mxu1 %v10337_v4  ;;  %5263 = vmatprep.mubr.f32.mxu0 %v10229_v61 }
 0x3a3   : > { %5327 = vmatpush1.msra.mxu1 %v9258_v38  ;;  %5156 = vmatprep.mubr.f32.mxu1 %v10229_v61  ;;  %v9575_v54 = vsub.f32 %v7480_v41, %v9544_v52 }
 0x3a4   : > { %5329 = vmatprep.subr.mxu1 %v10319_v3 }
 0x3a5   : > { %5331 = vmatpush1.msra.mxu1 %v10320_v1  ;;  %5265 = vmatmul.mubr.f32.vlgmr.msra.gmra.mxu0 %v9222_v36  ;;  %v5572_v45 = vand.u32 4294901760, %v9575_v54 }
 0x3a6   : > { %v7482_v2 = vpop.eup %7481  ;;  %5160 = vmatmul.mubr.f32.gmra.mxu1 %v10338_v49  ;;  %5270 = vmatprep.mubr.f32.mxu0 %v10229_v61 }
 0x3a7   : > { %v7484_v8 = vpop.eup %7483  ;;  %5165 = vmatprep.mubr.f32.mxu1 %v10229_v61  ;;  %v9527_v6 = vand.u32 4294901760, %v7482_v2  ;;  %v5573_v50 = vsub.f32 %v9575_v54, %v5572_v45 }
 0x3a8   : > { %v7486_v13 = vpop.eup %7485  ;;  %v9534_v56 = vand.u32 4294901760, %v7484_v8 }
 0x3a9   : > { %v7488_v7 = vpop.eup %7487  ;;  %5272 = vmatmul.mubr.f32.gmra.mxu0 %v9240_v63  ;;  %v9525_v38 = vand.u32 4294901760, %v7486_v13  ;;  %v9550_v25 = vsub.f32 %v7482_v2, %v9527_v6  ;;  %v5574_v10 = vand.u32 4294901760, %v5573_v50 }
 0x3aa   : > { %v7490_v16 = vpop.eup %7489  ;;  %5169 = vmatmul.mubr.f32.gmra.mxu1 %v9387_v53  ;;  %5277 = vmatprep.mubr.f32.mxu0 %v10229_v61  ;;  %v9539_v48 = vand.u32 4294901760, %v7488_v7  ;;  %v9564_v37 = vsub.f32 %v7484_v8, %v9534_v56 }
 0x3ab   : > { %v7492_v3 = vpop.eup %7491  ;;  %5364 = vmatprep.mubr.f32.mxu1 %v10229_v61  ;;  %v9532_v20 = vand.u32 4294901760, %v7490_v16  ;;  %v9537_v35 = vsub.f32 %v7486_v13, %v9525_v38  ;;  %v5554_v21 = vand.u32 4294901760, %v9550_v25 }
 0x3ac   : > { %v7494_v32 = vpop.eup %7493  ;;  %v9554_v15 = vand.u32 4294901760, %v7492_v3  ;;  %v9568_v62 = vsub.f32 %v7488_v7, %v9539_v48  ;;  %v5560_v19 = vand.u32 4294901760, %v9564_v37 }
 0x3ad   : > { %5279 = vmatmul.mubr.f32.gmra.mxu0 %v10323_v29  ;;  %v9542_v1 = vand.u32 4294901760, %v7494_v32  ;;  %v9547_v51 = vsub.f32 %v7490_v16, %v9532_v20  ;;  %v5548_v59 = vand.u32 4294901760, %v9537_v35  ;;  %v5555_v33 = vsub.f32 %v9550_v25, %v5554_v21 }
 0x3ae   : > { %5366 = vmatmul.mubr.f32.vlgmr.msra.gmra.mxu1 %v9222_v36  ;;  %5284 = vmatprep.mubr.f32.mxu0 %v10229_v61  ;;  %v9590_v46 = vsub.f32 %v7492_v3, %v9554_v15  ;;  %v5566_v43 = vand.u32 4294901760, %v9568_v62  ;;  %v5561_v11 = vsub.f32 %v9564_v37, %v5560_v19 }
 0x3af   : > { %5418 = vmatprep.subr.mxu0 %v9542_v1  ;;  %5371 = vmatprep.mubr.f32.mxu1 %v10229_v61  ;;  %v9559_v27 = vsub.f32 %v7494_v32, %v9542_v1  ;;  %v5542_v12 = vand.u32 4294901760, %v9547_v51  ;;  %v5549_v17 = vsub.f32 %v9537_v35, %v5548_v59  ;;  %v5556_v0 = vand.u32 4294901760, %v5555_v33 }
 0x3b0   : > { %5420 = vmatpush1.msra.mxu0 %v9532_v20  ;;  %v5578_v14 = vand.u32 4294901760, %v9590_v46  ;;  %v5567_v58 = vsub.f32 %v9568_v62, %v5566_v43  ;;  %v5562_v44 = vand.u32 4294901760, %v5561_v11 }
 0x3b1   : > { %5422 = vmatprep.subr.mxu0 %v9525_v38  ;;  %5286 = vmatmul.mubr.f32.gmra.mxu0 %v10330_v26  ;;  %v5536_v5 = vand.u32 4294901760, %v9559_v27  ;;  %v5543_v28 = vsub.f32 %v9547_v51, %v5542_v12  ;;  %v5550_v47 = vand.u32 4294901760, %v5549_v17 }
 0x3b2   : > { %5424 = vmatpush1.msra.mxu0 %v9527_v6  ;;  %5373 = vmatmul.mubr.f32.gmra.mxu1 %v9240_v63  ;;  %v5579_v40 = vsub.f32 %v9590_v46, %v5578_v14  ;;  %v5568_v22 = vand.u32 4294901760, %v5567_v58 }
 0x3b3   : > { %5426 = vmatprep.subr.mxu0 %v9534_v56  ;;  %5378 = vmatprep.mubr.f32.mxu1 %v10229_v61  ;;  %v5537_v34 = vsub.f32 %v9559_v27, %v5536_v5  ;;  %v5544_v23 = vand.u32 4294901760, %v5543_v28 }
 0x3b4   : > { %5428 = vmatpush1.msra.mxu0 %v9539_v48  ;;  %5465 = vmatprep.mubr.f32.mxu0 %v10229_v61  ;;  %v5580_v41 = vand.u32 4294901760, %v5579_v40 }
 0x3b5   : > { %5430 = vmatprep.subr.mxu0 %v9544_v52  ;;  %v5538_v57 = vand.u32 4294901760, %v5537_v34 }
 0x3b6   : > { %5432 = vmatpush1.msra.mxu0 %v9554_v15  ;;  %5380 = vmatmul.mubr.f32.gmra.mxu1 %v10323_v29 }
 0x3b7   : > { %5471 = vmatmul.mubr.f32.vlgmr.msra.gmra.mxu0 %v10339_v55  ;;  %5539 = vmatprep.subr.mxu1 %v5538_v57 }
 0x3b8   : > { %5669 = vmatprep.subr.mxu0 %v9559_v27  ;;  %5545 = vmatpush1.msra.mxu1 %v5544_v23 }
 0x3b9   : > { %5672 = vmatpush1.msra.mxu0 %v9547_v51  ;;  %5551 = vmatprep.subr.mxu1 %v5550_v47 }
 0x3ba   : > { %5675 = vmatprep.subr.mxu0 %v9537_v35  ;;  %5385 = vmatprep.mubr.f32.mxu1 %v10229_v61 }
 0x3bb   : > { %5476 = vmatprep.mubr.f32.mxu0 %v10229_v61  ;;  %5557 = vmatpush1.msra.mxu1 %v5556_v0 }
 0x3bc   : > { %5678 = vmatpush1.msra.mxu0 %v9550_v25  ;;  %5387 = vmatmul.mubr.f32.gmra.mxu1 %v10330_v26 }
 0x3bd   : > { %5482 = vmatmul.mubr.f32.gmra.mxu0 %v9376_v30  ;;  %5563 = vmatprep.subr.mxu1 %v5562_v44 }
 0x3be   : > { %5681 = vmatprep.subr.mxu0 %v9564_v37  ;;  %5569 = vmatpush1.msra.mxu1 %v5568_v22 }
 0x3bf   : > { %5684 = vmatpush1.msra.mxu0 %v9568_v62  ;;  %5575 = vmatprep.subr.mxu1 %v5574_v10 }
 0x3c0   : > { %5687 = vmatprep.subr.mxu0 %v9575_v54  ;;  %5487 = vmatprep.mubr.f32.mxu0 %v10229_v61 }
 0x3c1   : > { %5581 = vmatpush1.msra.mxu1 %v5580_v41  ;;  %5614 = vmatprep.mubr.f32.mxu1 %v10229_v61 }
 0x3c2   : > { %5690 = vmatpush1.msra.mxu0 %v9590_v46  ;;  %5616 = vmatmul.mubr.f32.vlgmr.msra.gmra.mxu1 %v9222_v36 }
 0x3c3   : > { %5493 = vmatmul.mubr.f32.gmra.mxu0 %v9403_v42  ;;  %5781 = vmatprep.subr.mxu1 %v9542_v1 }
 0x3c4   : > { %5892 = vmatprep.subr.mxu0 %v5536_v5  ;;  %5783 = vmatpush1.msra.mxu1 %v9532_v20 }
 0x3c5   : > { %5785 = vmatprep.subr.mxu1 %v9525_v38  ;;  %5498 = vmatprep.mubr.f32.mxu0 %v10229_v61 }
 0x3c6   : > { %5621 = vmatprep.mubr.f32.mxu1 %v10229_v61  ;;  %5787 = vmatpush1.msra.mxu1 %v9527_v6 }
 0x3c7   : > { %5504 = vmatmul.mubr.f32.gmra.mxu0 %v9429_v18  ;;  %5623 = vmatmul.mubr.f32.gmra.mxu1 %v9240_v63 }
 0x3c8   : > { %5789 = vmatprep.subr.mxu1 %v9534_v56  ;;  %5628 = vmatprep.mubr.f32.mxu1 %v10229_v61 }
 0x3c9   : > { %5791 = vmatpush1.msra.mxu1 %v9539_v48  ;;  %5723 = vmatprep.mubr.f32.mxu0 %v10229_v61 }
 0x3ca   : > { %5793 = vmatprep.subr.mxu1 %v9544_v52 }
 0x3cb   : > { %5795 = vmatpush1.msra.mxu1 %v9554_v15  ;;  %5726 = vmatmul.mubr.f32.vlgmr.msra.gmra.mxu0 %v10321_v60 }
 0x3cc   : > { %5630 = vmatmul.mubr.f32.gmra.mxu1 %v10323_v29  ;;  %5896 = vmatpush1.msra.mxu0 %v5542_v12 }
 0x3cd   : > { %6007 = vmatprep.subr.mxu1 %v9542_v1  ;;  %5900 = vmatprep.subr.mxu0 %v5548_v59 }
 0x3ce   : > { %5904 = vmatpush1.msra.mxu0 %v5554_v21  ;;  %5635 = vmatprep.mubr.f32.mxu1 %v10229_v61 }
 0x3cf   : > { %5731 = vmatprep.mubr.f32.mxu0 %v10229_v61  ;;  %5908 = vmatprep.subr.mxu0 %v5560_v19 }
 0x3d0   : > { %5637 = vmatmul.mubr.f32.gmra.mxu1 %v10330_v26  ;;  %5734 = vmatmul.mubr.f32.gmra.mxu0 %v10331_v9 }
 0x3d1   : > { %5912 = vmatpush1.msra.mxu0 %v5566_v43  ;;  %5739 = vmatprep.mubr.f32.mxu0 %v10229_v61 }
 0x3d2   : > { %5916 = vmatprep.subr.mxu0 %v5572_v45  ;;  %5828 = vmatprep.mubr.f32.mxu1 %v10229_v61 }
 0x3d3   : > { %5920 = vmatpush1.msra.mxu0 %v5578_v14 }
 0x3d4   : > { %5742 = vmatmul.mubr.f32.gmra.mxu0 %v10335_v31  ;;  %5832 = vmatmul.mubr.f32.vlgmr.msra.gmra.mxu1 %v10336_v24 }
 0x3d5   : > { %6009 = vmatpush1.msra.mxu1 %v9532_v20  ;;  %5747 = vmatprep.mubr.f32.mxu0 %v10229_v61 }
 0x3d6   : > { %6011 = vmatprep.subr.mxu1 %v9525_v38  ;;  %5837 = vmatprep.mubr.f32.mxu1 %v10229_v61 }
 0x3d7   : > { %6013 = vmatpush1.msra.mxu1 %v9527_v6 }
 0x3d8   : > { %6015 = vmatprep.subr.mxu1 %v9534_v56  ;;  %5750 = vmatmul.mubr.f32.gmra.mxu0 %v9358_v39 }
 0x3d9   : > { %5841 = vmatmul.mubr.f32.gmra.mxu1 %v10337_v4  ;;  %5953 = vmatprep.mubr.f32.mxu0 %v10229_v61 }
 0x3da   : > { %6017 = vmatpush1.msra.mxu1 %v9539_v48  ;;  %5846 = vmatprep.mubr.f32.mxu1 %v10229_v61  ;;  %v9700_v48 = vpop.permute.xlu0 %4688 }
 0x3db   : > { %6019 = vmatprep.subr.mxu1 %v9544_v52 }
 0x3dc   : > { %6021 = vmatpush1.msra.mxu1 %v9554_v15  ;;  %5955 = vmatmul.mubr.f32.vlgmr.msra.gmra.mxu0 %v9222_v36  ;;  %v9702_v15 = vpop.permute.xlu1 %4683 }
 0x3dd   : > { %5850 = vmatmul.mubr.f32.gmra.mxu1 %v10338_v49  ;;  %5960 = vmatprep.mubr.f32.mxu0 %v10229_v61 }
 0x3de   : > { %5855 = vmatprep.mubr.f32.mxu1 %v10229_v61  ;;  %v9704_v59 = vpop.permute.xlu0 %4678 }
 0x3e0   : > { %5962 = vmatmul.mubr.f32.gmra.mxu0 %v9240_v63  ;;  %v9708_v17 = vpop.permute.xlu1 %4673 }
 0x3e1   : > { %5859 = vmatmul.mubr.f32.gmra.mxu1 %v9387_v53  ;;  %5967 = vmatprep.mubr.f32.mxu0 %v10229_v61 }
 0x3e2   : > { %6054 = vmatprep.mubr.f32.mxu1 %v10229_v61 }
 0x3e4   : > { %5969 = vmatmul.mubr.f32.gmra.mxu0 %v10323_v29 }
 0x3e5   : > { %6056 = vmatmul.mubr.f32.vlgmr.msra.gmra.mxu1 %v9222_v36  ;;  %5974 = vmatprep.mubr.f32.mxu0 %v10229_v61 }
 0x3e6   : > { %6061 = vmatprep.mubr.f32.mxu1 %v10229_v61 }
 0x3e8   : > { %5976 = vmatmul.mubr.f32.gmra.mxu0 %v10330_v26 }
 0x3e9   : > { %6063 = vmatmul.mubr.f32.gmra.mxu1 %v9240_v63  ;;  %6181 = vmatprep.mubr.f32.mxu0 %v10229_v61 }
 0x3ea   : > { %6068 = vmatprep.mubr.f32.mxu1 %v10229_v61 }
 0x3ed   : > { %6070 = vmatmul.mubr.f32.gmra.mxu1 %v10323_v29 }
 0x3ee   : > { %6075 = vmatprep.mubr.f32.mxu1 %v10229_v61 }
 0x3f1   : > { %6077 = vmatmul.mubr.f32.gmra.mxu1 %v10330_v26 }
 0x3f2   : > { %6297 = vmatprep.mubr.f32.mxu1 %v10229_v61 }
 0x442   : > { %v4782_v36 = vpop.f32.mrf.mxu0 }
 0x443   : > { %v4783_v55 = vadd.f32 %v4782_v36, %v9708_v17 }
 0x444   : > { %v4784_v39 = vpop.f32.mrf.mxu0 }
 0x445   : > { %v4785_v43 = vadd.f32 %v4784_v39, %v9708_v17 }
 0x447   : > { %v4793_v30 = vpop.f32.mrf.mxu0 }
 0x448   : > { %v4794_v19 = vadd.f32 %v4793_v30, %v9704_v59 }
 0x449   : > { %v4795_v53 = vpop.f32.mrf.mxu0 }
 0x44a   : > { %v4796_v62 = vadd.f32 %v4795_v53, %v9704_v59 }
 0x44c   : > { %v4804_v42 = vpop.f32.mrf.mxu0  ;;  %v4927_v18 = vpop.f32.mrf.mxu1 }
 0x44d   : > { %v4805_v54 = vadd.f32 %v4804_v42, %v9702_v15  ;;  %v4928_v40 = vadd.f32 %v4927_v18, %v4783_v55 }
 0x44e   : > { %v4806_v60 = vpop.f32.mrf.mxu0  ;;  %v4929_v63 = vpop.f32.mrf.mxu1 }
 0x44f   : > { %v4807_v57 = vadd.f32 %v4806_v60, %v9702_v15  ;;  %v4930_v14 = vadd.f32 %v4929_v63, %v4785_v43 }
 0x450   : > { %v4815_v9 = vpop.f32.mrf.mxu0 }
 0x451   : > { %v4934_v31 = vpop.f32.mrf.mxu1  ;;  %v4816_v22 = vadd.f32 %v4815_v9, %v9700_v48 }
 0x452   : > { %v4817_v24 = vpop.f32.mrf.mxu0  ;;  %v4935_v47 = vadd.f32 %v4934_v31, %v4794_v19 }
 0x453   : > { %v4936_v4 = vpop.f32.mrf.mxu1 }
 0x454   : > { %v5037_v2 = vpop.f32.mrf.mxu0  ;;  %v4937_v28 = vadd.f32 %v4936_v4, %v4796_v62  ;;  %v4818_v4 = vadd.f32 %v4817_v24, %v9700_v48 }
 0x455   : > { %v4941_v29 = vpop.f32.mrf.mxu1  ;;  %v5038_v36 = vadd.f32 %v5037_v2, %v4928_v40 }
 0x456   : > { %v5039_v49 = vpop.f32.mrf.mxu0  ;;  %v4942_v33 = vadd.f32 %v4941_v29, %v4805_v54 }
 0x457   : > { %v4943_v8 = vpop.f32.mrf.mxu1  ;;  %v5040_v39 = vadd.f32 %v5039_v49, %v4930_v14 }
 0x458   : > { %v4944_v58 = vadd.f32 %v4943_v8, %v4807_v57 }
 0x459   : > { %v4948_v13 = vpop.f32.mrf.mxu1  ;;  %v5045_v26 = vpop.f32.mrf.mxu0 }
 0x45a   : > { %v5046_v10 = vadd.f32 %v5045_v26, %v4935_v47  ;;  %v4949_v31 = vadd.f32 %v4948_v13, %v4816_v22 }
 0x45b   : > { %v4950_v7 = vpop.f32.mrf.mxu1  ;;  %v5047_v38 = vpop.f32.mrf.mxu0 }
 0x45c   : > { %v5048_v45 = vadd.f32 %v5047_v38, %v4937_v28  ;;  %v4951_v18 = vadd.f32 %v4950_v7, %v4818_v4 }
 0x45d   : > { %v5053_v6 = vpop.f32.mrf.mxu0  ;;  %v5143_v16 = vpop.f32.mrf.mxu1 }
 0x45e   : > { %v5054_v0 = vadd.f32 %v5053_v6, %v4942_v33  ;;  %v5144_v62 = vadd.f32 %v5143_v16, %v5038_v36 }
 0x45f   : > { %v5055_v3 = vpop.f32.mrf.mxu0  ;;  %v5145_v20 = vpop.f32.mrf.mxu1 }
 0x460   : > { %v5056_v30 = vadd.f32 %v5055_v3, %v4944_v58  ;;  %v5146_v8 = vadd.f32 %v5145_v20, %v5040_v39 }
 0x461   : > { %v5061_v56 = vpop.f32.mrf.mxu0 }
 0x462   : > { %v5152_v35 = vpop.f32.mrf.mxu1  ;;  %v5062_v54 = vadd.f32 %v5061_v56, %v4949_v31 }
 0x463   : > { %v5063_v32 = vpop.f32.mrf.mxu0  ;;  %v5153_v29 = vadd.f32 %v5152_v35, %v5046_v10 }
 0x464   : > { %v5154_v1 = vpop.f32.mrf.mxu1  ;;  %v5064_v28 = vadd.f32 %v5063_v32, %v4951_v18 }
 0x465   : > { %v5266_v52 = vpop.f32.mrf.mxu0  ;;  %v5155_v50 = vadd.f32 %v5154_v1, %v5048_v45 }
 0x466   : > { %v5161_v51 = vpop.f32.mrf.mxu1  ;;  %v5267_v24 = vadd.f32 %v5266_v52, %v5144_v62 }
 0x467   : > { %v5268_v25 = vpop.f32.mrf.mxu0  ;;  %v5162_v53 = vadd.f32 %v5161_v51, %v5054_v0 }
 0x468   : > { %v5163_v27 = vpop.f32.mrf.mxu1  ;;  %v5269_v49 = vadd.f32 %v5268_v25, %v5146_v8 }
 0x469   : > { %v5273_v12 = vpop.f32.mrf.mxu0  ;;  %v5164_v38 = vadd.f32 %v5163_v27, %v5056_v30 }
 0x46a   : > { %v5170_v37 = vpop.f32.mrf.mxu1  ;;  %v5274_v9 = vadd.f32 %v5273_v12, %v5153_v29 }
 0x46b   : > { %v5275_v5 = vpop.f32.mrf.mxu0  ;;  %v5171_v35 = vadd.f32 %v5170_v37, %v5062_v54  ;;  %v6099_v37 = vld [vmem:[%s10109_s9] sm:$0x7] }
 0x46c   : > { %v5172_v21 = vpop.f32.mrf.mxu1  ;;  %v5276_v42 = vadd.f32 %v5275_v5, %v5155_v50 }
 0x46d   : > { %v5280_v34 = vpop.f32.mrf.mxu0  ;;  %v5173_v16 = vadd.f32 %v5172_v21, %v5064_v28  ;;  %v6107_v21 = vsel %vm1818_vm2, %v6099_v37, 0 }
 0x46e   : > { %v5367_v46 = vpop.f32.mrf.mxu1  ;;  %v5281_v6 = vadd.f32 %v5280_v34, %v5162_v53 }
 0x46f   : > { %v5282_v23 = vpop.f32.mrf.mxu0  ;;  %v5368_v7 = vadd.f32 %v5367_v46, %v5267_v24 }
 0x470   : > { %v5369_v11 = vpop.f32.mrf.mxu1  ;;  %v5283_v3 = vadd.f32 %v5282_v23, %v5164_v38  ;;  %v9734_v23 = vand.u32 4294901760, %v6107_v21 }
 0x471   : > { %v5287_v44 = vpop.f32.mrf.mxu0  ;;  %v5370_v19 = vadd.f32 %v5369_v11, %v5269_v49 }
 0x472   : > { %v5374_v41 = vpop.f32.mrf.mxu1  ;;  %v5288_v12 = vadd.f32 %v5287_v44, %v5171_v35  ;;  %v9743_v50 = vsub.f32 %v6107_v21, %v9734_v23 }
 0x473   : > { %v5289_v60 = vpop.f32.mrf.mxu0  ;;  %v5375_v2 = vadd.f32 %v5374_v41, %v5274_v9 }
 0x474   : > { %v5376_v63 = vpop.f32.mrf.mxu1  ;;  %v5290_v25 = vadd.f32 %v5289_v60, %v5173_v16  ;;  %v9762_v31 = vand.u32 4294901760, %v9743_v50 }
 0x475   : > { %v5377_v1 = vadd.f32 %v5376_v63, %v5276_v42 }
 0x476   : > { %v5381_v26 = vpop.f32.mrf.mxu1  ;;  %10340 = vst [vmem:[#allocation22_spill] sm:$0xff] %v9762_v31 }
 0x477   : > { %v5382_v51 = vadd.f32 %v5381_v26, %v5281_v6  ;;  %v9716_v5 = vpop.f32.mrf.mxu0  ;;  %7495 = vtanh.f32 %v5377_v1 }
 0x478   : > { %v5383_v13 = vpop.f32.mrf.mxu1 }
 0x479   : > { %v5384_v20 = vadd.f32 %v5383_v13, %v5283_v3  ;;  %v9718_v27 = vpop.f32.mrf.mxu0  ;;  %7497 = vtanh.f32 %v5382_v51  ;;  %v6185_v51 = vsub.f32 %v9743_v50, %v9762_v31 }
 0x47b   : > { %7499 = vtanh.f32 %v5384_v20 }
 0x47c   : > { %7501 = vtanh.f32 %v5375_v2  ;;  %v5388_v56 = vpop.f32.mrf.mxu1 }
 0x47d   : > { %7503 = vtanh.f32 %v5370_v19  ;;  %v5389_v34 = vadd.f32 %v5388_v56, %v5288_v12  ;;  %v9720_v32 = vpop.f32.mrf.mxu0 }
 0x47e   : > { %7505 = vtanh.f32 %v5368_v7  ;;  %v5390_v52 = vpop.f32.mrf.mxu1 }
 0x47f   : > { %7507 = vtanh.f32 %v5389_v34  ;;  %v5391_v43 = vadd.f32 %v5390_v52, %v5290_v25  ;;  %v9725_v46 = vpop.f32.mrf.mxu0 }
 0x481   : > { %7509 = vtanh.f32 %v5391_v43  ;;  %v9828_v43 = vand.u32 4294901760, %v6185_v51 }
 0x482   : > { %v9728_v57 = vpop.f32.mrf.mxu1 }
 0x483   : > { %v9730_v33 = vpop.f32.mrf.mxu0  ;;  %10341 = vst [vmem:[#allocation26_spill] sm:$0xff] %v9828_v43 }
 0x484   : > { %v9732_v45 = vpop.f32.mrf.mxu1  ;;  %v7496_v47 = vpop.eup %7495 }
 0x485   : > { %v9736_v55 = vpop.f32.mrf.mxu0  ;;  %v9755_v42 = vand.u32 4294901760, %v7496_v47 }
 0x486   : > { %v7498_v11 = vpop.eup %7497 }
 0x487   : > { %v9738_v14 = vpop.f32.mrf.mxu0  ;;  %v9740_v58 = vpop.f32.mrf.mxu1  ;;  %v9751_v39 = vand.u32 4294901760, %v7498_v11  ;;  %v9786_v54 = vsub.f32 %v7496_v47, %v9755_v42 }
 0x488   : > { %v7500_v0 = vpop.eup %7499 }
 0x489   : > { %v7502_v44 = vpop.eup %7501  ;;  %v9745_v40 = vpop.f32.mrf.mxu0  ;;  %v9749_v10 = vand.u32 4294901760, %v7500_v0  ;;  %v9778_v62 = vsub.f32 %v7498_v11, %v9751_v39  ;;  %v10196_v56 = vand.u32 4294901760, %v9786_v54 }
 0x48a   : > { %v9747_v22 = vpop.f32.mrf.mxu1  ;;  %v7504_v41 = vpop.eup %7503  ;;  %v9759_v36 = vand.u32 4294901760, %v7502_v44 }
 0x48b   : > { %v7506_v30 = vpop.eup %7505  ;;  %v9753_v53 = vpop.f32.mrf.mxu0  ;;  %v9768_v8 = vand.u32 4294901760, %v7504_v41  ;;  %v9771_v38 = vsub.f32 %v7500_v0, %v9749_v10  ;;  %v10195_v7 = vand.u32 4294901760, %v9778_v62 }
 0x48c   : > { %v7508_v60 = vpop.eup %7507  ;;  %v9757_v4 = vpop.f32.mrf.mxu1  ;;  %v9775_v18 = vand.u32 4294901760, %v7506_v30  ;;  %v9795_v28 = vsub.f32 %v7502_v44, %v9759_v36 }
 0x48d   : > { %v9764_v29 = vpop.f32.mrf.mxu0  ;;  %v9766_v63 = vand.u32 4294901760, %v7508_v60  ;;  %v10192_v13 = vand.u32 4294901760, %v9771_v38  ;;  %v9804_v35 = vsub.f32 %v7504_v41, %v9768_v8  ;;  %v6238_v41 = vsub.f32 %v9778_v62, %v10195_v7 }
 0x48e   : > { %v7510_v6 = vpop.eup %7509  ;;  %v9773_v1 = vpop.f32.mrf.mxu1  ;;  %v9813_v16 = vsub.f32 %v7506_v30, %v9775_v18  ;;  %v10197_v37 = vand.u32 4294901760, %v9795_v28 }
 0x48f   : > { %v9780_v9 = vand.u32 4294901760, %v7510_v6  ;;  %v9783_v26 = vsub.f32 %v7508_v60, %v9766_v63  ;;  %v6232_v47 = vsub.f32 %v9771_v38, %v10192_v13  ;;  %v10200_v11 = vand.u32 4294901760, %v9804_v35 }
 0x490   : > { %v9788_v49 = vpop.f32.mrf.mxu1  ;;  %v9790_v3 = vpop.f32.mrf.mxu0  ;;  %v10202_v30 = vand.u32 4294901760, %v9813_v16 }
 0x491   : > { %6134 = vmatprep.subr.mxu0 %v9780_v9  ;;  %v9799_v24 = vsub.f32 %v7510_v6, %v9780_v9  ;;  %v10193_v2 = vand.u32 4294901760, %v9783_v26  ;;  %v6244_v6 = vsub.f32 %v9786_v54, %v10196_v56  ;;  %v6233_v7 = vand.u32 4294901760, %v6232_v47 }
 0x492   : > { %v9806_v19 = vpop.f32.mrf.mxu1  ;;  %v9808_v20 = vpop.f32.mrf.mxu0  ;;  %6136 = vmatpush1.msra.mxu0 %v9766_v63 }
 0x493   : > { %6138 = vmatprep.subr.mxu0 %v9749_v10  ;;  %v10194_v12 = vand.u32 4294901760, %v9799_v24  ;;  %v6226_v52 = vsub.f32 %v9783_v26, %v10193_v2  ;;  %v6250_v2 = vsub.f32 %v9795_v28, %v10197_v37  ;;  %v6262_v37 = vsub.f32 %v9813_v16, %v10202_v30 }
 0x494   : > { %v9818_v25 = vpop.f32.mrf.mxu0  ;;  %v9820_v34 = vpop.f32.mrf.mxu1  ;;  %6140 = vmatpush1.msra.mxu0 %v9751_v39  ;;  %v6245_v47 = vand.u32 4294901760, %v6244_v6  ;;  %v5473_v6 = vadd.f32 %v9716_v5, %v9708_v17 }
 0x495   : > { %6142 = vmatprep.subr.mxu0 %v9755_v42  ;;  %v6220_v21 = vsub.f32 %v9799_v24, %v10194_v12  ;;  %v6227_v13 = vand.u32 4294901760, %v6226_v52  ;;  %v6239_v52 = vand.u32 4294901760, %v6238_v41  ;;  %v6263_v30 = vand.u32 4294901760, %v6262_v37 }
 0x496   : > { %v9837_v0 = vpop.f32.mrf.mxu0  ;;  %v9839_v44 = vpop.f32.mrf.mxu1  ;;  %6144 = vmatpush1.msra.mxu0 %v9759_v36  ;;  %v5484_v37 = vadd.f32 %v9720_v32, %v9704_v59  ;;  %v5618_v5 = vadd.f32 %v9728_v57, %v5473_v6  ;;  %v10343_v32 = vand.u32 4294901760, %v9799_v24  ;;  %v10344_v57 = vand.u32 4294901760, %v9783_v26 }
 0x497   : > { %6146 = vmatprep.subr.mxu0 %v9768_v8  ;;  %v6221_v60 = vand.u32 4294901760, %v6220_v21  ;;  %v6256_v21 = vsub.f32 %v9804_v35, %v10200_v11  ;;  %v6251_v11 = vand.u32 4294901760, %v6250_v2 }
 0x498   : > { %v9850_v51 = vpop.f32.mrf.mxu0  ;;  %6148 = vmatpush1.msra.mxu0 %v9775_v18 }
 0x499   : > { %v9856_v12 = vpop.f32.mrf.mxu1  ;;  %6187 = vmatmul.mubr.f32.vlgmr.msra.gmra.mxu0 %v9828_v43  ;;  %6222 = vmatprep.subr.mxu1 %v6221_v60 }
 0x49a   : > { %v9862_v56 = vpop.f32.mrf.mxu0  ;;  %6331 = vmatprep.subr.mxu0 %v9799_v24  ;;  %6228 = vmatpush1.msra.mxu1 %v6227_v13  ;;  %v6257_v13 = vand.u32 4294901760, %v6256_v21  ;;  %v5728_v24 = vadd.f32 %v9753_v53, %v5618_v5 }
 0x49b   : > { %10342 = vst [vmem:[#allocation16_spill] sm:$0xff] %v9862_v56  ;;  %v9868_v31 = vpop.f32.mrf.mxu1  ;;  %6334 = vmatpush1.msra.mxu0 %v9783_v26  ;;  %6234 = vmatprep.subr.mxu1 %v6233_v7  ;;  %v5475_v7 = vadd.f32 %v9718_v27, %v9708_v17  ;;  %v5495_v17 = vadd.f32 %v9730_v33, %v9702_v15 }
 0x49c   : > { %v9871_v60 = vpop.f32.mrf.mxu0  ;;  %6337 = vmatprep.subr.mxu0 %v9771_v38  ;;  %6240 = vmatpush1.msra.mxu1 %v6239_v52 }
 0x49d   : > { %v9874_v43 = vpop.f32.mrf.mxu1  ;;  %6340 = vmatpush1.msra.mxu0 %v9778_v62  ;;  %6246 = vmatprep.subr.mxu1 %v6245_v47  ;;  %v5620_v27 = vadd.f32 %v9732_v45, %v5475_v7 }
 0x49e   : > { %v5958_v41 = vpop.f32.mrf.mxu0  ;;  %6343 = vmatprep.subr.mxu0 %v9786_v54  ;;  %6252 = vmatpush1.msra.mxu1 %v6251_v11  ;;  %v5486_v11 = vadd.f32 %v9725_v46, %v9704_v59  ;;  %v5506_v59 = vadd.f32 %v9738_v14, %v9700_v48  ;;  %v10345_v14 = vand.u32 4294901760, %v9771_v38 }
 0x49f   : > { %v9878_v56 = vpop.f32.mrf.mxu1  ;;  %6346 = vmatpush1.msra.mxu0 %v9795_v28  ;;  %6258 = vmatprep.subr.mxu1 %v6257_v13  ;;  %v5730_v45 = vadd.f32 %v9764_v29, %v5620_v27  ;;  %v10350_v27 = vand.u32 4294901760, %v9813_v16 }
 0x4a0   : > { %v5963_v2 = vpop.f32.mrf.mxu0  ;;  %6349 = vmatprep.subr.mxu0 %v9804_v35  ;;  %6264 = vmatpush1.msra.mxu1 %v6263_v30  ;;  %v5497_v30 = vadd.f32 %v9736_v55, %v9702_v15  ;;  %v5627_v46 = vadd.f32 %v9747_v22, %v5486_v11  ;;  %v5625_v15 = vadd.f32 %v9740_v58, %v5484_v37  ;;  %v10346_v58 = vand.u32 4294901760, %v9778_v62 }
 0x4a1   : > { %v9886_v21 = vpop.f32.mrf.mxu1  ;;  %6352 = vmatpush1.msra.mxu0 %v9813_v16  ;;  %6299 = vmatmul.mubr.f32.vlgmr.msra.gmra.mxu1 %v9734_v23  ;;  %v5508_v55 = vadd.f32 %v9745_v40, %v9700_v48  ;;  %v5632_v22 = vadd.f32 %v9757_v4, %v5495_v17  ;;  %v5836_v26 = vadd.f32 %v9839_v44, %v5730_v45  ;;  %v10347_v4 = vand.u32 4294901760, %v9786_v54 }
 0x4a2   : > { %v5965_v52 = vpop.f32.mrf.mxu0  ;;  %6385 = vmatprep.mubr.f32.mxu0 %v10229_v61  ;;  %6419 = vmatprep.subr.mxu1 %v9780_v9  ;;  %v5738_v29 = vadd.f32 %v9808_v20, %v5627_v46  ;;  %v5634_v48 = vadd.f32 %v9773_v1, %v5497_v30  ;;  %v5639_v40 = vadd.f32 %v9788_v49, %v5506_v59  ;;  %v10348_v1 = vand.u32 4294901760, %v9795_v28  ;;  %v10352_v5 = vld [vmem:[#allocation16_spill] sm:$0xff] }
 0x4a3   : > { %v9902_v47 = vpop.f32.mrf.mxu1  ;;  %6503 = vmatprep.subr.mxu0 %v10343_v32  ;;  %6388 = vmatmul.mubr.f32.vlgmr.msra.gmra.mxu0 %v9743_v50  ;;  %v5736_v53 = vadd.f32 %v9790_v3, %v5625_v15  ;;  %v5744_v20 = vadd.f32 %v9818_v25, %v5632_v22  ;;  %v5959_v6 = vadd.f32 %v5958_v41, %v5836_v26  ;;  %v10349_v54 = vand.u32 4294901760, %v9804_v35  ;;  %v10351_v35 = vld [vmem:[#allocation22_spill] sm:$0xff] }
 0x4a4   : > { %v5970_v33 = vpop.f32.mrf.mxu0  ;;  %6421 = vmatpush1.msra.mxu1 %v9766_v63  ;;  %6507 = vmatpush1.msra.mxu0 %v10344_v57  ;;  %v5845_v44 = vadd.f32 %v9868_v31, %v5738_v29  ;;  %v5641_v62 = vadd.f32 %v9806_v19, %v5508_v55  ;;  %v5746_v49 = vadd.f32 %v9837_v0, %v5634_v48 }
 0x4a5   : > { %v6057_v13 = vpop.f32.mrf.mxu1  ;;  %6423 = vmatprep.subr.mxu1 %v9749_v10  ;;  %6511 = vmatprep.subr.mxu0 %v10345_v14  ;;  %v5843_v3 = vadd.f32 %v9856_v12, %v5736_v53  ;;  %v5852_v31 = vadd.f32 %v9874_v43, %v5744_v20  ;;  %v5834_v28 = vadd.f32 %v9820_v34, %v5728_v24 }
 0x4a6   : > { %6425 = vmatpush1.msra.mxu1 %v9751_v39  ;;  %6515 = vmatpush1.msra.mxu0 %v10346_v58  ;;  %v5972_v7 = vpop.f32.mrf.mxu0  ;;  %v5966_v25 = vadd.f32 %v5965_v52, %v5845_v44  ;;  %v5752_v19 = vadd.f32 %v9850_v51, %v5639_v40  ;;  %v5854_v43 = vadd.f32 %v9878_v56, %v5746_v49 }
 0x4a7   : > { %v6059_v38 = vpop.f32.mrf.mxu1  ;;  %6427 = vmatprep.subr.mxu1 %v9755_v42  ;;  %6519 = vmatprep.subr.mxu0 %v10347_v4  ;;  %v5964_v0 = vadd.f32 %v5963_v2, %v5843_v3  ;;  %v5971_v52 = vadd.f32 %v5970_v33, %v5852_v31  ;;  %v5754_v34 = vadd.f32 %v10352_v5, %v5641_v62 }
 0x4a8   : > { %6429 = vmatpush1.msra.mxu1 %v9759_v36  ;;  %6523 = vmatpush1.msra.mxu0 %v10348_v1  ;;  %v6060_v41 = vadd.f32 %v6059_v38, %v5959_v6  ;;  %v5977_v12 = vpop.f32.mrf.mxu0  ;;  %v5957_v51 = vadd.f32 %v9871_v60, %v5834_v28  ;;  %v5861_v16 = vadd.f32 %v9886_v21, %v5752_v19 }
 0x4a9   : > { %v6064_v37 = vpop.f32.mrf.mxu1  ;;  %6431 = vmatprep.subr.mxu1 %v9768_v8  ;;  %6527 = vmatprep.subr.mxu0 %v10349_v54  ;;  %v5973_v32 = vadd.f32 %v5972_v7, %v5854_v43 }
 0x4aa   : > { %6433 = vmatpush1.msra.mxu1 %v9775_v18  ;;  %6466 = vmatprep.mubr.f32.mxu1 %v10229_v61  ;;  %v6065_v2 = vadd.f32 %v6064_v37, %v5964_v0  ;;  %7511 = vtanh.f32 %v6060_v41  ;;  %v5979_v59 = vpop.f32.mrf.mxu0  ;;  %v5978_v60 = vadd.f32 %v5977_v12, %v5861_v16 }
 0x4ab   : > { %v6066_v11 = vpop.f32.mrf.mxu1  ;;  %6531 = vmatpush1.msra.mxu0 %v10350_v27  ;;  %6470 = vmatmul.mubr.f32.vlgmr.msra.gmra.mxu1 %v10351_v35 }
 0x4ac   : > { %v6067_v17 = vadd.f32 %v6066_v11, %v5966_v25  ;;  %6597 = vmatprep.subr.mxu1 %v9780_v9  ;;  %6564 = vmatprep.mubr.f32.mxu0 %v10229_v61  ;;  %v6058_v9 = vadd.f32 %v6057_v13, %v5957_v51 }
 0x4ad   : > { %v6071_v30 = vpop.f32.mrf.mxu1  ;;  %6599 = vmatpush1.msra.mxu1 %v9766_v63  ;;  %6566 = vmatmul.mubr.f32.vlgmr.msra.gmra.mxu0 %v9734_v23  ;;  %v5863_v63 = vadd.f32 %v9902_v47, %v5754_v34 }
 0x4ae   : > { %v6072_v56 = vadd.f32 %v6071_v30, %v5971_v52  ;;  %6601 = vmatprep.subr.mxu1 %v9749_v10  ;;  %6644 = vmatprep.mubr.f32.mxu1 %v10229_v61  ;;  %7513 = vtanh.f32 %v6067_v17  ;;  %v10353_v17 = vld [vmem:[#allocation26_spill] sm:$0xff] }
 0x4af   : > { %v6073_v46 = vpop.f32.mrf.mxu1  ;;  %6603 = vmatpush1.msra.mxu1 %v9751_v39  ;;  %6724 = vmatprep.mubr.f32.mxu0 %v10229_v61  ;;  %v5980_v10 = vadd.f32 %v5979_v59, %v5863_v63 }
 0x4b0   : > { %7515 = vtanh.f32 %v6072_v56  ;;  %v6074_v21 = vadd.f32 %v6073_v46, %v5973_v32  ;;  %6605 = vmatprep.subr.mxu1 %v9755_v42 }
 0x4b1   : > { %7517 = vtanh.f32 %v6065_v2  ;;  %v6078_v45 = vpop.f32.mrf.mxu1  ;;  %6607 = vmatpush1.msra.mxu1 %v9759_v36 }
 0x4b2   : > { %7519 = vtanh.f32 %v6074_v21  ;;  %v6079_v33 = vadd.f32 %v6078_v45, %v5978_v60  ;;  %6609 = vmatprep.subr.mxu1 %v9768_v8 }
 0x4b3   : > { %7521 = vtanh.f32 %v6058_v9  ;;  %v6080_v39 = vpop.f32.mrf.mxu1  ;;  %6611 = vmatpush1.msra.mxu1 %v9775_v18  ;;  %v6104_v9 = vpop.permute.xlu0 %6103 }
 0x4b4   : > { %7523 = vtanh.f32 %v6079_v33  ;;  %v6081_v47 = vadd.f32 %v6080_v39, %v5980_v10  ;;  %6646 = vmatmul.mubr.f32.vlgmr.msra.gmra.mxu1 %v9734_v23 }
 0x4b5   : > { %6840 = vmatprep.mubr.f32.mxu1 %v10229_v61 }
 0x4b6   : > { %7525 = vtanh.f32 %v6081_v47 }
 0x4b7   : > { %v7512_v42 = vpop.eup %7511 }
 0x4b8   : > { %v9981_v26 = vand.u32 4294901760, %v7512_v42 }
 0x4ba   : > { %v10004_v62 = vsub.f32 %v7512_v42, %v9981_v26 }
 0x4bb   : > { %v7514_v57 = vpop.eup %7513 }
 0x4bc   : > { %v9975_v14 = vand.u32 4294901760, %v7514_v57  ;;  %v6798_v19 = vand.u32 4294901760, %v10004_v62 }
 0x4bd   : > { %v7516_v15 = vpop.eup %7515 }
 0x4be   : > { %v7518_v36 = vpop.eup %7517  ;;  %v9971_v24 = vand.u32 4294901760, %v7516_v15  ;;  %v9995_v4 = vsub.f32 %v7514_v57, %v9975_v14  ;;  %v6799_v34 = vsub.f32 %v10004_v62, %v6798_v19 }
 0x4bf   : > { %v7520_v55 = vpop.eup %7519  ;;  %v9977_v22 = vand.u32 4294901760, %v7518_v36 }
 0x4c0   : > { %v7522_v13 = vpop.eup %7521  ;;  %v9973_v8 = vand.u32 4294901760, %v7520_v55  ;;  %v9989_v53 = vsub.f32 %v7516_v15, %v9971_v24  ;;  %v6786_v54 = vand.u32 4294901760, %v9995_v4  ;;  %v6800_v32 = vand.u32 4294901760, %v6799_v34 }
 0x4c1   : > { %v7524_v18 = vpop.eup %7523  ;;  %v9986_v40 = vand.u32 4294901760, %v7522_v13  ;;  %v9998_v20 = vsub.f32 %v7518_v36, %v9977_v22 }
 0x4c2   : > { %v9979_v29 = vand.u32 4294901760, %v7524_v18  ;;  %v9984_v58 = vsub.f32 %v7520_v55, %v9973_v8  ;;  %v6780_v49 = vand.u32 4294901760, %v9989_v53  ;;  %v6787_v27 = vsub.f32 %v9995_v4, %v6786_v54 }
 0x4c3   : > { %v7526_v48 = vpop.eup %7525  ;;  %v10009_v3 = vsub.f32 %v7522_v13, %v9986_v40  ;;  %v6792_v25 = vand.u32 4294901760, %v9998_v20 }
 0x4c4   : > { %v9991_v7 = vand.u32 4294901760, %v7526_v48  ;;  %v6767_v38 = vsub.f32 %v7524_v18, %v9979_v29  ;;  %v6774_v1 = vand.u32 4294901760, %v9984_v58  ;;  %v6781_v0 = vsub.f32 %v9989_v53, %v6780_v49 }
 0x4c5   : > { %v6804_v12 = vand.u32 4294901760, %v10009_v3  ;;  %v6793_v52 = vsub.f32 %v9998_v20, %v6792_v25  ;;  %v6788_v30 = vand.u32 4294901760, %v6787_v27 }
 0x4c6   : > { %6677 = vmatprep.subr.mxu0 %v9991_v7  ;;  %v6761_v44 = vsub.f32 %v7526_v48, %v9991_v7  ;;  %v6768_v6 = vand.u32 4294901760, %v6767_v38  ;;  %v6775_v28 = vsub.f32 %v9984_v58, %v6774_v1  ;;  %v6782_v51 = vand.u32 4294901760, %v6781_v0 }
 0x4c7   : > { %6679 = vmatpush1.msra.mxu0 %v9979_v29  ;;  %v6805_v2 = vsub.f32 %v10009_v3, %v6804_v12  ;;  %v6794_v16 = vand.u32 4294901760, %v6793_v52 }
 0x4c8   : > { %6681 = vmatprep.subr.mxu0 %v9973_v8  ;;  %v6762_v37 = vand.u32 4294901760, %v6761_v44  ;;  %v6769_v31 = vsub.f32 %v6767_v38, %v6768_v6  ;;  %v6776_v5 = vand.u32 4294901760, %v6775_v28 }
 0x4c9   : > { %6683 = vmatpush1.msra.mxu0 %v9971_v24  ;;  %v6806_v56 = vand.u32 4294901760, %v6805_v2 }
 0x4ca   : > { %6685 = vmatprep.subr.mxu0 %v9975_v14  ;;  %v6763_v41 = vsub.f32 %v6761_v44, %v6762_v37  ;;  %v6770_v43 = vand.u32 4294901760, %v6769_v31 }
 0x4cb   : > { %6687 = vmatpush1.msra.mxu0 %v9977_v22 }
 0x4cc   : > { %6689 = vmatprep.subr.mxu0 %v9981_v26  ;;  %v6764_v11 = vand.u32 4294901760, %v6763_v41 }
 0x4cd   : > { %6691 = vmatpush1.msra.mxu0 %v9986_v40 }
 0x4ce   : > { %6730 = vmatmul.mubr.f32.vlgmr.msra.gmra.mxu0 %v10353_v17  ;;  %6765 = vmatprep.subr.mxu1 %v6764_v11 }
 0x4cf   : > { %6874 = vmatprep.subr.mxu0 %v6761_v44  ;;  %6771 = vmatpush1.msra.mxu1 %v6770_v43 }
 0x4d0   : > { %6877 = vmatpush1.msra.mxu0 %v6767_v38  ;;  %6777 = vmatprep.subr.mxu1 %v6776_v5 }
 0x4d1   : > { %6880 = vmatprep.subr.mxu0 %v9984_v58  ;;  %6783 = vmatpush1.msra.mxu1 %v6782_v51 }
 0x4d2   : > { %6883 = vmatpush1.msra.mxu0 %v9989_v53  ;;  %6789 = vmatprep.subr.mxu1 %v6788_v30 }
 0x4d3   : > { %6886 = vmatprep.subr.mxu0 %v9995_v4  ;;  %6795 = vmatpush1.msra.mxu1 %v6794_v16 }
 0x4d4   : > { %6889 = vmatpush1.msra.mxu0 %v9998_v20  ;;  %6801 = vmatprep.subr.mxu1 %v6800_v32 }
 0x4d5   : > { %6892 = vmatprep.subr.mxu0 %v10004_v62  ;;  %6807 = vmatpush1.msra.mxu1 %v6806_v56 }
 0x4d6   : > { %6895 = vmatpush1.msra.mxu0 %v10009_v3  ;;  %6842 = vmatmul.mubr.f32.vlgmr.msra.gmra.mxu1 %v9734_v23 }
 0x4d7   : > { %6928 = vmatprep.mubr.f32.mxu0 %v10229_v61  ;;  %6962 = vmatprep.subr.mxu1 %v9991_v7 }
 0x4d8   : > { %7046 = vmatprep.subr.mxu0 %v6762_v37  ;;  %6931 = vmatmul.mubr.f32.vlgmr.msra.gmra.mxu0 %v9743_v50 }
 0x4d9   : > { %6964 = vmatpush1.msra.mxu1 %v9979_v29  ;;  %7050 = vmatpush1.msra.mxu0 %v6768_v6 }
 0x4da   : > { %6966 = vmatprep.subr.mxu1 %v9973_v8  ;;  %7054 = vmatprep.subr.mxu0 %v6774_v1 }
 0x4db   : > { %6968 = vmatpush1.msra.mxu1 %v9971_v24  ;;  %7058 = vmatpush1.msra.mxu0 %v6780_v49 }
 0x4dc   : > { %6970 = vmatprep.subr.mxu1 %v9975_v14  ;;  %7062 = vmatprep.subr.mxu0 %v6786_v54 }
 0x4dd   : > { %6972 = vmatpush1.msra.mxu1 %v9977_v22  ;;  %7066 = vmatpush1.msra.mxu0 %v6792_v25 }
 0x4de   : > { %6974 = vmatprep.subr.mxu1 %v9981_v26  ;;  %7070 = vmatprep.subr.mxu0 %v6798_v19 }
 0x4df   : > { %6976 = vmatpush1.msra.mxu1 %v9986_v40  ;;  %7009 = vmatprep.mubr.f32.mxu1 %v10229_v61 }
 0x4e0   : > { %7074 = vmatpush1.msra.mxu0 %v6804_v12  ;;  %7013 = vmatmul.mubr.f32.vlgmr.msra.gmra.mxu1 %v10351_v35 }
 0x4e1   : > { %7140 = vmatprep.subr.mxu1 %v9991_v7  ;;  %7107 = vmatprep.mubr.f32.mxu0 %v10229_v61 }
 0x4e2   : > { %7142 = vmatpush1.msra.mxu1 %v9979_v29  ;;  %7109 = vmatmul.mubr.f32.vlgmr.msra.gmra.mxu0 %v9734_v23 }
 0x4e3   : > { %7144 = vmatprep.subr.mxu1 %v9973_v8  ;;  %7187 = vmatprep.mubr.f32.mxu1 %v10229_v61 }
 0x4e4   : > { %7146 = vmatpush1.msra.mxu1 %v9971_v24 }
 0x4e5   : > { %7148 = vmatprep.subr.mxu1 %v9975_v14 }
 0x4e6   : > { %7150 = vmatpush1.msra.mxu1 %v9977_v22 }
 0x4e7   : > { %7152 = vmatprep.subr.mxu1 %v9981_v26 }
 0x4e8   : > { %7154 = vmatpush1.msra.mxu1 %v9986_v40 }
 0x4e9   : > { %7189 = vmatmul.mubr.f32.vlgmr.msra.gmra.mxu1 %v9734_v23 }
 0x559   : > { %v6188_v50 = vpop.f32.mrf.mxu0 }
 0x55a   : > { %v6189_v46 = vadd.f32 %v6188_v50, %v6104_v9 }
 0x55b   : > { %v6190_v59 = vpop.f32.mrf.mxu0 }
 0x55c   : > { %v6191_v61 = vadd.f32 %v6190_v59, %v6104_v9 }
 0x561   : > { %v6300_v35 = vpop.f32.mrf.mxu1 }
 0x562   : > { %v6301_v21 = vadd.f32 %v6300_v35, %v6189_v46 }
 0x563   : > { %v6302_v63 = vpop.f32.mrf.mxu1  ;;  %v6389_v60 = vpop.f32.mrf.mxu0 }
 0x564   : > { %v6303_v45 = vadd.f32 %v6302_v63, %v6191_v61  ;;  %v6390_v39 = vadd.f32 %v6389_v60, %v6301_v21 }
 0x565   : > { %v6391_v33 = vpop.f32.mrf.mxu0 }
 0x566   : > { %v6392_v57 = vadd.f32 %v6391_v33, %v6303_v45 }
 0x56b   : > { %v6471_v10 = vpop.f32.mrf.mxu1 }
 0x56c   : > { %v6472_v15 = vadd.f32 %v6471_v10, %v6390_v39 }
 0x56d   : > { %v6473_v47 = vpop.f32.mrf.mxu1  ;;  %v6567_v42 = vpop.f32.mrf.mxu0 }
 0x56e   : > { %v6474_v36 = vadd.f32 %v6473_v47, %v6392_v57  ;;  %v6568_v23 = vadd.f32 %v6567_v42, %v6472_v15 }
 0x56f   : > { %v6569_v55 = vpop.f32.mrf.mxu0 }
 0x570   : > { %v6570_v13 = vadd.f32 %v6569_v55, %v6474_v36 }
 0x574   : > { %v6647_v24 = vpop.f32.mrf.mxu1 }
 0x575   : > { %v6648_v8 = vadd.f32 %v6647_v24, %v6568_v23 }
 0x576   : > { %v6649_v14 = vpop.f32.mrf.mxu1 }
 0x577   : > { %v7332_v18 = vmul.f32 -1.442695, %v6648_v8  ;;  %v6650_v22 = vadd.f32 %v6649_v14, %v6570_v13 }
 0x579   : > { %7527 = vpow2.f32 %v7332_v18  ;;  %v7333_v29 = vmul.f32 -1.442695, %v6650_v22 }
 0x57b   : > { %7529 = vpow2.f32 %v7333_v29 }
 0x586   : > { %v7528_v26 = vpop.eup %7527 }
 0x587   : > { %v7207_v58 = vadd.f32 1.0, %v7528_v26 }
 0x588   : > { %v7530_v48 = vpop.eup %7529 }
 0x589   : > { %v7208_v40 = vadd.f32 1.0, %v7530_v48  ;;  %7531 = vrcp.f32 %v7207_v58 }
 0x58b   : > { %7533 = vrcp.f32 %v7208_v40 }
 0x58e   : > { %v6731_v7 = vpop.f32.mrf.mxu0 }
 0x58f   : > { %v6732_v6 = vadd.f32 %v6731_v7, %v6104_v9 }
 0x590   : > { %v6733_v44 = vpop.f32.mrf.mxu0 }
 0x591   : > { %v6734_v49 = vadd.f32 %v6733_v44, %v6104_v9 }
 0x596   : > { %v7532_v53 = vpop.eup %7531  ;;  %v6843_v4 = vpop.f32.mrf.mxu1 }
 0x597   : > { %v6844_v3 = vadd.f32 %v6843_v4, %v6732_v6 }
 0x598   : > { %v7534_v38 = vpop.eup %7533  ;;  %v6845_v1 = vpop.f32.mrf.mxu1 }
 0x599   : > { %v7223_v20 = vcombine.low %v7532_v53, %v7534_v38  ;;  %v6932_v62 = vpop.f32.mrf.mxu0  ;;  %v6846_v37 = vadd.f32 %v6845_v1, %v6734_v49 }
 0x59a   : > { %v6933_v25 = vadd.f32 %v6932_v62, %v6844_v3 }
 0x59b   : > { %7227 = vst [vmem:[%s10060_s16] sm:$0x77] %v7223_v20  ;;  %v6934_v31 = vpop.f32.mrf.mxu0 }
 0x59c   : > { %v6935_v19 = vadd.f32 %v6934_v31, %v6846_v37 }
 0x5a0   : > { %v7014_v54 = vpop.f32.mrf.mxu1 }
 0x5a1   : > { %v7015_v0 = vadd.f32 %v7014_v54, %v6933_v25 }
 0x5a2   : > { %v7016_v41 = vpop.f32.mrf.mxu1  ;;  %v7110_v28 = vpop.f32.mrf.mxu0 }
 0x5a3   : > { %v7017_v12 = vadd.f32 %v7016_v41, %v6935_v19  ;;  %v7111_v27 = vadd.f32 %v7110_v28, %v7015_v0 }
 0x5a4   : > { %v7112_v11 = vpop.f32.mrf.mxu0 }
 0x5a5   : > { %v7113_v52 = vadd.f32 %v7112_v11, %v7017_v12 }
 0x5a9   : > { %v7190_v43 = vpop.f32.mrf.mxu1 }
 0x5aa   : > { %v7191_v17 = vadd.f32 %v7190_v43, %v7111_v27 }
 0x5ab   : > { %v7192_v5 = vpop.f32.mrf.mxu1 }
 0x5ac   : > { %v7334_v34 = vmul.f32 -1.442695, %v7191_v17  ;;  %v7193_v51 = vadd.f32 %v7192_v5, %v7113_v52 }
 0x5ae   : > { %7535 = vpow2.f32 %v7334_v34  ;;  %v7335_v2 = vmul.f32 -1.442695, %v7193_v51 }
 0x5b0   : > { %7537 = vpow2.f32 %v7335_v2 }
 0x5bb   : > { %v7536_v30 = vpop.eup %7535 }
 0x5bc   : > { %v7209_v16 = vadd.f32 1.0, %v7536_v30 }
 0x5bd   : > { %v7538_v32 = vpop.eup %7537 }
 0x5be   : > { %v7210_v56 = vadd.f32 1.0, %v7538_v32  ;;  %7539 = vrcp.f32 %v7209_v16 }
 0x5c0   : > { %7541 = vrcp.f32 %v7210_v56 }
 0x5cb   : > { %v7540_v50 = vpop.eup %7539 }
 0x5cd   : > { %v7542_v35 = vpop.eup %7541 }
 0x5ce   : > { %v7224_v9 = vcombine.low %v7540_v50, %v7542_v35 }
 0x5d0   : > { %7228 = vst [vmem:[%s10060_s16 + $0x8] sm:$0x77] %v7224_v9 }
 0x5d1   : > { %7582 = shalt.err (!%p7579_p1)
}
 0x5d2   : > { %s7583_s30 = scalar_lea.hbm %s7242_s12, 256  ;;  %s7587_s16 = scalar_lea.hbm %s10111_s11, 512 }
 0x5d3   : > { %p7584_p2 = scmp.ne.s32.totalorder %s7242_s12, %s7583_s30  ;;  %p7588_p7 = scmp.lt.s32.totalorder %s7242_s12, %s10111_s11 }
 0x5d4   : > { %p7589_p8 = scmp.lt.s32.totalorder %s7587_s16, %s7583_s30 }
 0x5d5   : > { %p7585_p3 = pnand %p7584_p2, %p10354_p6 }
 0x5d6   : > { %p7590_p5 = por %p7589_p8, %p7588_p7 }
 0x5d7   : > { %p7586_p4 = pneg %p7585_p3 }
 0x5d9   : > { %p7591_p10 = pnand %p7590_p5, %p7586_p4 }
 0x5db   : > { %7594 = shalt.err (!%p7591_p10)
}
 0x5dc   : > { %7347 = dma.vmem_to_hbm [thread:$0]  (%p10354_p6), %s7245_s22, 256, %s7242_s12, %s7230_s14  }
 0x5dd PF: > { %s10355_s25 = sld [smem:[#allocation11_spill]]  ;;  %s7256_s13 = sand.u32 1, %s7621_s17  }
 0x5de   : > { %s7257_s26 = scalar_lea.sflag [#allocation5], %s7256_s13 }
 0x5e3   : > { %p10356_p11 = scmp.ne.s32.totalorder %s10355_s25, 0 }
 0x5e5   : > { %p7354_p12 = pnand %p7324_p9, %p10356_p11 }
 0x5e7   : > { %p7355_p13 = pneg %p7354_p12 }
 0x5e9   : > { %7616 = dma.done.wait (%p7355_p13), %s7257_s26, 256  }
 0x5ea   : > { %7618 = vsyncadd (%p7355_p13), %s7257_s26, 4294967040  ;;  %s10357_s20 = sld [smem:[#allocation9_spill]]  ;;  %s10359_s17 = smov %s7625_s18 }
 0x5eb   : > { %s10358_s29 = sld [smem:[#allocation10_spill]]  ;;  %s10360_s18 = smov %s7629_s19 }
 0x5f0   : > { %p22_p0 = scmp.ge.s32.totalorder %s10357_s20, 4  }
 0x5f1   : > { %s10361_s19 = smov %s10358_s29 }
 0x5f2   :  { %24 = sbr.rel (!%p22_p0) target bundleno = 4 (0x4), region = 132 }
 0x5f7   :  { %7262 = vsyncpa [#allocation4], 1 }
 0x5f8   :  { %7264 = vsyncpa [#allocation4 + $0x1], 1 }
 0x5f9   :  { %7265 = vsyncpa [#allocation5], 1 }
 0x5fa   :  { %7267 = vsyncpa [#allocation5 + $0x1], 1 }

</bundles_post_ra>
